<compile_context>
chip_gen: v7x
topology: tpu7x:2x2x1
jax: 0.10.0
libtpu: 0.0.40
codegen_flags: <defaults>
</compile_context>

<pallas_src>
import functools
import math
from types import SimpleNamespace

import jax
import jax.numpy as jnp
from jax.experimental import pallas as pl
from jax.experimental.pallas import tpu as pltpu


def _round_up(x, m):
    return ((x + m - 1) // m) * m


# --------------------------- tiled linear (matmul) ---------------------------

def _matmul_kernel(*refs, activation, has_add):
    if has_add:
        x_ref, a_ref, w_ref, b_ref, o_ref, acc_ref = refs
        x = x_ref[...] + a_ref[...]            # fused pre-add (pos / qpos), f32
    else:
        x_ref, w_ref, b_ref, o_ref, acc_ref = refs
        x = x_ref[...]

    @pl.when(pl.program_id(2) == 0)
    def _():
        acc_ref[...] = jnp.zeros_like(acc_ref)

    # bf16 operands into the MXU, f32 accumulate.
    acc_ref[...] += jnp.dot(x.astype(jnp.bfloat16), w_ref[...],
                            preferred_element_type=jnp.float32)

    @pl.when(pl.program_id(2) == pl.num_programs(2) - 1)
    def _():
        out = acc_ref[...] + b_ref[...]
        if activation == "relu":
            out = jnp.maximum(out, 0.0)
        elif activation == "sigmoid":
            out = jax.nn.sigmoid(out)
        o_ref[...] = out.astype(o_ref.dtype)


def linear(x, w, b, activation="none", add=None):
    """y = act((x [+ add]) @ w + b).  x/add: [M,K] f32, w: [K,N], b: [N].

    Zero-pads N and K up to multiples of 128 (lane-dense, unmasked stores) and
    M up to a multiple of 8, then runs a tiled, K-accumulated Pallas matmul.
    """
    M, K = x.shape
    N = w.shape[1]
    tm = min(256, _round_up(M, 8))
    tn = min(256, _round_up(N, 128))
    tk = min(512, _round_up(K, 128))
    Mp, Np, Kp = _round_up(M, tm), _round_up(N, tn), _round_up(K, tk)

    x_p = jnp.pad(x.astype(jnp.float32), ((0, Mp - M), (0, Kp - K)))
    w_p = jnp.pad(w.astype(jnp.float32), ((0, Kp - K), (0, Np - N))).astype(jnp.bfloat16)
    b_p = jnp.pad(b.astype(jnp.float32), (0, Np - N)).reshape(1, Np)

    operands = [x_p]
    in_specs = [pl.BlockSpec((tm, tk), lambda i, j, k: (i, k))]
    if add is not None:
        a_p = jnp.pad(add.astype(jnp.float32), ((0, Mp - M), (0, Kp - K)))
        operands.append(a_p)
        in_specs.append(pl.BlockSpec((tm, tk), lambda i, j, k: (i, k)))
    operands += [w_p, b_p]
    in_specs += [pl.BlockSpec((tk, tn), lambda i, j, k: (k, j)),
                 pl.BlockSpec((1, tn), lambda i, j, k: (0, j))]

    kern = functools.partial(_matmul_kernel, activation=activation,
                             has_add=add is not None)
    x_bytes = Mp * Kp * 4 * (2 if add is not None else 1)
    out = pl.pallas_call(
        kern,
        out_shape=jax.ShapeDtypeStruct((Mp, Np), jnp.float32),
        grid=(Mp // tm, Np // tn, Kp // tk),
        in_specs=in_specs,
        out_specs=pl.BlockSpec((tm, tn), lambda i, j, k: (i, j)),
        scratch_shapes=[pltpu.VMEM((tm, tn), jnp.float32)],
        compiler_params=pltpu.CompilerParams(
            dimension_semantics=("parallel", "parallel", "arbitrary"),
            # sized for v7x's 32 MiB scoped default; tiles above use far less.
            vmem_limit_bytes=32 * 1024 * 1024),
        cost_estimate=pl.CostEstimate(
            flops=2 * Mp * Np * Kp,
            transcendentals=0,
            bytes_accessed=x_bytes + Kp * Np * 2 + Np * 4 + Mp * Np * 4),
    )(*operands)
    return out[:M, :N]


# ------------------------ row-tiled LayerNorm (+res) ------------------------

def _ln_kernel(*refs, eps, has_res):
    if has_res:
        x_ref, r_ref, g_ref, b_ref, o_ref = refs
        x = x_ref[...].astype(jnp.float32) + r_ref[...].astype(jnp.float32)
    else:
        x_ref, g_ref, b_ref, o_ref = refs
        x = x_ref[...].astype(jnp.float32)
    mu = jnp.mean(x, axis=-1, keepdims=True)
    var = jnp.mean(jnp.square(x - mu), axis=-1, keepdims=True)
    xn = (x - mu) * jax.lax.rsqrt(var + eps)
    o_ref[...] = (xn * g_ref[...] + b_ref[...]).astype(o_ref.dtype)


def layernorm(x, g, b, res=None, eps=1e-5):
    """Per-row LayerNorm over last dim; optionally fused residual LN(x + res)."""
    M, D = x.shape
    tm = min(512, _round_up(M, 8))
    Mp = _round_up(M, tm)

    x_p = jnp.pad(x.astype(jnp.float32), ((0, Mp - M), (0, 0)))
    operands = [x_p]
    in_specs = [pl.BlockSpec((tm, D), lambda i: (i, 0))]
    if res is not None:
        r_p = jnp.pad(res.astype(jnp.float32), ((0, Mp - M), (0, 0)))
        operands.append(r_p)
        in_specs.append(pl.BlockSpec((tm, D), lambda i: (i, 0)))
    operands += [g.reshape(1, D).astype(jnp.float32),
                 b.reshape(1, D).astype(jnp.float32)]
    in_specs += [pl.BlockSpec((1, D), lambda i: (0, 0)),
                 pl.BlockSpec((1, D), lambda i: (0, 0))]

    kern = functools.partial(_ln_kernel, eps=eps, has_res=res is not None)
    out = pl.pallas_call(
        kern,
        out_shape=jax.ShapeDtypeStruct((Mp, D), jnp.float32),
        grid=(Mp // tm,),
        in_specs=in_specs,
        out_specs=pl.BlockSpec((tm, D), lambda i: (i, 0)),
        compiler_params=pltpu.CompilerParams(
            dimension_semantics=("parallel",)),
    )(*operands)
    return out[:M]


# ------------------------------ attention core -------------------------------

def _attn_kernel(q_ref, k_ref, v_ref, o_ref, *, nheads, scale):
    q = q_ref[0]                          # [Sq, D]  (D on lanes)
    k = k_ref[0]                          # [Sk, D]
    v = v_ref[0]                          # [Sk, D]
    D = q.shape[-1]
    Dh = D // nheads
    outs = []
    for h in range(nheads):               # static unrolled loop over heads
        sl = slice(h * Dh, (h + 1) * Dh)
        qh = q[:, sl].astype(jnp.bfloat16)
        kh = k[:, sl].astype(jnp.bfloat16)
        vh = v[:, sl].astype(jnp.bfloat16)
        # scores: [Sq, Sk] -> Sk on the 128-lane axis.
        s = jax.lax.dot_general(qh, kh, (((1,), (1,)), ((), ())),
                                preferred_element_type=jnp.float32) * scale
        m = jnp.max(s, axis=-1, keepdims=True)
        p = jnp.exp(s - m)
        p = p * pl.reciprocal(jnp.sum(p, axis=-1, keepdims=True), approx=True)
        outs.append(jnp.dot(p.astype(jnp.bfloat16), vh,
                            preferred_element_type=jnp.float32))
    # single lane-dense store of the full [Sq, D] output block.
    o_ref[0] = jnp.concatenate(outs, axis=-1).astype(o_ref.dtype)


def attention_core(q, k, v, nheads):
    """q: [B, Sq, D], k/v: [B, Sk, D] -> softmax(q k^T / sqrt(Dh)) v, per head."""
    B, Sq, D = q.shape
    Sk = k.shape[1]
    scale = 1.0 / math.sqrt(D // nheads)
    kern = functools.partial(_attn_kernel, nheads=nheads, scale=scale)
    return pl.pallas_call(
        kern,
        out_shape=jax.ShapeDtypeStruct((B, Sq, D), jnp.float32),
        grid=(B,),
        in_specs=[
            pl.BlockSpec((1, Sq, D), lambda b: (b, 0, 0)),
            pl.BlockSpec((1, Sk, D), lambda b: (b, 0, 0)),
            pl.BlockSpec((1, Sk, D), lambda b: (b, 0, 0)),
        ],
        out_specs=pl.BlockSpec((1, Sq, D), lambda b: (b, 0, 0)),
        compiler_params=pltpu.CompilerParams(
            dimension_semantics=("parallel",)),
    )(q.astype(jnp.float32), k.astype(jnp.float32), v.astype(jnp.float32))


# ------------------------------- model glue ---------------------------------

def linear3d(x, p, activation="none"):
    B, S, D = x.shape
    return linear(x.reshape(B * S, D), p["w"], p["b"], activation).reshape(B, S, -1)


def layernorm3d(x, p, res=None):
    B, S, D = x.shape
    r = None if res is None else res.reshape(B * S, D)
    return layernorm(x.reshape(B * S, D), p["g"], p["b"], res=r).reshape(B, S, D)


def self_attention(x, pos, p, nheads):
    """DETR self-attn: q = k = x + pos, v = x.  Fused QK projection + pos add."""
    B, S, D = x.shape
    x2 = x.reshape(B * S, D)
    pos_b = jnp.broadcast_to(pos[None], (B, S, D)).reshape(B * S, D)
    wqk = jnp.concatenate([p["wq"], p["wk"]], axis=1)          # [D, 2D]
    bqk = jnp.concatenate([p["bq"], p["bk"]])
    qk = linear(x2, wqk, bqk, add=pos_b)                       # [B*S, 2D]
    v = linear(x2, p["wv"], p["bv"])                           # [B*S, D]
    q = qk[:, :D].reshape(B, S, D)
    k = qk[:, D:].reshape(B, S, D)
    o = attention_core(q, k, v.reshape(B, S, D), nheads)
    return linear(o.reshape(B * S, D), p["wo"], p["bo"]).reshape(B, S, D)


def cross_attention(tgt, qpos, memory, pos, p, nheads):
    """DETR cross-attn: q = tgt + qpos, k = memory + pos, v = memory."""
    B, Sq, D = tgt.shape
    Sk = memory.shape[1]
    t2 = tgt.reshape(B * Sq, D)
    m2 = memory.reshape(B * Sk, D)
    qpos_b = jnp.broadcast_to(qpos[None], (B, Sq, D)).reshape(B * Sq, D)
    pos_b = jnp.broadcast_to(pos[None], (B, Sk, D)).reshape(B * Sk, D)
    q = linear(t2, p["wq"], p["bq"], add=qpos_b).reshape(B, Sq, D)
    k = linear(m2, p["wk"], p["bk"], add=pos_b).reshape(B, Sk, D)
    v = linear(m2, p["wv"], p["bv"]).reshape(B, Sk, D)
    o = attention_core(q, k, v, nheads)
    return linear(o.reshape(B * Sq, D), p["wo"], p["bo"]).reshape(B, Sq, D)


def encoder_layer(src, pos, p, nheads):
    # DETR post-norm encoder layer (residual adds fused into LayerNorm)
    attn = self_attention(src, pos, p["self_attn"], nheads)
    src = layernorm3d(attn, p["norm1"], res=src)
    ff = linear3d(linear3d(src, p["lin1"], "relu"), p["lin2"])
    src = layernorm3d(ff, p["norm2"], res=src)
    return src


def decoder_layer(tgt, memory, pos, qpos, p, nheads):
    # DETR post-norm decoder layer
    attn = self_attention(tgt, qpos, p["self_attn"], nheads)
    tgt = layernorm3d(attn, p["norm1"], res=tgt)
    cross = cross_attention(tgt, qpos, memory, pos, p["cross_attn"], nheads)
    tgt = layernorm3d(cross, p["norm2"], res=tgt)
    ff = linear3d(linear3d(tgt, p["lin1"], "relu"), p["lin2"])
    tgt = layernorm3d(ff, p["norm3"], res=tgt)
    return tgt


def sine_pos_embed(H, W, d, temperature=10000.0):
    """DETR PositionEmbeddingSine (no padding mask)."""
    num_pos_feats = d // 2
    eps = 1e-6
    scale = 2.0 * math.pi
    y = (jnp.arange(1, H + 1, dtype=jnp.float32) / (H + eps) * scale)[:, None]
    x = (jnp.arange(1, W + 1, dtype=jnp.float32) / (W + eps) * scale)[None, :]
    y = jnp.broadcast_to(y, (H, W))
    x = jnp.broadcast_to(x, (H, W))
    dim_t = jnp.arange(num_pos_feats, dtype=jnp.float32)
    dim_t = temperature ** (2.0 * jnp.floor(dim_t / 2.0) / num_pos_feats)
    pos_x = x[:, :, None] / dim_t
    pos_y = y[:, :, None] / dim_t
    pos_x = jnp.stack([jnp.sin(pos_x[:, :, 0::2]), jnp.cos(pos_x[:, :, 1::2])],
                      axis=3).reshape(H, W, num_pos_feats)
    pos_y = jnp.stack([jnp.sin(pos_y[:, :, 0::2]), jnp.cos(pos_y[:, :, 1::2])],
                      axis=3).reshape(H, W, num_pos_feats)
    return jnp.concatenate([pos_y, pos_x], axis=-1).reshape(H * W, d)


def detr_forward(params, x, cfg):
    B = x.shape[0]
    # --- backbone stem: 4x4 / stride-4 conv as im2col + Pallas matmul + ReLU ---
    xh = jnp.transpose(x, (0, 2, 3, 1))                         # NCHW -> NHWC
    Hp, Wp = cfg.h // cfg.patch, cfg.w // cfg.patch
    patches = xh.reshape(B, Hp, cfg.patch, Wp, cfg.patch, cfg.cin)
    patches = patches.transpose(0, 1, 3, 2, 4, 5).reshape(
        B * Hp * Wp, cfg.patch * cfg.patch * cfg.cin)
    feat = linear(patches, params["backbone"]["w"], params["backbone"]["b"],
                  activation="relu")                            # [B*S, Cb]
    # --- 1x1 input projection to hidden dim ---
    src = linear(feat, params["input_proj"]["w"], params["input_proj"]["b"])
    S = Hp * Wp
    src = src.reshape(B, S, cfg.d)
    pos = sine_pos_embed(Hp, Wp, cfg.d)                         # [S, d]

    # --- transformer encoder ---
    for p_l in params["enc"]:
        src = encoder_layer(src, pos, p_l, cfg.nheads)
    memory = src

    # --- transformer decoder with learned object queries ---
    qpos = params["query_embed"]                                # [nq, d]
    tgt = jnp.zeros((B, cfg.nq, cfg.d), jnp.float32)
    for p_l in params["dec"]:
        tgt = decoder_layer(tgt, memory, pos, qpos, p_l, cfg.nheads)
    hs = layernorm3d(tgt, params["dec_norm"])

    # --- prediction heads (N padded to 128 lanes inside linear()) ---
    pred_logits = linear3d(hs, params["class_embed"])           # [B, nq, C+1]
    hb = linear3d(hs, params["bbox1"], "relu")
    hb = linear3d(hb, params["bbox2"], "relu")
    pred_boxes = linear3d(hb, params["bbox3"], "sigmoid")       # [B, nq, 4]
    # aux_outputs omitted (hub detr_resnet50 builds with aux_loss=False)
    return {"pred_logits": pred_logits, "pred_boxes": pred_boxes}


# --------------------------- deterministic init ----------------------------

def _dense(key, fan_in, fan_out):
    w = jax.random.normal(key, (fan_in, fan_out), jnp.float32) / math.sqrt(fan_in)
    return {"w": w, "b": jnp.zeros((fan_out,), jnp.float32)}


def _ln(d):
    return {"g": jnp.ones((d,), jnp.float32), "b": jnp.zeros((d,), jnp.float32)}


def _mha_params(key, d):
    ks = jax.random.split(key, 4)
    p = {}
    for name, k in zip("qkvo", ks):
        dd = _dense(k, d, d)
        p["w" + name], p["b" + name] = dd["w"], dd["b"]
    return p


def init_detr_params(key, cfg):
    keys = iter(jax.random.split(key, 64))
    P = {}
    P["backbone"] = _dense(next(keys), cfg.patch * cfg.patch * cfg.cin, cfg.cb)
    P["input_proj"] = _dense(next(keys), cfg.cb, cfg.d)
    P["query_embed"] = jax.random.normal(next(keys), (cfg.nq, cfg.d), jnp.float32)
    P["enc"] = [{
        "self_attn": _mha_params(next(keys), cfg.d),
        "lin1": _dense(next(keys), cfg.d, cfg.dff),
        "lin2": _dense(next(keys), cfg.dff, cfg.d),
        "norm1": _ln(cfg.d), "norm2": _ln(cfg.d),
    } for _ in range(cfg.enc_layers)]
    P["dec"] = [{
        "self_attn": _mha_params(next(keys), cfg.d),
        "cross_attn": _mha_params(next(keys), cfg.d),
        "lin1": _dense(next(keys), cfg.d, cfg.dff),
        "lin2": _dense(next(keys), cfg.dff, cfg.d),
        "norm1": _ln(cfg.d), "norm2": _ln(cfg.d), "norm3": _ln(cfg.d),
    } for _ in range(cfg.dec_layers)]
    P["dec_norm"] = _ln(cfg.d)
    P["class_embed"] = _dense(next(keys), cfg.d, cfg.num_classes + 1)
    P["bbox1"] = _dense(next(keys), cfg.d, cfg.d)
    P["bbox2"] = _dense(next(keys), cfg.d, cfg.d)
    P["bbox3"] = _dense(next(keys), cfg.d, 4)
    return P


# --------------------------------- main ------------------------------------

if __name__ == "__main__":
    cfg = SimpleNamespace(
        cin=3, h=16, w=16, patch=4, cb=64,      # backbone stem
        d=32, nheads=4, dff=64,                 # transformer widths
        enc_layers=2, dec_layers=2,
        nq=8, num_classes=5,                    # queries / classes (+1 no-object)
    )
    key = jax.random.PRNGKey(0)
    k_param, k_x = jax.random.split(key)
    params = init_detr_params(k_param, cfg)
    x = jax.random.normal(k_x, (2, cfg.cin, cfg.h, cfg.w), jnp.float32)  # NCHW

    fwd = jax.jit(functools.partial(detr_forward, cfg=cfg))
    out = fwd(params, x)
    jax.block_until_ready(out)

    assert out["pred_logits"].shape == (2, cfg.nq, cfg.num_classes + 1)
    assert out["pred_boxes"].shape == (2, cfg.nq, 4)
    assert bool(jnp.all(jnp.isfinite(out["pred_logits"])))
    assert bool(jnp.all((out["pred_boxes"] >= 0.0) & (out["pred_boxes"] <= 1.0)))
    print("KERNEL_OK")
</pallas_src>

<mosaic_0001>
module attributes {stable_mosaic.version = 11 : i64} {
  func.func @_matmul_kernel(%arg0: i32, %arg1: i32, %arg2: i32, %arg3: memref<32x128xf32, #tpu.memory_space<vmem>>, %arg4: memref<128x128xbf16, #tpu.memory_space<vmem>>, %arg5: memref<1x128xf32, #tpu.memory_space<vmem>>, %arg6: memref<32x128xf32, #tpu.memory_space<vmem>>, %arg7: memref<32x128xf32, #tpu.memory_space<vmem>>) attributes {dimension_semantics = [#tpu.dimension_semantics<parallel>, #tpu.dimension_semantics<parallel>, #tpu.dimension_semantics<arbitrary>], iteration_bounds = array<i64: 1, 1, 1>, scalar_prefetch = 0 : i64, scratch_operands = 1 : i64, tpu.core_type = #tpu.core_type<tc>, window_params = [{transform_indices = @transform_0, window_bounds = array<i64: 32, 128>}, {transform_indices = @transform_1, window_bounds = array<i64: 128, 128>}, {transform_indices = @transform_2, window_bounds = array<i64: 1, 128>}, {transform_indices = @transform_3, window_bounds = array<i64: 32, 128>}]} {
    %c0 = arith.constant 0 : index
    %c0_0 = arith.constant 0 : index
    %0 = vector.load %arg3[%c0, %c0_0] : memref<32x128xf32, #tpu.memory_space<vmem>>, vector<32x128xf32>
    %c0_i32 = arith.constant 0 : i32
    %1 = arith.cmpi eq, %arg2, %c0_i32 : i32
    %2 = arith.extui %1 : i1 to i32
    %c0_i32_1 = arith.constant 0 : i32
    %3 = arith.cmpi ne, %2, %c0_i32_1 : i32
    scf.if %3 {
      %cst_10 = arith.constant 0.000000e+00 : f32
      %13 = vector.broadcast %cst_10 : f32 to vector<32x128xf32>
      %c0_11 = arith.constant 0 : index
      %c0_12 = arith.constant 0 : index
      %14 = vector.load %arg7[%c0_11, %c0_12] : memref<32x128xf32, #tpu.memory_space<vmem>>, vector<32x128xf32>
      tpu.vector_store %arg7[%c0_11, %c0_12], %13 {strides = array<i32>} : memref<32x128xf32, #tpu.memory_space<vmem>>, vector<32x128xf32>,
    } else {
    }
    %c0_2 = arith.constant 0 : index
    %c0_3 = arith.constant 0 : index
    %4 = vector.load %arg7[%c0_2, %c0_3] : memref<32x128xf32, #tpu.memory_space<vmem>>, vector<32x128xf32>
    %5 = arith.truncf %0 : vector<32x128xf32> to vector<32x128xbf16>
    %c0_4 = arith.constant 0 : index
    %c0_5 = arith.constant 0 : index
    %6 = vector.load %arg4[%c0_4, %c0_5] : memref<128x128xbf16, #tpu.memory_space<vmem>>, vector<128x128xbf16>
    %cst = arith.constant dense<0.000000e+00> : vector<32x128xf32>
    %7 = tpu.matmul %5, %6, %cst {dimension_numbers = #tpu.dot_dimension_numbers<[1], [0], [0], [1], [0, 0, 1, 1], [], []>} : vector<32x128xbf16>, vector<128x128xbf16>, vector<32x128xf32> -> vector<32x128xf32>
    %8 = arith.addf %4, %7 : vector<32x128xf32>
    %c0_6 = arith.constant 0 : index
    %c0_7 = arith.constant 0 : index
    %9 = vector.load %arg7[%c0_6, %c0_7] : memref<32x128xf32, #tpu.memory_space<vmem>>, vector<32x128xf32>
    tpu.vector_store %arg7[%c0_6, %c0_7], %8 {strides = array<i32>} : memref<32x128xf32, #tpu.memory_space<vmem>>, vector<32x128xf32>,
    %c0_i32_8 = arith.constant 0 : i32
    %10 = arith.cmpi eq, %arg2, %c0_i32_8 : i32
    %11 = arith.extui %10 : i1 to i32
    %c0_i32_9 = arith.constant 0 : i32
    %12 = arith.cmpi ne, %11, %c0_i32_9 : i32
    scf.if %12 {
      %c0_10 = arith.constant 0 : index
      %c0_11 = arith.constant 0 : index
      %13 = vector.load %arg7[%c0_10, %c0_11] : memref<32x128xf32, #tpu.memory_space<vmem>>, vector<32x128xf32>
      %c0_12 = arith.constant 0 : index
      %c0_13 = arith.constant 0 : index
      %14 = vector.load %arg5[%c0_12, %c0_13] : memref<1x128xf32, #tpu.memory_space<vmem>>, vector<1x128xf32>
      %15 = vector.broadcast %14 : vector<1x128xf32> to vector<32x128xf32>
      %16 = arith.addf %13, %15 : vector<32x128xf32>
      %cst_14 = arith.constant 0.000000e+00 : f32
      %17 = vector.broadcast %cst_14 : f32 to vector<32x128xf32>
      %18 = arith.maximumf %16, %17 : vector<32x128xf32>
      %c0_15 = arith.constant 0 : index
      %c0_16 = arith.constant 0 : index
      %19 = vector.load %arg6[%c0_15, %c0_16] : memref<32x128xf32, #tpu.memory_space<vmem>>, vector<32x128xf32>
      tpu.vector_store %arg6[%c0_15, %c0_16], %18 {strides = array<i32>} : memref<32x128xf32, #tpu.memory_space<vmem>>, vector<32x128xf32>,
    } else {
    }
    return
  }
  func.func @transform_0(%arg0: i32, %arg1: i32, %arg2: i32) -> (i32, i32) {
    %c0_i32 = arith.constant 0 : i32
    return %arg0, %arg2 : i32, i32
  }
  func.func @transform_1(%arg0: i32, %arg1: i32, %arg2: i32) -> (i32, i32) {
    %c0_i32 = arith.constant 0 : i32
    return %arg2, %arg1 : i32, i32
  }
  func.func @transform_2(%arg0: i32, %arg1: i32, %arg2: i32) -> (i32, i32) {
    %c0_i32 = arith.constant 0 : i32
    %c0_i32_0 = arith.constant 0 : i32
    return %c0_i32, %arg1 : i32, i32
  }
  func.func @transform_3(%arg0: i32, %arg1: i32, %arg2: i32) -> (i32, i32) {
    %c0_i32 = arith.constant 0 : i32
    return %arg0, %arg1 : i32, i32
  }
}

module attributes {stable_mosaic.version = 11 : i64} {
  func.func @_matmul_kernel(%arg0: i32, %arg1: i32, %arg2: i32, %arg3: memref<32x128xf32, #tpu.memory_space<vmem>>, %arg4: memref<128x128xbf16, #tpu.memory_space<vmem>>, %arg5: memref<1x128xf32, #tpu.memory_space<vmem>>, %arg6: memref<32x128xf32, #tpu.memory_space<vmem>>, %arg7: memref<32x128xf32, #tpu.memory_space<vmem>>) attributes {dimension_semantics = [#tpu.dimension_semantics<parallel>, #tpu.dimension_semantics<parallel>, #tpu.dimension_semantics<arbitrary>], iteration_bounds = array<i64: 1, 1, 1>, scalar_prefetch = 0 : i64, scratch_operands = 1 : i64, tpu.core_type = #tpu.core_type<tc>, window_params = [{transform_indices = @transform_0, window_bounds = array<i64: 32, 128>}, {transform_indices = @transform_1, window_bounds = array<i64: 128, 128>}, {transform_indices = @transform_2, window_bounds = array<i64: 1, 128>}, {transform_indices = @transform_3, window_bounds = array<i64: 32, 128>}]} {
    %c0 = arith.constant 0 : index
    %c0_0 = arith.constant 0 : index
    %0 = vector.load %arg3[%c0, %c0_0] : memref<32x128xf32, #tpu.memory_space<vmem>>, vector<32x128xf32>
    %c0_i32 = arith.constant 0 : i32
    %1 = arith.cmpi eq, %arg2, %c0_i32 : i32
    %2 = arith.extui %1 : i1 to i32
    %c0_i32_1 = arith.constant 0 : i32
    %3 = arith.cmpi ne, %2, %c0_i32_1 : i32
    scf.if %3 {
      %cst_10 = arith.constant 0.000000e+00 : f32
      %13 = vector.broadcast %cst_10 : f32 to vector<32x128xf32>
      %c0_11 = arith.constant 0 : index
      %c0_12 = arith.constant 0 : index
      %14 = vector.load %arg7[%c0_11, %c0_12] : memref<32x128xf32, #tpu.memory_space<vmem>>, vector<32x128xf32>
      tpu.vector_store %arg7[%c0_11, %c0_12], %13 {strides = array<i32>} : memref<32x128xf32, #tpu.memory_space<vmem>>, vector<32x128xf32>,
    } else {
    }
    %c0_2 = arith.constant 0 : index
    %c0_3 = arith.constant 0 : index
    %4 = vector.load %arg7[%c0_2, %c0_3] : memref<32x128xf32, #tpu.memory_space<vmem>>, vector<32x128xf32>
    %5 = arith.truncf %0 : vector<32x128xf32> to vector<32x128xbf16>
    %c0_4 = arith.constant 0 : index
    %c0_5 = arith.constant 0 : index
    %6 = vector.load %arg4[%c0_4, %c0_5] : memref<128x128xbf16, #tpu.memory_space<vmem>>, vector<128x128xbf16>
    %cst = arith.constant dense<0.000000e+00> : vector<32x128xf32>
    %7 = tpu.matmul %5, %6, %cst {dimension_numbers = #tpu.dot_dimension_numbers<[1], [0], [0], [1], [0, 0, 1, 1], [], []>} : vector<32x128xbf16>, vector<128x128xbf16>, vector<32x128xf32> -> vector<32x128xf32>
    %8 = arith.addf %4, %7 : vector<32x128xf32>
    %c0_6 = arith.constant 0 : index
    %c0_7 = arith.constant 0 : index
    %9 = vector.load %arg7[%c0_6, %c0_7] : memref<32x128xf32, #tpu.memory_space<vmem>>, vector<32x128xf32>
    tpu.vector_store %arg7[%c0_6, %c0_7], %8 {strides = array<i32>} : memref<32x128xf32, #tpu.memory_space<vmem>>, vector<32x128xf32>,
    %c0_i32_8 = arith.constant 0 : i32
    %10 = arith.cmpi eq, %arg2, %c0_i32_8 : i32
    %11 = arith.extui %10 : i1 to i32
    %c0_i32_9 = arith.constant 0 : i32
    %12 = arith.cmpi ne, %11, %c0_i32_9 : i32
    scf.if %12 {
      %c0_10 = arith.constant 0 : index
      %c0_11 = arith.constant 0 : index
      %13 = vector.load %arg7[%c0_10, %c0_11] : memref<32x128xf32, #tpu.memory_space<vmem>>, vector<32x128xf32>
      %c0_12 = arith.constant 0 : index
      %c0_13 = arith.constant 0 : index
      %14 = vector.load %arg5[%c0_12, %c0_13] : memref<1x128xf32, #tpu.memory_space<vmem>>, vector<1x128xf32>
      %15 = vector.broadcast %14 : vector<1x128xf32> to vector<32x128xf32>
      %16 = arith.addf %13, %15 : vector<32x128xf32>
      %c0_14 = arith.constant 0 : index
      %c0_15 = arith.constant 0 : index
      %17 = vector.load %arg6[%c0_14, %c0_15] : memref<32x128xf32, #tpu.memory_space<vmem>>, vector<32x128xf32>
      tpu.vector_store %arg6[%c0_14, %c0_15], %16 {strides = array<i32>} : memref<32x128xf32, #tpu.memory_space<vmem>>, vector<32x128xf32>,
    } else {
    }
    return
  }
  func.func @transform_0(%arg0: i32, %arg1: i32, %arg2: i32) -> (i32, i32) {
    %c0_i32 = arith.constant 0 : i32
    return %arg0, %arg2 : i32, i32
  }
  func.func @transform_1(%arg0: i32, %arg1: i32, %arg2: i32) -> (i32, i32) {
    %c0_i32 = arith.constant 0 : i32
    return %arg2, %arg1 : i32, i32
  }
  func.func @transform_2(%arg0: i32, %arg1: i32, %arg2: i32) -> (i32, i32) {
    %c0_i32 = arith.constant 0 : i32
    %c0_i32_0 = arith.constant 0 : i32
    return %c0_i32, %arg1 : i32, i32
  }
  func.func @transform_3(%arg0: i32, %arg1: i32, %arg2: i32) -> (i32, i32) {
    %c0_i32 = arith.constant 0 : i32
    return %arg0, %arg1 : i32, i32
  }
}

module attributes {stable_mosaic.version = 11 : i64} {
  func.func @_matmul_kernel(%arg0: i32, %arg1: i32, %arg2: i32, %arg3: memref<32x128xf32, #tpu.memory_space<vmem>>, %arg4: memref<32x128xf32, #tpu.memory_space<vmem>>, %arg5: memref<128x128xbf16, #tpu.memory_space<vmem>>, %arg6: memref<1x128xf32, #tpu.memory_space<vmem>>, %arg7: memref<32x128xf32, #tpu.memory_space<vmem>>, %arg8: memref<32x128xf32, #tpu.memory_space<vmem>>) attributes {dimension_semantics = [#tpu.dimension_semantics<parallel>, #tpu.dimension_semantics<parallel>, #tpu.dimension_semantics<arbitrary>], iteration_bounds = array<i64: 1, 1, 1>, scalar_prefetch = 0 : i64, scratch_operands = 1 : i64, tpu.core_type = #tpu.core_type<tc>, window_params = [{transform_indices = @transform_0, window_bounds = array<i64: 32, 128>}, {transform_indices = @transform_1, window_bounds = array<i64: 32, 128>}, {transform_indices = @transform_2, window_bounds = array<i64: 128, 128>}, {transform_indices = @transform_3, window_bounds = array<i64: 1, 128>}, {transform_indices = @transform_4, window_bounds = array<i64: 32, 128>}]} {
    %c0 = arith.constant 0 : index
    %c0_0 = arith.constant 0 : index
    %0 = vector.load %arg3[%c0, %c0_0] : memref<32x128xf32, #tpu.memory_space<vmem>>, vector<32x128xf32>
    %c0_1 = arith.constant 0 : index
    %c0_2 = arith.constant 0 : index
    %1 = vector.load %arg4[%c0_1, %c0_2] : memref<32x128xf32, #tpu.memory_space<vmem>>, vector<32x128xf32>
    %2 = arith.addf %0, %1 : vector<32x128xf32>
    %c0_i32 = arith.constant 0 : i32
    %3 = arith.cmpi eq, %arg2, %c0_i32 : i32
    %4 = arith.extui %3 : i1 to i32
    %c0_i32_3 = arith.constant 0 : i32
    %5 = arith.cmpi ne, %4, %c0_i32_3 : i32
    scf.if %5 {
      %cst_12 = arith.constant 0.000000e+00 : f32
      %15 = vector.broadcast %cst_12 : f32 to vector<32x128xf32>
      %c0_13 = arith.constant 0 : index
      %c0_14 = arith.constant 0 : index
      %16 = vector.load %arg8[%c0_13, %c0_14] : memref<32x128xf32, #tpu.memory_space<vmem>>, vector<32x128xf32>
      tpu.vector_store %arg8[%c0_13, %c0_14], %15 {strides = array<i32>} : memref<32x128xf32, #tpu.memory_space<vmem>>, vector<32x128xf32>,
    } else {
    }
    %c0_4 = arith.constant 0 : index
    %c0_5 = arith.constant 0 : index
    %6 = vector.load %arg8[%c0_4, %c0_5] : memref<32x128xf32, #tpu.memory_space<vmem>>, vector<32x128xf32>
    %7 = arith.truncf %2 : vector<32x128xf32> to vector<32x128xbf16>
    %c0_6 = arith.constant 0 : index
    %c0_7 = arith.constant 0 : index
    %8 = vector.load %arg5[%c0_6, %c0_7] : memref<128x128xbf16, #tpu.memory_space<vmem>>, vector<128x128xbf16>
    %cst = arith.constant dense<0.000000e+00> : vector<32x128xf32>
    %9 = tpu.matmul %7, %8, %cst {dimension_numbers = #tpu.dot_dimension_numbers<[1], [0], [0], [1], [0, 0, 1, 1], [], []>} : vector<32x128xbf16>, vector<128x128xbf16>, vector<32x128xf32> -> vector<32x128xf32>
    %10 = arith.addf %6, %9 : vector<32x128xf32>
    %c0_8 = arith.constant 0 : index
    %c0_9 = arith.constant 0 : index
    %11 = vector.load %arg8[%c0_8, %c0_9] : memref<32x128xf32, #tpu.memory_space<vmem>>, vector<32x128xf32>
    tpu.vector_store %arg8[%c0_8, %c0_9], %10 {strides = array<i32>} : memref<32x128xf32, #tpu.memory_space<vmem>>, vector<32x128xf32>,
    %c0_i32_10 = arith.constant 0 : i32
    %12 = arith.cmpi eq, %arg2, %c0_i32_10 : i32
    %13 = arith.extui %12 : i1 to i32
    %c0_i32_11 = arith.constant 0 : i32
    %14 = arith.cmpi ne, %13, %c0_i32_11 : i32
    scf.if %14 {
      %c0_12 = arith.constant 0 : index
      %c0_13 = arith.constant 0 : index
      %15 = vector.load %arg8[%c0_12, %c0_13] : memref<32x128xf32, #tpu.memory_space<vmem>>, vector<32x128xf32>
      %c0_14 = arith.constant 0 : index
      %c0_15 = arith.constant 0 : index
      %16 = vector.load %arg6[%c0_14, %c0_15] : memref<1x128xf32, #tpu.memory_space<vmem>>, vector<1x128xf32>
      %17 = vector.broadcast %16 : vector<1x128xf32> to vector<32x128xf32>
      %18 = arith.addf %15, %17 : vector<32x128xf32>
      %c0_16 = arith.constant 0 : index
      %c0_17 = arith.constant 0 : index
      %19 = vector.load %arg7[%c0_16, %c0_17] : memref<32x128xf32, #tpu.memory_space<vmem>>, vector<32x128xf32>
      tpu.vector_store %arg7[%c0_16, %c0_17], %18 {strides = array<i32>} : memref<32x128xf32, #tpu.memory_space<vmem>>, vector<32x128xf32>,
    } else {
    }
    return
  }
  func.func @transform_0(%arg0: i32, %arg1: i32, %arg2: i32) -> (i32, i32) {
    %c0_i32 = arith.constant 0 : i32
    return %arg0, %arg2 : i32, i32
  }
  func.func @transform_1(%arg0: i32, %arg1: i32, %arg2: i32) -> (i32, i32) {
    %c0_i32 = arith.constant 0 : i32
    return %arg0, %arg2 : i32, i32
  }
  func.func @transform_2(%arg0: i32, %arg1: i32, %arg2: i32) -> (i32, i32) {
    %c0_i32 = arith.constant 0 : i32
    return %arg2, %arg1 : i32, i32
  }
  func.func @transform_3(%arg0: i32, %arg1: i32, %arg2: i32) -> (i32, i32) {
    %c0_i32 = arith.constant 0 : i32
    %c0_i32_0 = arith.constant 0 : i32
    return %c0_i32, %arg1 : i32, i32
  }
  func.func @transform_4(%arg0: i32, %arg1: i32, %arg2: i32) -> (i32, i32) {
    %c0_i32 = arith.constant 0 : i32
    return %arg0, %arg1 : i32, i32
  }
}

module attributes {stable_mosaic.version = 11 : i64} {
  func.func @_attn_kernel(%arg0: i32, %arg1: memref<1x16x32xf32, #tpu.memory_space<vmem>>, %arg2: memref<1x16x32xf32, #tpu.memory_space<vmem>>, %arg3: memref<1x16x32xf32, #tpu.memory_space<vmem>>, %arg4: memref<1x16x32xf32, #tpu.memory_space<vmem>>) attributes {dimension_semantics = [#tpu.dimension_semantics<parallel>], iteration_bounds = array<i64: 2>, scalar_prefetch = 0 : i64, scratch_operands = 0 : i64, tpu.core_type = #tpu.core_type<tc>, window_params = [{transform_indices = @transform_0, window_bounds = array<i64: 1, 16, 32>}, {transform_indices = @transform_1, window_bounds = array<i64: 1, 16, 32>}, {transform_indices = @transform_2, window_bounds = array<i64: 1, 16, 32>}, {transform_indices = @transform_3, window_bounds = array<i64: 1, 16, 32>}]} {
    %c0 = arith.constant 0 : index
    %c0_0 = arith.constant 0 : index
    %c0_1 = arith.constant 0 : index
    %0 = vector.load %arg1[%c0, %c0_0, %c0_1] : memref<1x16x32xf32, #tpu.memory_space<vmem>>, vector<1x16x32xf32>
    %1 = vector.shape_cast %0 : vector<1x16x32xf32> to vector<16x32xf32>
    %c0_2 = arith.constant 0 : index
    %c0_3 = arith.constant 0 : index
    %c0_4 = arith.constant 0 : index
    %2 = vector.load %arg2[%c0_2, %c0_3, %c0_4] : memref<1x16x32xf32, #tpu.memory_space<vmem>>, vector<1x16x32xf32>
    %3 = vector.shape_cast %2 : vector<1x16x32xf32> to vector<16x32xf32>
    %c0_5 = arith.constant 0 : index
    %c0_6 = arith.constant 0 : index
    %c0_7 = arith.constant 0 : index
    %4 = vector.load %arg3[%c0_5, %c0_6, %c0_7] : memref<1x16x32xf32, #tpu.memory_space<vmem>>, vector<1x16x32xf32>
    %5 = vector.shape_cast %4 : vector<1x16x32xf32> to vector<16x32xf32>
    %6 = vector.extract_strided_slice %1 {offsets = [0, 0], sizes = [16, 8], strides = [1, 1]} : vector<16x32xf32> to vector<16x8xf32>
    %7 = arith.truncf %6 : vector<16x8xf32> to vector<16x8xbf16>
    %8 = vector.extract_strided_slice %3 {offsets = [0, 0], sizes = [16, 8], strides = [1, 1]} : vector<16x32xf32> to vector<16x8xf32>
    %9 = arith.truncf %8 : vector<16x8xf32> to vector<16x8xbf16>
    %10 = vector.extract_strided_slice %5 {offsets = [0, 0], sizes = [16, 8], strides = [1, 1]} : vector<16x32xf32> to vector<16x8xf32>
    %11 = arith.truncf %10 : vector<16x8xf32> to vector<16x8xbf16>
    %cst = arith.constant dense<0.000000e+00> : vector<16x16xf32>
    %12 = tpu.matmul %7, %9, %cst {dimension_numbers = #tpu.dot_dimension_numbers<[1], [1], [0], [0], [0, 0, 1, 0], [], []>} : vector<16x8xbf16>, vector<16x8xbf16>, vector<16x16xf32> -> vector<16x16xf32>
    %cst_8 = arith.constant 0.353553385 : f32
    %13 = vector.broadcast %cst_8 : f32 to vector<16x16xf32>
    %14 = arith.mulf %12, %13 : vector<16x16xf32>
    %cst_9 = arith.constant dense<0xFF800000> : vector<16xf32>
    %15 = vector.multi_reduction <maximumf>, %14, %cst_9 [1] : vector<16x16xf32> to vector<16xf32>
    %16 = vector.shape_cast %15 : vector<16xf32> to vector<16x1xf32>
    %17 = vector.broadcast %16 : vector<16x1xf32> to vector<16x16xf32>
    %18 = arith.subf %14, %17 : vector<16x16xf32>
    %19 = math.exp %18 : vector<16x16xf32>
    %cst_10 = arith.constant dense<0.000000e+00> : vector<16xf32>
    %20 = vector.multi_reduction <add>, %19, %cst_10 [1] : vector<16x16xf32> to vector<16xf32>
    %21 = vector.shape_cast %20 : vector<16xf32> to vector<16x1xf32>
    %22 = tpu.reciprocal %21 {approx = true} : vector<16x1xf32> -> vector<16x1xf32>
    %23 = vector.broadcast %22 : vector<16x1xf32> to vector<16x16xf32>
    %24 = arith.mulf %19, %23 : vector<16x16xf32>
    %25 = arith.truncf %24 : vector<16x16xf32> to vector<16x16xbf16>
    %cst_11 = arith.constant dense<0.000000e+00> : vector<16x8xf32>
    %26 = tpu.matmul %25, %11, %cst_11 {dimension_numbers = #tpu.dot_dimension_numbers<[1], [0], [0], [1], [0, 0, 1, 1], [], []>} : vector<16x16xbf16>, vector<16x8xbf16>, vector<16x8xf32> -> vector<16x8xf32>
    %27 = vector.extract_strided_slice %1 {offsets = [0, 8], sizes = [16, 8], strides = [1, 1]} : vector<16x32xf32> to vector<16x8xf32>
    %28 = arith.truncf %27 : vector<16x8xf32> to vector<16x8xbf16>
    %29 = vector.extract_strided_slice %3 {offsets = [0, 8], sizes = [16, 8], strides = [1, 1]} : vector<16x32xf32> to vector<16x8xf32>
    %30 = arith.truncf %29 : vector<16x8xf32> to vector<16x8xbf16>
    %31 = vector.extract_strided_slice %5 {offsets = [0, 8], sizes = [16, 8], strides = [1, 1]} : vector<16x32xf32> to vector<16x8xf32>
    %32 = arith.truncf %31 : vector<16x8xf32> to vector<16x8xbf16>
    %cst_12 = arith.constant dense<0.000000e+00> : vector<16x16xf32>
    %33 = tpu.matmul %28, %30, %cst_12 {dimension_numbers = #tpu.dot_dimension_numbers<[1], [1], [0], [0], [0, 0, 1, 0], [], []>} : vector<16x8xbf16>, vector<16x8xbf16>, vector<16x16xf32> -> vector<16x16xf32>
    %cst_13 = arith.constant 0.353553385 : f32
    %34 = vector.broadcast %cst_13 : f32 to vector<16x16xf32>
    %35 = arith.mulf %33, %34 : vector<16x16xf32>
    %cst_14 = arith.constant dense<0xFF800000> : vector<16xf32>
    %36 = vector.multi_reduction <maximumf>, %35, %cst_14 [1] : vector<16x16xf32> to vector<16xf32>
    %37 = vector.shape_cast %36 : vector<16xf32> to vector<16x1xf32>
    %38 = vector.broadcast %37 : vector<16x1xf32> to vector<16x16xf32>
    %39 = arith.subf %35, %38 : vector<16x16xf32>
    %40 = math.exp %39 : vector<16x16xf32>
    %cst_15 = arith.constant dense<0.000000e+00> : vector<16xf32>
    %41 = vector.multi_reduction <add>, %40, %cst_15 [1] : vector<16x16xf32> to vector<16xf32>
    %42 = vector.shape_cast %41 : vector<16xf32> to vector<16x1xf32>
    %43 = tpu.reciprocal %42 {approx = true} : vector<16x1xf32> -> vector<16x1xf32>
    %44 = vector.broadcast %43 : vector<16x1xf32> to vector<16x16xf32>
    %45 = arith.mulf %40, %44 : vector<16x16xf32>
    %46 = arith.truncf %45 : vector<16x16xf32> to vector<16x16xbf16>
    %cst_16 = arith.constant dense<0.000000e+00> : vector<16x8xf32>
    %47 = tpu.matmul %46, %32, %cst_16 {dimension_numbers = #tpu.dot_dimension_numbers<[1], [0], [0], [1], [0, 0, 1, 1], [], []>} : vector<16x16xbf16>, vector<16x8xbf16>, vector<16x8xf32> -> vector<16x8xf32>
    %48 = vector.extract_strided_slice %1 {offsets = [0, 16], sizes = [16, 8], strides = [1, 1]} : vector<16x32xf32> to vector<16x8xf32>
    %49 = arith.truncf %48 : vector<16x8xf32> to vector<16x8xbf16>
    %50 = vector.extract_strided_slice %3 {offsets = [0, 16], sizes = [16, 8], strides = [1, 1]} : vector<16x32xf32> to vector<16x8xf32>
    %51 = arith.truncf %50 : vector<16x8xf32> to vector<16x8xbf16>
    %52 = vector.extract_strided_slice %5 {offsets = [0, 16], sizes = [16, 8], strides = [1, 1]} : vector<16x32xf32> to vector<16x8xf32>
    %53 = arith.truncf %52 : vector<16x8xf32> to vector<16x8xbf16>
    %cst_17 = arith.constant dense<0.000000e+00> : vector<16x16xf32>
    %54 = tpu.matmul %49, %51, %cst_17 {dimension_numbers = #tpu.dot_dimension_numbers<[1], [1], [0], [0], [0, 0, 1, 0], [], []>} : vector<16x8xbf16>, vector<16x8xbf16>, vector<16x16xf32> -> vector<16x16xf32>
    %cst_18 = arith.constant 0.353553385 : f32
    %55 = vector.broadcast %cst_18 : f32 to vector<16x16xf32>
    %56 = arith.mulf %54, %55 : vector<16x16xf32>
    %cst_19 = arith.constant dense<0xFF800000> : vector<16xf32>
    %57 = vector.multi_reduction <maximumf>, %56, %cst_19 [1] : vector<16x16xf32> to vector<16xf32>
    %58 = vector.shape_cast %57 : vector<16xf32> to vector<16x1xf32>
    %59 = vector.broadcast %58 : vector<16x1xf32> to vector<16x16xf32>
    %60 = arith.subf %56, %59 : vector<16x16xf32>
    %61 = math.exp %60 : vector<16x16xf32>
    %cst_20 = arith.constant dense<0.000000e+00> : vector<16xf32>
    %62 = vector.multi_reduction <add>, %61, %cst_20 [1] : vector<16x16xf32> to vector<16xf32>
    %63 = vector.shape_cast %62 : vector<16xf32> to vector<16x1xf32>
    %64 = tpu.reciprocal %63 {approx = true} : vector<16x1xf32> -> vector<16x1xf32>
    %65 = vector.broadcast %64 : vector<16x1xf32> to vector<16x16xf32>
    %66 = arith.mulf %61, %65 : vector<16x16xf32>
    %67 = arith.truncf %66 : vector<16x16xf32> to vector<16x16xbf16>
    %cst_21 = arith.constant dense<0.000000e+00> : vector<16x8xf32>
    %68 = tpu.matmul %67, %53, %cst_21 {dimension_numbers = #tpu.dot_dimension_numbers<[1], [0], [0], [1], [0, 0, 1, 1], [], []>} : vector<16x16xbf16>, vector<16x8xbf16>, vector<16x8xf32> -> vector<16x8xf32>
    %69 = vector.extract_strided_slice %1 {offsets = [0, 24], sizes = [16, 8], strides = [1, 1]} : vector<16x32xf32> to vector<16x8xf32>
    %70 = arith.truncf %69 : vector<16x8xf32> to vector<16x8xbf16>
    %71 = vector.extract_strided_slice %3 {offsets = [0, 24], sizes = [16, 8], strides = [1, 1]} : vector<16x32xf32> to vector<16x8xf32>
    %72 = arith.truncf %71 : vector<16x8xf32> to vector<16x8xbf16>
    %73 = vector.extract_strided_slice %5 {offsets = [0, 24], sizes = [16, 8], strides = [1, 1]} : vector<16x32xf32> to vector<16x8xf32>
    %74 = arith.truncf %73 : vector<16x8xf32> to vector<16x8xbf16>
    %cst_22 = arith.constant dense<0.000000e+00> : vector<16x16xf32>
    %75 = tpu.matmul %70, %72, %cst_22 {dimension_numbers = #tpu.dot_dimension_numbers<[1], [1], [0], [0], [0, 0, 1, 0], [], []>} : vector<16x8xbf16>, vector<16x8xbf16>, vector<16x16xf32> -> vector<16x16xf32>
    %cst_23 = arith.constant 0.353553385 : f32
    %76 = vector.broadcast %cst_23 : f32 to vector<16x16xf32>
    %77 = arith.mulf %75, %76 : vector<16x16xf32>
    %cst_24 = arith.constant dense<0xFF800000> : vector<16xf32>
    %78 = vector.multi_reduction <maximumf>, %77, %cst_24 [1] : vector<16x16xf32> to vector<16xf32>
    %79 = vector.shape_cast %78 : vector<16xf32> to vector<16x1xf32>
    %80 = vector.broadcast %79 : vector<16x1xf32> to vector<16x16xf32>
    %81 = arith.subf %77, %80 : vector<16x16xf32>
    %82 = math.exp %81 : vector<16x16xf32>
    %cst_25 = arith.constant dense<0.000000e+00> : vector<16xf32>
    %83 = vector.multi_reduction <add>, %82, %cst_25 [1] : vector<16x16xf32> to vector<16xf32>
    %84 = vector.shape_cast %83 : vector<16xf32> to vector<16x1xf32>
    %85 = tpu.reciprocal %84 {approx = true} : vector<16x1xf32> -> vector<16x1xf32>
    %86 = vector.broadcast %85 : vector<16x1xf32> to vector<16x16xf32>
    %87 = arith.mulf %82, %86 : vector<16x16xf32>
    %88 = arith.truncf %87 : vector<16x16xf32> to vector<16x16xbf16>
    %cst_26 = arith.constant dense<0.000000e+00> : vector<16x8xf32>
    %89 = tpu.matmul %88, %74, %cst_26 {dimension_numbers = #tpu.dot_dimension_numbers<[1], [0], [0], [1], [0, 0, 1, 1], [], []>} : vector<16x16xbf16>, vector<16x8xbf16>, vector<16x8xf32> -> vector<16x8xf32>
    %90 = tpu.concatenate %26, %47, %68, %89 in 1 : vector<16x8xf32>, vector<16x8xf32>, vector<16x8xf32>, vector<16x8xf32> -> vector<16x32xf32>
    %c0_27 = arith.constant 0 : index
    %c0_28 = arith.constant 0 : index
    %c0_29 = arith.constant 0 : index
    %91 = vector.load %arg4[%c0_27, %c0_28, %c0_29] : memref<1x16x32xf32, #tpu.memory_space<vmem>>, vector<1x16x32xf32>
    %92 = vector.shape_cast %91 : vector<1x16x32xf32> to vector<16x32xf32>
    %93 = vector.shape_cast %90 : vector<16x32xf32> to vector<1x16x32xf32>
    tpu.vector_store %arg4[%c0_27, %c0_28, %c0_29], %93 {strides = array<i32>} : memref<1x16x32xf32, #tpu.memory_space<vmem>>, vector<1x16x32xf32>,
    return
  }
  func.func @transform_0(%arg0: i32) -> (i32, i32, i32) {
    %c0_i32 = arith.constant 0 : i32
    %c0_i32_0 = arith.constant 0 : i32
    %c0_i32_1 = arith.constant 0 : i32
    return %arg0, %c0_i32, %c0_i32_0 : i32, i32, i32
  }
  func.func @transform_1(%arg0: i32) -> (i32, i32, i32) {
    %c0_i32 = arith.constant 0 : i32
    %c0_i32_0 = arith.constant 0 : i32
    %c0_i32_1 = arith.constant 0 : i32
    return %arg0, %c0_i32, %c0_i32_0 : i32, i32, i32
  }
  func.func @transform_2(%arg0: i32) -> (i32, i32, i32) {
    %c0_i32 = arith.constant 0 : i32
    %c0_i32_0 = arith.constant 0 : i32
    %c0_i32_1 = arith.constant 0 : i32
    return %arg0, %c0_i32, %c0_i32_0 : i32, i32, i32
  }
  func.func @transform_3(%arg0: i32) -> (i32, i32, i32) {
    %c0_i32 = arith.constant 0 : i32
    %c0_i32_0 = arith.constant 0 : i32
    %c0_i32_1 = arith.constant 0 : i32
    return %arg0, %c0_i32, %c0_i32_0 : i32, i32, i32
  }
}

module attributes {stable_mosaic.version = 11 : i64} {
  func.func @_ln_kernel(%arg0: i32, %arg1: memref<32x32xf32, #tpu.memory_space<vmem>>, %arg2: memref<32x32xf32, #tpu.memory_space<vmem>>, %arg3: memref<1x32xf32, #tpu.memory_space<vmem>>, %arg4: memref<1x32xf32, #tpu.memory_space<vmem>>, %arg5: memref<32x32xf32, #tpu.memory_space<vmem>>) attributes {dimension_semantics = [#tpu.dimension_semantics<parallel>], iteration_bounds = array<i64: 1>, scalar_prefetch = 0 : i64, scratch_operands = 0 : i64, tpu.core_type = #tpu.core_type<tc>, window_params = [{transform_indices = @transform_0, window_bounds = array<i64: 32, 32>}, {transform_indices = @transform_1, window_bounds = array<i64: 32, 32>}, {pipeline_mode = #tpu.pipeline_mode<synchronous>, transform_indices = @transform_2, window_bounds = array<i64: 1, 32>}, {pipeline_mode = #tpu.pipeline_mode<synchronous>, transform_indices = @transform_3, window_bounds = array<i64: 1, 32>}, {transform_indices = @transform_4, window_bounds = array<i64: 32, 32>}]} {
    %c0 = arith.constant 0 : index
    %c0_0 = arith.constant 0 : index
    %0 = vector.load %arg1[%c0, %c0_0] : memref<32x32xf32, #tpu.memory_space<vmem>>, vector<32x32xf32>
    %c0_1 = arith.constant 0 : index
    %c0_2 = arith.constant 0 : index
    %1 = vector.load %arg2[%c0_1, %c0_2] : memref<32x32xf32, #tpu.memory_space<vmem>>, vector<32x32xf32>
    %2 = arith.addf %0, %1 : vector<32x32xf32>
    %cst = arith.constant dense<0.000000e+00> : vector<32xf32>
    %3 = vector.multi_reduction <add>, %2, %cst [1] : vector<32x32xf32> to vector<32xf32>
    %4 = vector.shape_cast %3 : vector<32xf32> to vector<32x1xf32>
    %cst_3 = arith.constant 3.200000e+01 : f32
    %5 = vector.broadcast %cst_3 : f32 to vector<32x1xf32>
    %6 = arith.divf %4, %5 : vector<32x1xf32>
    %7 = vector.broadcast %6 : vector<32x1xf32> to vector<32x32xf32>
    %8 = arith.subf %2, %7 : vector<32x32xf32>
    %9 = arith.mulf %8, %8 : vector<32x32xf32>
    %cst_4 = arith.constant dense<0.000000e+00> : vector<32xf32>
    %10 = vector.multi_reduction <add>, %9, %cst_4 [1] : vector<32x32xf32> to vector<32xf32>
    %11 = vector.shape_cast %10 : vector<32xf32> to vector<32x1xf32>
    %cst_5 = arith.constant 3.200000e+01 : f32
    %12 = vector.broadcast %cst_5 : f32 to vector<32x1xf32>
    %13 = arith.divf %11, %12 : vector<32x1xf32>
    %14 = vector.broadcast %6 : vector<32x1xf32> to vector<32x32xf32>
    %15 = arith.subf %2, %14 : vector<32x32xf32>
    %cst_6 = arith.constant 9.99999974E-6 : f32
    %16 = vector.broadcast %cst_6 : f32 to vector<32x1xf32>
    %17 = arith.addf %13, %16 : vector<32x1xf32>
    %18 = math.rsqrt %17 : vector<32x1xf32>
    %19 = vector.broadcast %18 : vector<32x1xf32> to vector<32x32xf32>
    %20 = arith.mulf %15, %19 : vector<32x32xf32>
    %c0_7 = arith.constant 0 : index
    %c0_8 = arith.constant 0 : index
    %21 = vector.load %arg3[%c0_7, %c0_8] : memref<1x32xf32, #tpu.memory_space<vmem>>, vector<1x32xf32>
    %22 = vector.broadcast %21 : vector<1x32xf32> to vector<32x32xf32>
    %23 = arith.mulf %20, %22 : vector<32x32xf32>
    %c0_9 = arith.constant 0 : index
    %c0_10 = arith.constant 0 : index
    %24 = vector.load %arg4[%c0_9, %c0_10] : memref<1x32xf32, #tpu.memory_space<vmem>>, vector<1x32xf32>
    %25 = vector.broadcast %24 : vector<1x32xf32> to vector<32x32xf32>
    %26 = arith.addf %23, %25 : vector<32x32xf32>
    %c0_11 = arith.constant 0 : index
    %c0_12 = arith.constant 0 : index
    %27 = vector.load %arg5[%c0_11, %c0_12] : memref<32x32xf32, #tpu.memory_space<vmem>>, vector<32x32xf32>
    tpu.vector_store %arg5[%c0_11, %c0_12], %26 {strides = array<i32>} : memref<32x32xf32, #tpu.memory_space<vmem>>, vector<32x32xf32>,
    return
  }
  func.func @transform_0(%arg0: i32) -> (i32, i32) {
    %c0_i32 = arith.constant 0 : i32
    %c0_i32_0 = arith.constant 0 : i32
    return %arg0, %c0_i32 : i32, i32
  }
  func.func @transform_1(%arg0: i32) -> (i32, i32) {
    %c0_i32 = arith.constant 0 : i32
    %c0_i32_0 = arith.constant 0 : i32
    return %arg0, %c0_i32 : i32, i32
  }
  func.func @transform_2(%arg0: i32) -> (i32, i32) {
    %c0_i32 = arith.constant 0 : i32
    %c0_i32_0 = arith.constant 0 : i32
    %c0_i32_1 = arith.constant 0 : i32
    return %c0_i32, %c0_i32_0 : i32, i32
  }
  func.func @transform_3(%arg0: i32) -> (i32, i32) {
    %c0_i32 = arith.constant 0 : i32
    %c0_i32_0 = arith.constant 0 : i32
    %c0_i32_1 = arith.constant 0 : i32
    return %c0_i32, %c0_i32_0 : i32, i32
  }
  func.func @transform_4(%arg0: i32) -> (i32, i32) {
    %c0_i32 = arith.constant 0 : i32
    %c0_i32_0 = arith.constant 0 : i32
    return %arg0, %c0_i32 : i32, i32
  }
}

module attributes {stable_mosaic.version = 11 : i64} {
  func.func @_matmul_kernel(%arg0: i32, %arg1: i32, %arg2: i32, %arg3: memref<16x128xf32, #tpu.memory_space<vmem>>, %arg4: memref<16x128xf32, #tpu.memory_space<vmem>>, %arg5: memref<128x128xbf16, #tpu.memory_space<vmem>>, %arg6: memref<1x128xf32, #tpu.memory_space<vmem>>, %arg7: memref<16x128xf32, #tpu.memory_space<vmem>>, %arg8: memref<16x128xf32, #tpu.memory_space<vmem>>) attributes {dimension_semantics = [#tpu.dimension_semantics<parallel>, #tpu.dimension_semantics<parallel>, #tpu.dimension_semantics<arbitrary>], iteration_bounds = array<i64: 1, 1, 1>, scalar_prefetch = 0 : i64, scratch_operands = 1 : i64, tpu.core_type = #tpu.core_type<tc>, window_params = [{transform_indices = @transform_0, window_bounds = array<i64: 16, 128>}, {transform_indices = @transform_1, window_bounds = array<i64: 16, 128>}, {transform_indices = @transform_2, window_bounds = array<i64: 128, 128>}, {transform_indices = @transform_3, window_bounds = array<i64: 1, 128>}, {transform_indices = @transform_4, window_bounds = array<i64: 16, 128>}]} {
    %c0 = arith.constant 0 : index
    %c0_0 = arith.constant 0 : index
    %0 = vector.load %arg3[%c0, %c0_0] : memref<16x128xf32, #tpu.memory_space<vmem>>, vector<16x128xf32>
    %c0_1 = arith.constant 0 : index
    %c0_2 = arith.constant 0 : index
    %1 = vector.load %arg4[%c0_1, %c0_2] : memref<16x128xf32, #tpu.memory_space<vmem>>, vector<16x128xf32>
    %2 = arith.addf %0, %1 : vector<16x128xf32>
    %c0_i32 = arith.constant 0 : i32
    %3 = arith.cmpi eq, %arg2, %c0_i32 : i32
    %4 = arith.extui %3 : i1 to i32
    %c0_i32_3 = arith.constant 0 : i32
    %5 = arith.cmpi ne, %4, %c0_i32_3 : i32
    scf.if %5 {
      %cst_12 = arith.constant 0.000000e+00 : f32
      %15 = vector.broadcast %cst_12 : f32 to vector<16x128xf32>
      %c0_13 = arith.constant 0 : index
      %c0_14 = arith.constant 0 : index
      %16 = vector.load %arg8[%c0_13, %c0_14] : memref<16x128xf32, #tpu.memory_space<vmem>>, vector<16x128xf32>
      tpu.vector_store %arg8[%c0_13, %c0_14], %15 {strides = array<i32>} : memref<16x128xf32, #tpu.memory_space<vmem>>, vector<16x128xf32>,
    } else {
    }
    %c0_4 = arith.constant 0 : index
    %c0_5 = arith.constant 0 : index
    %6 = vector.load %arg8[%c0_4, %c0_5] : memref<16x128xf32, #tpu.memory_space<vmem>>, vector<16x128xf32>
    %7 = arith.truncf %2 : vector<16x128xf32> to vector<16x128xbf16>
    %c0_6 = arith.constant 0 : index
    %c0_7 = arith.constant 0 : index
    %8 = vector.load %arg5[%c0_6, %c0_7] : memref<128x128xbf16, #tpu.memory_space<vmem>>, vector<128x128xbf16>
    %cst = arith.constant dense<0.000000e+00> : vector<16x128xf32>
    %9 = tpu.matmul %7, %8, %cst {dimension_numbers = #tpu.dot_dimension_numbers<[1], [0], [0], [1], [0, 0, 1, 1], [], []>} : vector<16x128xbf16>, vector<128x128xbf16>, vector<16x128xf32> -> vector<16x128xf32>
    %10 = arith.addf %6, %9 : vector<16x128xf32>
    %c0_8 = arith.constant 0 : index
    %c0_9 = arith.constant 0 : index
    %11 = vector.load %arg8[%c0_8, %c0_9] : memref<16x128xf32, #tpu.memory_space<vmem>>, vector<16x128xf32>
    tpu.vector_store %arg8[%c0_8, %c0_9], %10 {strides = array<i32>} : memref<16x128xf32, #tpu.memory_space<vmem>>, vector<16x128xf32>,
    %c0_i32_10 = arith.constant 0 : i32
    %12 = arith.cmpi eq, %arg2, %c0_i32_10 : i32
    %13 = arith.extui %12 : i1 to i32
    %c0_i32_11 = arith.constant 0 : i32
    %14 = arith.cmpi ne, %13, %c0_i32_11 : i32
    scf.if %14 {
      %c0_12 = arith.constant 0 : index
      %c0_13 = arith.constant 0 : index
      %15 = vector.load %arg8[%c0_12, %c0_13] : memref<16x128xf32, #tpu.memory_space<vmem>>, vector<16x128xf32>
      %c0_14 = arith.constant 0 : index
      %c0_15 = arith.constant 0 : index
      %16 = vector.load %arg6[%c0_14, %c0_15] : memref<1x128xf32, #tpu.memory_space<vmem>>, vector<1x128xf32>
      %17 = vector.broadcast %16 : vector<1x128xf32> to vector<16x128xf32>
      %18 = arith.addf %15, %17 : vector<16x128xf32>
      %c0_16 = arith.constant 0 : index
      %c0_17 = arith.constant 0 : index
      %19 = vector.load %arg7[%c0_16, %c0_17] : memref<16x128xf32, #tpu.memory_space<vmem>>, vector<16x128xf32>
      tpu.vector_store %arg7[%c0_16, %c0_17], %18 {strides = array<i32>} : memref<16x128xf32, #tpu.memory_space<vmem>>, vector<16x128xf32>,
    } else {
    }
    return
  }
  func.func @transform_0(%arg0: i32, %arg1: i32, %arg2: i32) -> (i32, i32) {
    %c0_i32 = arith.constant 0 : i32
    return %arg0, %arg2 : i32, i32
  }
  func.func @transform_1(%arg0: i32, %arg1: i32, %arg2: i32) -> (i32, i32) {
    %c0_i32 = arith.constant 0 : i32
    return %arg0, %arg2 : i32, i32
  }
  func.func @transform_2(%arg0: i32, %arg1: i32, %arg2: i32) -> (i32, i32) {
    %c0_i32 = arith.constant 0 : i32
    return %arg2, %arg1 : i32, i32
  }
  func.func @transform_3(%arg0: i32, %arg1: i32, %arg2: i32) -> (i32, i32) {
    %c0_i32 = arith.constant 0 : i32
    %c0_i32_0 = arith.constant 0 : i32
    return %c0_i32, %arg1 : i32, i32
  }
  func.func @transform_4(%arg0: i32, %arg1: i32, %arg2: i32) -> (i32, i32) {
    %c0_i32 = arith.constant 0 : i32
    return %arg0, %arg1 : i32, i32
  }
}

module attributes {stable_mosaic.version = 11 : i64} {
  func.func @_matmul_kernel(%arg0: i32, %arg1: i32, %arg2: i32, %arg3: memref<16x128xf32, #tpu.memory_space<vmem>>, %arg4: memref<128x128xbf16, #tpu.memory_space<vmem>>, %arg5: memref<1x128xf32, #tpu.memory_space<vmem>>, %arg6: memref<16x128xf32, #tpu.memory_space<vmem>>, %arg7: memref<16x128xf32, #tpu.memory_space<vmem>>) attributes {dimension_semantics = [#tpu.dimension_semantics<parallel>, #tpu.dimension_semantics<parallel>, #tpu.dimension_semantics<arbitrary>], iteration_bounds = array<i64: 1, 1, 1>, scalar_prefetch = 0 : i64, scratch_operands = 1 : i64, tpu.core_type = #tpu.core_type<tc>, window_params = [{transform_indices = @transform_0, window_bounds = array<i64: 16, 128>}, {transform_indices = @transform_1, window_bounds = array<i64: 128, 128>}, {transform_indices = @transform_2, window_bounds = array<i64: 1, 128>}, {transform_indices = @transform_3, window_bounds = array<i64: 16, 128>}]} {
    %c0 = arith.constant 0 : index
    %c0_0 = arith.constant 0 : index
    %0 = vector.load %arg3[%c0, %c0_0] : memref<16x128xf32, #tpu.memory_space<vmem>>, vector<16x128xf32>
    %c0_i32 = arith.constant 0 : i32
    %1 = arith.cmpi eq, %arg2, %c0_i32 : i32
    %2 = arith.extui %1 : i1 to i32
    %c0_i32_1 = arith.constant 0 : i32
    %3 = arith.cmpi ne, %2, %c0_i32_1 : i32
    scf.if %3 {
      %cst_10 = arith.constant 0.000000e+00 : f32
      %13 = vector.broadcast %cst_10 : f32 to vector<16x128xf32>
      %c0_11 = arith.constant 0 : index
      %c0_12 = arith.constant 0 : index
      %14 = vector.load %arg7[%c0_11, %c0_12] : memref<16x128xf32, #tpu.memory_space<vmem>>, vector<16x128xf32>
      tpu.vector_store %arg7[%c0_11, %c0_12], %13 {strides = array<i32>} : memref<16x128xf32, #tpu.memory_space<vmem>>, vector<16x128xf32>,
    } else {
    }
    %c0_2 = arith.constant 0 : index
    %c0_3 = arith.constant 0 : index
    %4 = vector.load %arg7[%c0_2, %c0_3] : memref<16x128xf32, #tpu.memory_space<vmem>>, vector<16x128xf32>
    %5 = arith.truncf %0 : vector<16x128xf32> to vector<16x128xbf16>
    %c0_4 = arith.constant 0 : index
    %c0_5 = arith.constant 0 : index
    %6 = vector.load %arg4[%c0_4, %c0_5] : memref<128x128xbf16, #tpu.memory_space<vmem>>, vector<128x128xbf16>
    %cst = arith.constant dense<0.000000e+00> : vector<16x128xf32>
    %7 = tpu.matmul %5, %6, %cst {dimension_numbers = #tpu.dot_dimension_numbers<[1], [0], [0], [1], [0, 0, 1, 1], [], []>} : vector<16x128xbf16>, vector<128x128xbf16>, vector<16x128xf32> -> vector<16x128xf32>
    %8 = arith.addf %4, %7 : vector<16x128xf32>
    %c0_6 = arith.constant 0 : index
    %c0_7 = arith.constant 0 : index
    %9 = vector.load %arg7[%c0_6, %c0_7] : memref<16x128xf32, #tpu.memory_space<vmem>>, vector<16x128xf32>
    tpu.vector_store %arg7[%c0_6, %c0_7], %8 {strides = array<i32>} : memref<16x128xf32, #tpu.memory_space<vmem>>, vector<16x128xf32>,
    %c0_i32_8 = arith.constant 0 : i32
    %10 = arith.cmpi eq, %arg2, %c0_i32_8 : i32
    %11 = arith.extui %10 : i1 to i32
    %c0_i32_9 = arith.constant 0 : i32
    %12 = arith.cmpi ne, %11, %c0_i32_9 : i32
    scf.if %12 {
      %c0_10 = arith.constant 0 : index
      %c0_11 = arith.constant 0 : index
      %13 = vector.load %arg7[%c0_10, %c0_11] : memref<16x128xf32, #tpu.memory_space<vmem>>, vector<16x128xf32>
      %c0_12 = arith.constant 0 : index
      %c0_13 = arith.constant 0 : index
      %14 = vector.load %arg5[%c0_12, %c0_13] : memref<1x128xf32, #tpu.memory_space<vmem>>, vector<1x128xf32>
      %15 = vector.broadcast %14 : vector<1x128xf32> to vector<16x128xf32>
      %16 = arith.addf %13, %15 : vector<16x128xf32>
      %c0_14 = arith.constant 0 : index
      %c0_15 = arith.constant 0 : index
      %17 = vector.load %arg6[%c0_14, %c0_15] : memref<16x128xf32, #tpu.memory_space<vmem>>, vector<16x128xf32>
      tpu.vector_store %arg6[%c0_14, %c0_15], %16 {strides = array<i32>} : memref<16x128xf32, #tpu.memory_space<vmem>>, vector<16x128xf32>,
    } else {
    }
    return
  }
  func.func @transform_0(%arg0: i32, %arg1: i32, %arg2: i32) -> (i32, i32) {
    %c0_i32 = arith.constant 0 : i32
    return %arg0, %arg2 : i32, i32
  }
  func.func @transform_1(%arg0: i32, %arg1: i32, %arg2: i32) -> (i32, i32) {
    %c0_i32 = arith.constant 0 : i32
    return %arg2, %arg1 : i32, i32
  }
  func.func @transform_2(%arg0: i32, %arg1: i32, %arg2: i32) -> (i32, i32) {
    %c0_i32 = arith.constant 0 : i32
    %c0_i32_0 = arith.constant 0 : i32
    return %c0_i32, %arg1 : i32, i32
  }
  func.func @transform_3(%arg0: i32, %arg1: i32, %arg2: i32) -> (i32, i32) {
    %c0_i32 = arith.constant 0 : i32
    return %arg0, %arg1 : i32, i32
  }
}

module attributes {stable_mosaic.version = 11 : i64} {
  func.func @_attn_kernel(%arg0: i32, %arg1: memref<1x8x32xf32, #tpu.memory_space<vmem>>, %arg2: memref<1x8x32xf32, #tpu.memory_space<vmem>>, %arg3: memref<1x8x32xf32, #tpu.memory_space<vmem>>, %arg4: memref<1x8x32xf32, #tpu.memory_space<vmem>>) attributes {dimension_semantics = [#tpu.dimension_semantics<parallel>], iteration_bounds = array<i64: 2>, scalar_prefetch = 0 : i64, scratch_operands = 0 : i64, tpu.core_type = #tpu.core_type<tc>, window_params = [{transform_indices = @transform_0, window_bounds = array<i64: 1, 8, 32>}, {transform_indices = @transform_1, window_bounds = array<i64: 1, 8, 32>}, {transform_indices = @transform_2, window_bounds = array<i64: 1, 8, 32>}, {transform_indices = @transform_3, window_bounds = array<i64: 1, 8, 32>}]} {
    %c0 = arith.constant 0 : index
    %c0_0 = arith.constant 0 : index
    %c0_1 = arith.constant 0 : index
    %0 = vector.load %arg1[%c0, %c0_0, %c0_1] : memref<1x8x32xf32, #tpu.memory_space<vmem>>, vector<1x8x32xf32>
    %1 = vector.shape_cast %0 : vector<1x8x32xf32> to vector<8x32xf32>
    %c0_2 = arith.constant 0 : index
    %c0_3 = arith.constant 0 : index
    %c0_4 = arith.constant 0 : index
    %2 = vector.load %arg2[%c0_2, %c0_3, %c0_4] : memref<1x8x32xf32, #tpu.memory_space<vmem>>, vector<1x8x32xf32>
    %3 = vector.shape_cast %2 : vector<1x8x32xf32> to vector<8x32xf32>
    %c0_5 = arith.constant 0 : index
    %c0_6 = arith.constant 0 : index
    %c0_7 = arith.constant 0 : index
    %4 = vector.load %arg3[%c0_5, %c0_6, %c0_7] : memref<1x8x32xf32, #tpu.memory_space<vmem>>, vector<1x8x32xf32>
    %5 = vector.shape_cast %4 : vector<1x8x32xf32> to vector<8x32xf32>
    %6 = vector.extract_strided_slice %1 {offsets = [0, 0], sizes = [8, 8], strides = [1, 1]} : vector<8x32xf32> to vector<8x8xf32>
    %7 = arith.truncf %6 : vector<8x8xf32> to vector<8x8xbf16>
    %8 = vector.extract_strided_slice %3 {offsets = [0, 0], sizes = [8, 8], strides = [1, 1]} : vector<8x32xf32> to vector<8x8xf32>
    %9 = arith.truncf %8 : vector<8x8xf32> to vector<8x8xbf16>
    %10 = vector.extract_strided_slice %5 {offsets = [0, 0], sizes = [8, 8], strides = [1, 1]} : vector<8x32xf32> to vector<8x8xf32>
    %11 = arith.truncf %10 : vector<8x8xf32> to vector<8x8xbf16>
    %cst = arith.constant dense<0.000000e+00> : vector<8x8xf32>
    %12 = tpu.matmul %7, %9, %cst {dimension_numbers = #tpu.dot_dimension_numbers<[1], [1], [0], [0], [0, 0, 1, 0], [], []>} : vector<8x8xbf16>, vector<8x8xbf16>, vector<8x8xf32> -> vector<8x8xf32>
    %cst_8 = arith.constant 0.353553385 : f32
    %13 = vector.broadcast %cst_8 : f32 to vector<8x8xf32>
    %14 = arith.mulf %12, %13 : vector<8x8xf32>
    %cst_9 = arith.constant dense<0xFF800000> : vector<8xf32>
    %15 = vector.multi_reduction <maximumf>, %14, %cst_9 [1] : vector<8x8xf32> to vector<8xf32>
    %16 = vector.shape_cast %15 : vector<8xf32> to vector<8x1xf32>
    %17 = vector.broadcast %16 : vector<8x1xf32> to vector<8x8xf32>
    %18 = arith.subf %14, %17 : vector<8x8xf32>
    %19 = math.exp %18 : vector<8x8xf32>
    %cst_10 = arith.constant dense<0.000000e+00> : vector<8xf32>
    %20 = vector.multi_reduction <add>, %19, %cst_10 [1] : vector<8x8xf32> to vector<8xf32>
    %21 = vector.shape_cast %20 : vector<8xf32> to vector<8x1xf32>
    %22 = tpu.reciprocal %21 {approx = true} : vector<8x1xf32> -> vector<8x1xf32>
    %23 = vector.broadcast %22 : vector<8x1xf32> to vector<8x8xf32>
    %24 = arith.mulf %19, %23 : vector<8x8xf32>
    %25 = arith.truncf %24 : vector<8x8xf32> to vector<8x8xbf16>
    %cst_11 = arith.constant dense<0.000000e+00> : vector<8x8xf32>
    %26 = tpu.matmul %25, %11, %cst_11 {dimension_numbers = #tpu.dot_dimension_numbers<[1], [0], [0], [1], [0, 0, 1, 1], [], []>} : vector<8x8xbf16>, vector<8x8xbf16>, vector<8x8xf32> -> vector<8x8xf32>
    %27 = vector.extract_strided_slice %1 {offsets = [0, 8], sizes = [8, 8], strides = [1, 1]} : vector<8x32xf32> to vector<8x8xf32>
    %28 = arith.truncf %27 : vector<8x8xf32> to vector<8x8xbf16>
    %29 = vector.extract_strided_slice %3 {offsets = [0, 8], sizes = [8, 8], strides = [1, 1]} : vector<8x32xf32> to vector<8x8xf32>
    %30 = arith.truncf %29 : vector<8x8xf32> to vector<8x8xbf16>
    %31 = vector.extract_strided_slice %5 {offsets = [0, 8], sizes = [8, 8], strides = [1, 1]} : vector<8x32xf32> to vector<8x8xf32>
    %32 = arith.truncf %31 : vector<8x8xf32> to vector<8x8xbf16>
    %cst_12 = arith.constant dense<0.000000e+00> : vector<8x8xf32>
    %33 = tpu.matmul %28, %30, %cst_12 {dimension_numbers = #tpu.dot_dimension_numbers<[1], [1], [0], [0], [0, 0, 1, 0], [], []>} : vector<8x8xbf16>, vector<8x8xbf16>, vector<8x8xf32> -> vector<8x8xf32>
    %cst_13 = arith.constant 0.353553385 : f32
    %34 = vector.broadcast %cst_13 : f32 to vector<8x8xf32>
    %35 = arith.mulf %33, %34 : vector<8x8xf32>
    %cst_14 = arith.constant dense<0xFF800000> : vector<8xf32>
    %36 = vector.multi_reduction <maximumf>, %35, %cst_14 [1] : vector<8x8xf32> to vector<8xf32>
    %37 = vector.shape_cast %36 : vector<8xf32> to vector<8x1xf32>
    %38 = vector.broadcast %37 : vector<8x1xf32> to vector<8x8xf32>
    %39 = arith.subf %35, %38 : vector<8x8xf32>
    %40 = math.exp %39 : vector<8x8xf32>
    %cst_15 = arith.constant dense<0.000000e+00> : vector<8xf32>
    %41 = vector.multi_reduction <add>, %40, %cst_15 [1] : vector<8x8xf32> to vector<8xf32>
    %42 = vector.shape_cast %41 : vector<8xf32> to vector<8x1xf32>
    %43 = tpu.reciprocal %42 {approx = true} : vector<8x1xf32> -> vector<8x1xf32>
    %44 = vector.broadcast %43 : vector<8x1xf32> to vector<8x8xf32>
    %45 = arith.mulf %40, %44 : vector<8x8xf32>
    %46 = arith.truncf %45 : vector<8x8xf32> to vector<8x8xbf16>
    %cst_16 = arith.constant dense<0.000000e+00> : vector<8x8xf32>
    %47 = tpu.matmul %46, %32, %cst_16 {dimension_numbers = #tpu.dot_dimension_numbers<[1], [0], [0], [1], [0, 0, 1, 1], [], []>} : vector<8x8xbf16>, vector<8x8xbf16>, vector<8x8xf32> -> vector<8x8xf32>
    %48 = vector.extract_strided_slice %1 {offsets = [0, 16], sizes = [8, 8], strides = [1, 1]} : vector<8x32xf32> to vector<8x8xf32>
    %49 = arith.truncf %48 : vector<8x8xf32> to vector<8x8xbf16>
    %50 = vector.extract_strided_slice %3 {offsets = [0, 16], sizes = [8, 8], strides = [1, 1]} : vector<8x32xf32> to vector<8x8xf32>
    %51 = arith.truncf %50 : vector<8x8xf32> to vector<8x8xbf16>
    %52 = vector.extract_strided_slice %5 {offsets = [0, 16], sizes = [8, 8], strides = [1, 1]} : vector<8x32xf32> to vector<8x8xf32>
    %53 = arith.truncf %52 : vector<8x8xf32> to vector<8x8xbf16>
    %cst_17 = arith.constant dense<0.000000e+00> : vector<8x8xf32>
    %54 = tpu.matmul %49, %51, %cst_17 {dimension_numbers = #tpu.dot_dimension_numbers<[1], [1], [0], [0], [0, 0, 1, 0], [], []>} : vector<8x8xbf16>, vector<8x8xbf16>, vector<8x8xf32> -> vector<8x8xf32>
    %cst_18 = arith.constant 0.353553385 : f32
    %55 = vector.broadcast %cst_18 : f32 to vector<8x8xf32>
    %56 = arith.mulf %54, %55 : vector<8x8xf32>
    %cst_19 = arith.constant dense<0xFF800000> : vector<8xf32>
    %57 = vector.multi_reduction <maximumf>, %56, %cst_19 [1] : vector<8x8xf32> to vector<8xf32>
    %58 = vector.shape_cast %57 : vector<8xf32> to vector<8x1xf32>
    %59 = vector.broadcast %58 : vector<8x1xf32> to vector<8x8xf32>
    %60 = arith.subf %56, %59 : vector<8x8xf32>
    %61 = math.exp %60 : vector<8x8xf32>
    %cst_20 = arith.constant dense<0.000000e+00> : vector<8xf32>
    %62 = vector.multi_reduction <add>, %61, %cst_20 [1] : vector<8x8xf32> to vector<8xf32>
    %63 = vector.shape_cast %62 : vector<8xf32> to vector<8x1xf32>
    %64 = tpu.reciprocal %63 {approx = true} : vector<8x1xf32> -> vector<8x1xf32>
    %65 = vector.broadcast %64 : vector<8x1xf32> to vector<8x8xf32>
    %66 = arith.mulf %61, %65 : vector<8x8xf32>
    %67 = arith.truncf %66 : vector<8x8xf32> to vector<8x8xbf16>
    %cst_21 = arith.constant dense<0.000000e+00> : vector<8x8xf32>
    %68 = tpu.matmul %67, %53, %cst_21 {dimension_numbers = #tpu.dot_dimension_numbers<[1], [0], [0], [1], [0, 0, 1, 1], [], []>} : vector<8x8xbf16>, vector<8x8xbf16>, vector<8x8xf32> -> vector<8x8xf32>
    %69 = vector.extract_strided_slice %1 {offsets = [0, 24], sizes = [8, 8], strides = [1, 1]} : vector<8x32xf32> to vector<8x8xf32>
    %70 = arith.truncf %69 : vector<8x8xf32> to vector<8x8xbf16>
    %71 = vector.extract_strided_slice %3 {offsets = [0, 24], sizes = [8, 8], strides = [1, 1]} : vector<8x32xf32> to vector<8x8xf32>
    %72 = arith.truncf %71 : vector<8x8xf32> to vector<8x8xbf16>
    %73 = vector.extract_strided_slice %5 {offsets = [0, 24], sizes = [8, 8], strides = [1, 1]} : vector<8x32xf32> to vector<8x8xf32>
    %74 = arith.truncf %73 : vector<8x8xf32> to vector<8x8xbf16>
    %cst_22 = arith.constant dense<0.000000e+00> : vector<8x8xf32>
    %75 = tpu.matmul %70, %72, %cst_22 {dimension_numbers = #tpu.dot_dimension_numbers<[1], [1], [0], [0], [0, 0, 1, 0], [], []>} : vector<8x8xbf16>, vector<8x8xbf16>, vector<8x8xf32> -> vector<8x8xf32>
    %cst_23 = arith.constant 0.353553385 : f32
    %76 = vector.broadcast %cst_23 : f32 to vector<8x8xf32>
    %77 = arith.mulf %75, %76 : vector<8x8xf32>
    %cst_24 = arith.constant dense<0xFF800000> : vector<8xf32>
    %78 = vector.multi_reduction <maximumf>, %77, %cst_24 [1] : vector<8x8xf32> to vector<8xf32>
    %79 = vector.shape_cast %78 : vector<8xf32> to vector<8x1xf32>
    %80 = vector.broadcast %79 : vector<8x1xf32> to vector<8x8xf32>
    %81 = arith.subf %77, %80 : vector<8x8xf32>
    %82 = math.exp %81 : vector<8x8xf32>
    %cst_25 = arith.constant dense<0.000000e+00> : vector<8xf32>
    %83 = vector.multi_reduction <add>, %82, %cst_25 [1] : vector<8x8xf32> to vector<8xf32>
    %84 = vector.shape_cast %83 : vector<8xf32> to vector<8x1xf32>
    %85 = tpu.reciprocal %84 {approx = true} : vector<8x1xf32> -> vector<8x1xf32>
    %86 = vector.broadcast %85 : vector<8x1xf32> to vector<8x8xf32>
    %87 = arith.mulf %82, %86 : vector<8x8xf32>
    %88 = arith.truncf %87 : vector<8x8xf32> to vector<8x8xbf16>
    %cst_26 = arith.constant dense<0.000000e+00> : vector<8x8xf32>
    %89 = tpu.matmul %88, %74, %cst_26 {dimension_numbers = #tpu.dot_dimension_numbers<[1], [0], [0], [1], [0, 0, 1, 1], [], []>} : vector<8x8xbf16>, vector<8x8xbf16>, vector<8x8xf32> -> vector<8x8xf32>
    %90 = tpu.concatenate %26, %47, %68, %89 in 1 : vector<8x8xf32>, vector<8x8xf32>, vector<8x8xf32>, vector<8x8xf32> -> vector<8x32xf32>
    %c0_27 = arith.constant 0 : index
    %c0_28 = arith.constant 0 : index
    %c0_29 = arith.constant 0 : index
    %91 = vector.load %arg4[%c0_27, %c0_28, %c0_29] : memref<1x8x32xf32, #tpu.memory_space<vmem>>, vector<1x8x32xf32>
    %92 = vector.shape_cast %91 : vector<1x8x32xf32> to vector<8x32xf32>
    %93 = vector.shape_cast %90 : vector<8x32xf32> to vector<1x8x32xf32>
    tpu.vector_store %arg4[%c0_27, %c0_28, %c0_29], %93 {strides = array<i32>} : memref<1x8x32xf32, #tpu.memory_space<vmem>>, vector<1x8x32xf32>,
    return
  }
  func.func @transform_0(%arg0: i32) -> (i32, i32, i32) {
    %c0_i32 = arith.constant 0 : i32
    %c0_i32_0 = arith.constant 0 : i32
    %c0_i32_1 = arith.constant 0 : i32
    return %arg0, %c0_i32, %c0_i32_0 : i32, i32, i32
  }
  func.func @transform_1(%arg0: i32) -> (i32, i32, i32) {
    %c0_i32 = arith.constant 0 : i32
    %c0_i32_0 = arith.constant 0 : i32
    %c0_i32_1 = arith.constant 0 : i32
    return %arg0, %c0_i32, %c0_i32_0 : i32, i32, i32
  }
  func.func @transform_2(%arg0: i32) -> (i32, i32, i32) {
    %c0_i32 = arith.constant 0 : i32
    %c0_i32_0 = arith.constant 0 : i32
    %c0_i32_1 = arith.constant 0 : i32
    return %arg0, %c0_i32, %c0_i32_0 : i32, i32, i32
  }
  func.func @transform_3(%arg0: i32) -> (i32, i32, i32) {
    %c0_i32 = arith.constant 0 : i32
    %c0_i32_0 = arith.constant 0 : i32
    %c0_i32_1 = arith.constant 0 : i32
    return %arg0, %c0_i32, %c0_i32_0 : i32, i32, i32
  }
}

module attributes {stable_mosaic.version = 11 : i64} {
  func.func @_ln_kernel(%arg0: i32, %arg1: memref<16x32xf32, #tpu.memory_space<vmem>>, %arg2: memref<16x32xf32, #tpu.memory_space<vmem>>, %arg3: memref<1x32xf32, #tpu.memory_space<vmem>>, %arg4: memref<1x32xf32, #tpu.memory_space<vmem>>, %arg5: memref<16x32xf32, #tpu.memory_space<vmem>>) attributes {dimension_semantics = [#tpu.dimension_semantics<parallel>], iteration_bounds = array<i64: 1>, scalar_prefetch = 0 : i64, scratch_operands = 0 : i64, tpu.core_type = #tpu.core_type<tc>, window_params = [{transform_indices = @transform_0, window_bounds = array<i64: 16, 32>}, {transform_indices = @transform_1, window_bounds = array<i64: 16, 32>}, {pipeline_mode = #tpu.pipeline_mode<synchronous>, transform_indices = @transform_2, window_bounds = array<i64: 1, 32>}, {pipeline_mode = #tpu.pipeline_mode<synchronous>, transform_indices = @transform_3, window_bounds = array<i64: 1, 32>}, {transform_indices = @transform_4, window_bounds = array<i64: 16, 32>}]} {
    %c0 = arith.constant 0 : index
    %c0_0 = arith.constant 0 : index
    %0 = vector.load %arg1[%c0, %c0_0] : memref<16x32xf32, #tpu.memory_space<vmem>>, vector<16x32xf32>
    %c0_1 = arith.constant 0 : index
    %c0_2 = arith.constant 0 : index
    %1 = vector.load %arg2[%c0_1, %c0_2] : memref<16x32xf32, #tpu.memory_space<vmem>>, vector<16x32xf32>
    %2 = arith.addf %0, %1 : vector<16x32xf32>
    %cst = arith.constant dense<0.000000e+00> : vector<16xf32>
    %3 = vector.multi_reduction <add>, %2, %cst [1] : vector<16x32xf32> to vector<16xf32>
    %4 = vector.shape_cast %3 : vector<16xf32> to vector<16x1xf32>
    %cst_3 = arith.constant 3.200000e+01 : f32
    %5 = vector.broadcast %cst_3 : f32 to vector<16x1xf32>
    %6 = arith.divf %4, %5 : vector<16x1xf32>
    %7 = vector.broadcast %6 : vector<16x1xf32> to vector<16x32xf32>
    %8 = arith.subf %2, %7 : vector<16x32xf32>
    %9 = arith.mulf %8, %8 : vector<16x32xf32>
    %cst_4 = arith.constant dense<0.000000e+00> : vector<16xf32>
    %10 = vector.multi_reduction <add>, %9, %cst_4 [1] : vector<16x32xf32> to vector<16xf32>
    %11 = vector.shape_cast %10 : vector<16xf32> to vector<16x1xf32>
    %cst_5 = arith.constant 3.200000e+01 : f32
    %12 = vector.broadcast %cst_5 : f32 to vector<16x1xf32>
    %13 = arith.divf %11, %12 : vector<16x1xf32>
    %14 = vector.broadcast %6 : vector<16x1xf32> to vector<16x32xf32>
    %15 = arith.subf %2, %14 : vector<16x32xf32>
    %cst_6 = arith.constant 9.99999974E-6 : f32
    %16 = vector.broadcast %cst_6 : f32 to vector<16x1xf32>
    %17 = arith.addf %13, %16 : vector<16x1xf32>
    %18 = math.rsqrt %17 : vector<16x1xf32>
    %19 = vector.broadcast %18 : vector<16x1xf32> to vector<16x32xf32>
    %20 = arith.mulf %15, %19 : vector<16x32xf32>
    %c0_7 = arith.constant 0 : index
    %c0_8 = arith.constant 0 : index
    %21 = vector.load %arg3[%c0_7, %c0_8] : memref<1x32xf32, #tpu.memory_space<vmem>>, vector<1x32xf32>
    %22 = vector.broadcast %21 : vector<1x32xf32> to vector<16x32xf32>
    %23 = arith.mulf %20, %22 : vector<16x32xf32>
    %c0_9 = arith.constant 0 : index
    %c0_10 = arith.constant 0 : index
    %24 = vector.load %arg4[%c0_9, %c0_10] : memref<1x32xf32, #tpu.memory_space<vmem>>, vector<1x32xf32>
    %25 = vector.broadcast %24 : vector<1x32xf32> to vector<16x32xf32>
    %26 = arith.addf %23, %25 : vector<16x32xf32>
    %c0_11 = arith.constant 0 : index
    %c0_12 = arith.constant 0 : index
    %27 = vector.load %arg5[%c0_11, %c0_12] : memref<16x32xf32, #tpu.memory_space<vmem>>, vector<16x32xf32>
    tpu.vector_store %arg5[%c0_11, %c0_12], %26 {strides = array<i32>} : memref<16x32xf32, #tpu.memory_space<vmem>>, vector<16x32xf32>,
    return
  }
  func.func @transform_0(%arg0: i32) -> (i32, i32) {
    %c0_i32 = arith.constant 0 : i32
    %c0_i32_0 = arith.constant 0 : i32
    return %arg0, %c0_i32 : i32, i32
  }
  func.func @transform_1(%arg0: i32) -> (i32, i32) {
    %c0_i32 = arith.constant 0 : i32
    %c0_i32_0 = arith.constant 0 : i32
    return %arg0, %c0_i32 : i32, i32
  }
  func.func @transform_2(%arg0: i32) -> (i32, i32) {
    %c0_i32 = arith.constant 0 : i32
    %c0_i32_0 = arith.constant 0 : i32
    %c0_i32_1 = arith.constant 0 : i32
    return %c0_i32, %c0_i32_0 : i32, i32
  }
  func.func @transform_3(%arg0: i32) -> (i32, i32) {
    %c0_i32 = arith.constant 0 : i32
    %c0_i32_0 = arith.constant 0 : i32
    %c0_i32_1 = arith.constant 0 : i32
    return %c0_i32, %c0_i32_0 : i32, i32
  }
  func.func @transform_4(%arg0: i32) -> (i32, i32) {
    %c0_i32 = arith.constant 0 : i32
    %c0_i32_0 = arith.constant 0 : i32
    return %arg0, %c0_i32 : i32, i32
  }
}

module attributes {stable_mosaic.version = 11 : i64} {
  func.func @_matmul_kernel(%arg0: i32, %arg1: i32, %arg2: i32, %arg3: memref<16x128xf32, #tpu.memory_space<vmem>>, %arg4: memref<128x128xbf16, #tpu.memory_space<vmem>>, %arg5: memref<1x128xf32, #tpu.memory_space<vmem>>, %arg6: memref<16x128xf32, #tpu.memory_space<vmem>>, %arg7: memref<16x128xf32, #tpu.memory_space<vmem>>) attributes {dimension_semantics = [#tpu.dimension_semantics<parallel>, #tpu.dimension_semantics<parallel>, #tpu.dimension_semantics<arbitrary>], iteration_bounds = array<i64: 1, 1, 1>, scalar_prefetch = 0 : i64, scratch_operands = 1 : i64, tpu.core_type = #tpu.core_type<tc>, window_params = [{transform_indices = @transform_0, window_bounds = array<i64: 16, 128>}, {transform_indices = @transform_1, window_bounds = array<i64: 128, 128>}, {transform_indices = @transform_2, window_bounds = array<i64: 1, 128>}, {transform_indices = @transform_3, window_bounds = array<i64: 16, 128>}]} {
    %c0 = arith.constant 0 : index
    %c0_0 = arith.constant 0 : index
    %0 = vector.load %arg3[%c0, %c0_0] : memref<16x128xf32, #tpu.memory_space<vmem>>, vector<16x128xf32>
    %c0_i32 = arith.constant 0 : i32
    %1 = arith.cmpi eq, %arg2, %c0_i32 : i32
    %2 = arith.extui %1 : i1 to i32
    %c0_i32_1 = arith.constant 0 : i32
    %3 = arith.cmpi ne, %2, %c0_i32_1 : i32
    scf.if %3 {
      %cst_10 = arith.constant 0.000000e+00 : f32
      %13 = vector.broadcast %cst_10 : f32 to vector<16x128xf32>
      %c0_11 = arith.constant 0 : index
      %c0_12 = arith.constant 0 : index
      %14 = vector.load %arg7[%c0_11, %c0_12] : memref<16x128xf32, #tpu.memory_space<vmem>>, vector<16x128xf32>
      tpu.vector_store %arg7[%c0_11, %c0_12], %13 {strides = array<i32>} : memref<16x128xf32, #tpu.memory_space<vmem>>, vector<16x128xf32>,
    } else {
    }
    %c0_2 = arith.constant 0 : index
    %c0_3 = arith.constant 0 : index
    %4 = vector.load %arg7[%c0_2, %c0_3] : memref<16x128xf32, #tpu.memory_space<vmem>>, vector<16x128xf32>
    %5 = arith.truncf %0 : vector<16x128xf32> to vector<16x128xbf16>
    %c0_4 = arith.constant 0 : index
    %c0_5 = arith.constant 0 : index
    %6 = vector.load %arg4[%c0_4, %c0_5] : memref<128x128xbf16, #tpu.memory_space<vmem>>, vector<128x128xbf16>
    %cst = arith.constant dense<0.000000e+00> : vector<16x128xf32>
    %7 = tpu.matmul %5, %6, %cst {dimension_numbers = #tpu.dot_dimension_numbers<[1], [0], [0], [1], [0, 0, 1, 1], [], []>} : vector<16x128xbf16>, vector<128x128xbf16>, vector<16x128xf32> -> vector<16x128xf32>
    %8 = arith.addf %4, %7 : vector<16x128xf32>
    %c0_6 = arith.constant 0 : index
    %c0_7 = arith.constant 0 : index
    %9 = vector.load %arg7[%c0_6, %c0_7] : memref<16x128xf32, #tpu.memory_space<vmem>>, vector<16x128xf32>
    tpu.vector_store %arg7[%c0_6, %c0_7], %8 {strides = array<i32>} : memref<16x128xf32, #tpu.memory_space<vmem>>, vector<16x128xf32>,
    %c0_i32_8 = arith.constant 0 : i32
    %10 = arith.cmpi eq, %arg2, %c0_i32_8 : i32
    %11 = arith.extui %10 : i1 to i32
    %c0_i32_9 = arith.constant 0 : i32
    %12 = arith.cmpi ne, %11, %c0_i32_9 : i32
    scf.if %12 {
      %c0_10 = arith.constant 0 : index
      %c0_11 = arith.constant 0 : index
      %13 = vector.load %arg7[%c0_10, %c0_11] : memref<16x128xf32, #tpu.memory_space<vmem>>, vector<16x128xf32>
      %c0_12 = arith.constant 0 : index
      %c0_13 = arith.constant 0 : index
      %14 = vector.load %arg5[%c0_12, %c0_13] : memref<1x128xf32, #tpu.memory_space<vmem>>, vector<1x128xf32>
      %15 = vector.broadcast %14 : vector<1x128xf32> to vector<16x128xf32>
      %16 = arith.addf %13, %15 : vector<16x128xf32>
      %cst_14 = arith.constant 0.000000e+00 : f32
      %17 = vector.broadcast %cst_14 : f32 to vector<16x128xf32>
      %18 = arith.maximumf %16, %17 : vector<16x128xf32>
      %c0_15 = arith.constant 0 : index
      %c0_16 = arith.constant 0 : index
      %19 = vector.load %arg6[%c0_15, %c0_16] : memref<16x128xf32, #tpu.memory_space<vmem>>, vector<16x128xf32>
      tpu.vector_store %arg6[%c0_15, %c0_16], %18 {strides = array<i32>} : memref<16x128xf32, #tpu.memory_space<vmem>>, vector<16x128xf32>,
    } else {
    }
    return
  }
  func.func @transform_0(%arg0: i32, %arg1: i32, %arg2: i32) -> (i32, i32) {
    %c0_i32 = arith.constant 0 : i32
    return %arg0, %arg2 : i32, i32
  }
  func.func @transform_1(%arg0: i32, %arg1: i32, %arg2: i32) -> (i32, i32) {
    %c0_i32 = arith.constant 0 : i32
    return %arg2, %arg1 : i32, i32
  }
  func.func @transform_2(%arg0: i32, %arg1: i32, %arg2: i32) -> (i32, i32) {
    %c0_i32 = arith.constant 0 : i32
    %c0_i32_0 = arith.constant 0 : i32
    return %c0_i32, %arg1 : i32, i32
  }
  func.func @transform_3(%arg0: i32, %arg1: i32, %arg2: i32) -> (i32, i32) {
    %c0_i32 = arith.constant 0 : i32
    return %arg0, %arg1 : i32, i32
  }
}

module attributes {stable_mosaic.version = 11 : i64} {
  func.func @_attn_kernel(%arg0: i32, %arg1: memref<1x8x32xf32, #tpu.memory_space<vmem>>, %arg2: memref<1x16x32xf32, #tpu.memory_space<vmem>>, %arg3: memref<1x16x32xf32, #tpu.memory_space<vmem>>, %arg4: memref<1x8x32xf32, #tpu.memory_space<vmem>>) attributes {dimension_semantics = [#tpu.dimension_semantics<parallel>], iteration_bounds = array<i64: 2>, scalar_prefetch = 0 : i64, scratch_operands = 0 : i64, tpu.core_type = #tpu.core_type<tc>, window_params = [{transform_indices = @transform_0, window_bounds = array<i64: 1, 8, 32>}, {transform_indices = @transform_1, window_bounds = array<i64: 1, 16, 32>}, {transform_indices = @transform_2, window_bounds = array<i64: 1, 16, 32>}, {transform_indices = @transform_3, window_bounds = array<i64: 1, 8, 32>}]} {
    %c0 = arith.constant 0 : index
    %c0_0 = arith.constant 0 : index
    %c0_1 = arith.constant 0 : index
    %0 = vector.load %arg1[%c0, %c0_0, %c0_1] : memref<1x8x32xf32, #tpu.memory_space<vmem>>, vector<1x8x32xf32>
    %1 = vector.shape_cast %0 : vector<1x8x32xf32> to vector<8x32xf32>
    %c0_2 = arith.constant 0 : index
    %c0_3 = arith.constant 0 : index
    %c0_4 = arith.constant 0 : index
    %2 = vector.load %arg2[%c0_2, %c0_3, %c0_4] : memref<1x16x32xf32, #tpu.memory_space<vmem>>, vector<1x16x32xf32>
    %3 = vector.shape_cast %2 : vector<1x16x32xf32> to vector<16x32xf32>
    %c0_5 = arith.constant 0 : index
    %c0_6 = arith.constant 0 : index
    %c0_7 = arith.constant 0 : index
    %4 = vector.load %arg3[%c0_5, %c0_6, %c0_7] : memref<1x16x32xf32, #tpu.memory_space<vmem>>, vector<1x16x32xf32>
    %5 = vector.shape_cast %4 : vector<1x16x32xf32> to vector<16x32xf32>
    %6 = vector.extract_strided_slice %1 {offsets = [0, 0], sizes = [8, 8], strides = [1, 1]} : vector<8x32xf32> to vector<8x8xf32>
    %7 = arith.truncf %6 : vector<8x8xf32> to vector<8x8xbf16>
    %8 = vector.extract_strided_slice %3 {offsets = [0, 0], sizes = [16, 8], strides = [1, 1]} : vector<16x32xf32> to vector<16x8xf32>
    %9 = arith.truncf %8 : vector<16x8xf32> to vector<16x8xbf16>
    %10 = vector.extract_strided_slice %5 {offsets = [0, 0], sizes = [16, 8], strides = [1, 1]} : vector<16x32xf32> to vector<16x8xf32>
    %11 = arith.truncf %10 : vector<16x8xf32> to vector<16x8xbf16>
    %cst = arith.constant dense<0.000000e+00> : vector<8x16xf32>
    %12 = tpu.matmul %7, %9, %cst {dimension_numbers = #tpu.dot_dimension_numbers<[1], [1], [0], [0], [0, 0, 1, 0], [], []>} : vector<8x8xbf16>, vector<16x8xbf16>, vector<8x16xf32> -> vector<8x16xf32>
    %cst_8 = arith.constant 0.353553385 : f32
    %13 = vector.broadcast %cst_8 : f32 to vector<8x16xf32>
    %14 = arith.mulf %12, %13 : vector<8x16xf32>
    %cst_9 = arith.constant dense<0xFF800000> : vector<8xf32>
    %15 = vector.multi_reduction <maximumf>, %14, %cst_9 [1] : vector<8x16xf32> to vector<8xf32>
    %16 = vector.shape_cast %15 : vector<8xf32> to vector<8x1xf32>
    %17 = vector.broadcast %16 : vector<8x1xf32> to vector<8x16xf32>
    %18 = arith.subf %14, %17 : vector<8x16xf32>
    %19 = math.exp %18 : vector<8x16xf32>
    %cst_10 = arith.constant dense<0.000000e+00> : vector<8xf32>
    %20 = vector.multi_reduction <add>, %19, %cst_10 [1] : vector<8x16xf32> to vector<8xf32>
    %21 = vector.shape_cast %20 : vector<8xf32> to vector<8x1xf32>
    %22 = tpu.reciprocal %21 {approx = true} : vector<8x1xf32> -> vector<8x1xf32>
    %23 = vector.broadcast %22 : vector<8x1xf32> to vector<8x16xf32>
    %24 = arith.mulf %19, %23 : vector<8x16xf32>
    %25 = arith.truncf %24 : vector<8x16xf32> to vector<8x16xbf16>
    %cst_11 = arith.constant dense<0.000000e+00> : vector<8x8xf32>
    %26 = tpu.matmul %25, %11, %cst_11 {dimension_numbers = #tpu.dot_dimension_numbers<[1], [0], [0], [1], [0, 0, 1, 1], [], []>} : vector<8x16xbf16>, vector<16x8xbf16>, vector<8x8xf32> -> vector<8x8xf32>
    %27 = vector.extract_strided_slice %1 {offsets = [0, 8], sizes = [8, 8], strides = [1, 1]} : vector<8x32xf32> to vector<8x8xf32>
    %28 = arith.truncf %27 : vector<8x8xf32> to vector<8x8xbf16>
    %29 = vector.extract_strided_slice %3 {offsets = [0, 8], sizes = [16, 8], strides = [1, 1]} : vector<16x32xf32> to vector<16x8xf32>
    %30 = arith.truncf %29 : vector<16x8xf32> to vector<16x8xbf16>
    %31 = vector.extract_strided_slice %5 {offsets = [0, 8], sizes = [16, 8], strides = [1, 1]} : vector<16x32xf32> to vector<16x8xf32>
    %32 = arith.truncf %31 : vector<16x8xf32> to vector<16x8xbf16>
    %cst_12 = arith.constant dense<0.000000e+00> : vector<8x16xf32>
    %33 = tpu.matmul %28, %30, %cst_12 {dimension_numbers = #tpu.dot_dimension_numbers<[1], [1], [0], [0], [0, 0, 1, 0], [], []>} : vector<8x8xbf16>, vector<16x8xbf16>, vector<8x16xf32> -> vector<8x16xf32>
    %cst_13 = arith.constant 0.353553385 : f32
    %34 = vector.broadcast %cst_13 : f32 to vector<8x16xf32>
    %35 = arith.mulf %33, %34 : vector<8x16xf32>
    %cst_14 = arith.constant dense<0xFF800000> : vector<8xf32>
    %36 = vector.multi_reduction <maximumf>, %35, %cst_14 [1] : vector<8x16xf32> to vector<8xf32>
    %37 = vector.shape_cast %36 : vector<8xf32> to vector<8x1xf32>
    %38 = vector.broadcast %37 : vector<8x1xf32> to vector<8x16xf32>
    %39 = arith.subf %35, %38 : vector<8x16xf32>
    %40 = math.exp %39 : vector<8x16xf32>
    %cst_15 = arith.constant dense<0.000000e+00> : vector<8xf32>
    %41 = vector.multi_reduction <add>, %40, %cst_15 [1] : vector<8x16xf32> to vector<8xf32>
    %42 = vector.shape_cast %41 : vector<8xf32> to vector<8x1xf32>
    %43 = tpu.reciprocal %42 {approx = true} : vector<8x1xf32> -> vector<8x1xf32>
    %44 = vector.broadcast %43 : vector<8x1xf32> to vector<8x16xf32>
    %45 = arith.mulf %40, %44 : vector<8x16xf32>
    %46 = arith.truncf %45 : vector<8x16xf32> to vector<8x16xbf16>
    %cst_16 = arith.constant dense<0.000000e+00> : vector<8x8xf32>
    %47 = tpu.matmul %46, %32, %cst_16 {dimension_numbers = #tpu.dot_dimension_numbers<[1], [0], [0], [1], [0, 0, 1, 1], [], []>} : vector<8x16xbf16>, vector<16x8xbf16>, vector<8x8xf32> -> vector<8x8xf32>
    %48 = vector.extract_strided_slice %1 {offsets = [0, 16], sizes = [8, 8], strides = [1, 1]} : vector<8x32xf32> to vector<8x8xf32>
    %49 = arith.truncf %48 : vector<8x8xf32> to vector<8x8xbf16>
    %50 = vector.extract_strided_slice %3 {offsets = [0, 16], sizes = [16, 8], strides = [1, 1]} : vector<16x32xf32> to vector<16x8xf32>
    %51 = arith.truncf %50 : vector<16x8xf32> to vector<16x8xbf16>
    %52 = vector.extract_strided_slice %5 {offsets = [0, 16], sizes = [16, 8], strides = [1, 1]} : vector<16x32xf32> to vector<16x8xf32>
    %53 = arith.truncf %52 : vector<16x8xf32> to vector<16x8xbf16>
    %cst_17 = arith.constant dense<0.000000e+00> : vector<8x16xf32>
    %54 = tpu.matmul %49, %51, %cst_17 {dimension_numbers = #tpu.dot_dimension_numbers<[1], [1], [0], [0], [0, 0, 1, 0], [], []>} : vector<8x8xbf16>, vector<16x8xbf16>, vector<8x16xf32> -> vector<8x16xf32>
    %cst_18 = arith.constant 0.353553385 : f32
    %55 = vector.broadcast %cst_18 : f32 to vector<8x16xf32>
    %56 = arith.mulf %54, %55 : vector<8x16xf32>
    %cst_19 = arith.constant dense<0xFF800000> : vector<8xf32>
    %57 = vector.multi_reduction <maximumf>, %56, %cst_19 [1] : vector<8x16xf32> to vector<8xf32>
    %58 = vector.shape_cast %57 : vector<8xf32> to vector<8x1xf32>
    %59 = vector.broadcast %58 : vector<8x1xf32> to vector<8x16xf32>
    %60 = arith.subf %56, %59 : vector<8x16xf32>
    %61 = math.exp %60 : vector<8x16xf32>
    %cst_20 = arith.constant dense<0.000000e+00> : vector<8xf32>
    %62 = vector.multi_reduction <add>, %61, %cst_20 [1] : vector<8x16xf32> to vector<8xf32>
    %63 = vector.shape_cast %62 : vector<8xf32> to vector<8x1xf32>
    %64 = tpu.reciprocal %63 {approx = true} : vector<8x1xf32> -> vector<8x1xf32>
    %65 = vector.broadcast %64 : vector<8x1xf32> to vector<8x16xf32>
    %66 = arith.mulf %61, %65 : vector<8x16xf32>
    %67 = arith.truncf %66 : vector<8x16xf32> to vector<8x16xbf16>
    %cst_21 = arith.constant dense<0.000000e+00> : vector<8x8xf32>
    %68 = tpu.matmul %67, %53, %cst_21 {dimension_numbers = #tpu.dot_dimension_numbers<[1], [0], [0], [1], [0, 0, 1, 1], [], []>} : vector<8x16xbf16>, vector<16x8xbf16>, vector<8x8xf32> -> vector<8x8xf32>
    %69 = vector.extract_strided_slice %1 {offsets = [0, 24], sizes = [8, 8], strides = [1, 1]} : vector<8x32xf32> to vector<8x8xf32>
    %70 = arith.truncf %69 : vector<8x8xf32> to vector<8x8xbf16>
    %71 = vector.extract_strided_slice %3 {offsets = [0, 24], sizes = [16, 8], strides = [1, 1]} : vector<16x32xf32> to vector<16x8xf32>
    %72 = arith.truncf %71 : vector<16x8xf32> to vector<16x8xbf16>
    %73 = vector.extract_strided_slice %5 {offsets = [0, 24], sizes = [16, 8], strides = [1, 1]} : vector<16x32xf32> to vector<16x8xf32>
    %74 = arith.truncf %73 : vector<16x8xf32> to vector<16x8xbf16>
    %cst_22 = arith.constant dense<0.000000e+00> : vector<8x16xf32>
    %75 = tpu.matmul %70, %72, %cst_22 {dimension_numbers = #tpu.dot_dimension_numbers<[1], [1], [0], [0], [0, 0, 1, 0], [], []>} : vector<8x8xbf16>, vector<16x8xbf16>, vector<8x16xf32> -> vector<8x16xf32>
    %cst_23 = arith.constant 0.353553385 : f32
    %76 = vector.broadcast %cst_23 : f32 to vector<8x16xf32>
    %77 = arith.mulf %75, %76 : vector<8x16xf32>
    %cst_24 = arith.constant dense<0xFF800000> : vector<8xf32>
    %78 = vector.multi_reduction <maximumf>, %77, %cst_24 [1] : vector<8x16xf32> to vector<8xf32>
    %79 = vector.shape_cast %78 : vector<8xf32> to vector<8x1xf32>
    %80 = vector.broadcast %79 : vector<8x1xf32> to vector<8x16xf32>
    %81 = arith.subf %77, %80 : vector<8x16xf32>
    %82 = math.exp %81 : vector<8x16xf32>
    %cst_25 = arith.constant dense<0.000000e+00> : vector<8xf32>
    %83 = vector.multi_reduction <add>, %82, %cst_25 [1] : vector<8x16xf32> to vector<8xf32>
    %84 = vector.shape_cast %83 : vector<8xf32> to vector<8x1xf32>
    %85 = tpu.reciprocal %84 {approx = true} : vector<8x1xf32> -> vector<8x1xf32>
    %86 = vector.broadcast %85 : vector<8x1xf32> to vector<8x16xf32>
    %87 = arith.mulf %82, %86 : vector<8x16xf32>
    %88 = arith.truncf %87 : vector<8x16xf32> to vector<8x16xbf16>
    %cst_26 = arith.constant dense<0.000000e+00> : vector<8x8xf32>
    %89 = tpu.matmul %88, %74, %cst_26 {dimension_numbers = #tpu.dot_dimension_numbers<[1], [0], [0], [1], [0, 0, 1, 1], [], []>} : vector<8x16xbf16>, vector<16x8xbf16>, vector<8x8xf32> -> vector<8x8xf32>
    %90 = tpu.concatenate %26, %47, %68, %89 in 1 : vector<8x8xf32>, vector<8x8xf32>, vector<8x8xf32>, vector<8x8xf32> -> vector<8x32xf32>
    %c0_27 = arith.constant 0 : index
    %c0_28 = arith.constant 0 : index
    %c0_29 = arith.constant 0 : index
    %91 = vector.load %arg4[%c0_27, %c0_28, %c0_29] : memref<1x8x32xf32, #tpu.memory_space<vmem>>, vector<1x8x32xf32>
    %92 = vector.shape_cast %91 : vector<1x8x32xf32> to vector<8x32xf32>
    %93 = vector.shape_cast %90 : vector<8x32xf32> to vector<1x8x32xf32>
    tpu.vector_store %arg4[%c0_27, %c0_28, %c0_29], %93 {strides = array<i32>} : memref<1x8x32xf32, #tpu.memory_space<vmem>>, vector<1x8x32xf32>,
    return
  }
  func.func @transform_0(%arg0: i32) -> (i32, i32, i32) {
    %c0_i32 = arith.constant 0 : i32
    %c0_i32_0 = arith.constant 0 : i32
    %c0_i32_1 = arith.constant 0 : i32
    return %arg0, %c0_i32, %c0_i32_0 : i32, i32, i32
  }
  func.func @transform_1(%arg0: i32) -> (i32, i32, i32) {
    %c0_i32 = arith.constant 0 : i32
    %c0_i32_0 = arith.constant 0 : i32
    %c0_i32_1 = arith.constant 0 : i32
    return %arg0, %c0_i32, %c0_i32_0 : i32, i32, i32
  }
  func.func @transform_2(%arg0: i32) -> (i32, i32, i32) {
    %c0_i32 = arith.constant 0 : i32
    %c0_i32_0 = arith.constant 0 : i32
    %c0_i32_1 = arith.constant 0 : i32
    return %arg0, %c0_i32, %c0_i32_0 : i32, i32, i32
  }
  func.func @transform_3(%arg0: i32) -> (i32, i32, i32) {
    %c0_i32 = arith.constant 0 : i32
    %c0_i32_0 = arith.constant 0 : i32
    %c0_i32_1 = arith.constant 0 : i32
    return %arg0, %c0_i32, %c0_i32_0 : i32, i32, i32
  }
}

module attributes {stable_mosaic.version = 11 : i64} {
  func.func @_ln_kernel(%arg0: i32, %arg1: memref<16x32xf32, #tpu.memory_space<vmem>>, %arg2: memref<1x32xf32, #tpu.memory_space<vmem>>, %arg3: memref<1x32xf32, #tpu.memory_space<vmem>>, %arg4: memref<16x32xf32, #tpu.memory_space<vmem>>) attributes {dimension_semantics = [#tpu.dimension_semantics<parallel>], iteration_bounds = array<i64: 1>, scalar_prefetch = 0 : i64, scratch_operands = 0 : i64, tpu.core_type = #tpu.core_type<tc>, window_params = [{transform_indices = @transform_0, window_bounds = array<i64: 16, 32>}, {pipeline_mode = #tpu.pipeline_mode<synchronous>, transform_indices = @transform_1, window_bounds = array<i64: 1, 32>}, {pipeline_mode = #tpu.pipeline_mode<synchronous>, transform_indices = @transform_2, window_bounds = array<i64: 1, 32>}, {transform_indices = @transform_3, window_bounds = array<i64: 16, 32>}]} {
    %c0 = arith.constant 0 : index
    %c0_0 = arith.constant 0 : index
    %0 = vector.load %arg1[%c0, %c0_0] : memref<16x32xf32, #tpu.memory_space<vmem>>, vector<16x32xf32>
    %cst = arith.constant dense<0.000000e+00> : vector<16xf32>
    %1 = vector.multi_reduction <add>, %0, %cst [1] : vector<16x32xf32> to vector<16xf32>
    %2 = vector.shape_cast %1 : vector<16xf32> to vector<16x1xf32>
    %cst_1 = arith.constant 3.200000e+01 : f32
    %3 = vector.broadcast %cst_1 : f32 to vector<16x1xf32>
    %4 = arith.divf %2, %3 : vector<16x1xf32>
    %5 = vector.broadcast %4 : vector<16x1xf32> to vector<16x32xf32>
    %6 = arith.subf %0, %5 : vector<16x32xf32>
    %7 = arith.mulf %6, %6 : vector<16x32xf32>
    %cst_2 = arith.constant dense<0.000000e+00> : vector<16xf32>
    %8 = vector.multi_reduction <add>, %7, %cst_2 [1] : vector<16x32xf32> to vector<16xf32>
    %9 = vector.shape_cast %8 : vector<16xf32> to vector<16x1xf32>
    %cst_3 = arith.constant 3.200000e+01 : f32
    %10 = vector.broadcast %cst_3 : f32 to vector<16x1xf32>
    %11 = arith.divf %9, %10 : vector<16x1xf32>
    %12 = vector.broadcast %4 : vector<16x1xf32> to vector<16x32xf32>
    %13 = arith.subf %0, %12 : vector<16x32xf32>
    %cst_4 = arith.constant 9.99999974E-6 : f32
    %14 = vector.broadcast %cst_4 : f32 to vector<16x1xf32>
    %15 = arith.addf %11, %14 : vector<16x1xf32>
    %16 = math.rsqrt %15 : vector<16x1xf32>
    %17 = vector.broadcast %16 : vector<16x1xf32> to vector<16x32xf32>
    %18 = arith.mulf %13, %17 : vector<16x32xf32>
    %c0_5 = arith.constant 0 : index
    %c0_6 = arith.constant 0 : index
    %19 = vector.load %arg2[%c0_5, %c0_6] : memref<1x32xf32, #tpu.memory_space<vmem>>, vector<1x32xf32>
    %20 = vector.broadcast %19 : vector<1x32xf32> to vector<16x32xf32>
    %21 = arith.mulf %18, %20 : vector<16x32xf32>
    %c0_7 = arith.constant 0 : index
    %c0_8 = arith.constant 0 : index
    %22 = vector.load %arg3[%c0_7, %c0_8] : memref<1x32xf32, #tpu.memory_space<vmem>>, vector<1x32xf32>
    %23 = vector.broadcast %22 : vector<1x32xf32> to vector<16x32xf32>
    %24 = arith.addf %21, %23 : vector<16x32xf32>
    %c0_9 = arith.constant 0 : index
    %c0_10 = arith.constant 0 : index
    %25 = vector.load %arg4[%c0_9, %c0_10] : memref<16x32xf32, #tpu.memory_space<vmem>>, vector<16x32xf32>
    tpu.vector_store %arg4[%c0_9, %c0_10], %24 {strides = array<i32>} : memref<16x32xf32, #tpu.memory_space<vmem>>, vector<16x32xf32>,
    return
  }
  func.func @transform_0(%arg0: i32) -> (i32, i32) {
    %c0_i32 = arith.constant 0 : i32
    %c0_i32_0 = arith.constant 0 : i32
    return %arg0, %c0_i32 : i32, i32
  }
  func.func @transform_1(%arg0: i32) -> (i32, i32) {
    %c0_i32 = arith.constant 0 : i32
    %c0_i32_0 = arith.constant 0 : i32
    %c0_i32_1 = arith.constant 0 : i32
    return %c0_i32, %c0_i32_0 : i32, i32
  }
  func.func @transform_2(%arg0: i32) -> (i32, i32) {
    %c0_i32 = arith.constant 0 : i32
    %c0_i32_0 = arith.constant 0 : i32
    %c0_i32_1 = arith.constant 0 : i32
    return %c0_i32, %c0_i32_0 : i32, i32
  }
  func.func @transform_3(%arg0: i32) -> (i32, i32) {
    %c0_i32 = arith.constant 0 : i32
    %c0_i32_0 = arith.constant 0 : i32
    return %arg0, %c0_i32 : i32, i32
  }
}

module attributes {stable_mosaic.version = 11 : i64} {
  func.func @_matmul_kernel(%arg0: i32, %arg1: i32, %arg2: i32, %arg3: memref<16x128xf32, #tpu.memory_space<vmem>>, %arg4: memref<128x128xbf16, #tpu.memory_space<vmem>>, %arg5: memref<1x128xf32, #tpu.memory_space<vmem>>, %arg6: memref<16x128xf32, #tpu.memory_space<vmem>>, %arg7: memref<16x128xf32, #tpu.memory_space<vmem>>) attributes {dimension_semantics = [#tpu.dimension_semantics<parallel>, #tpu.dimension_semantics<parallel>, #tpu.dimension_semantics<arbitrary>], iteration_bounds = array<i64: 1, 1, 1>, scalar_prefetch = 0 : i64, scratch_operands = 1 : i64, tpu.core_type = #tpu.core_type<tc>, window_params = [{transform_indices = @transform_0, window_bounds = array<i64: 16, 128>}, {transform_indices = @transform_1, window_bounds = array<i64: 128, 128>}, {transform_indices = @transform_2, window_bounds = array<i64: 1, 128>}, {transform_indices = @transform_3, window_bounds = array<i64: 16, 128>}]} {
    %c0 = arith.constant 0 : index
    %c0_0 = arith.constant 0 : index
    %0 = vector.load %arg3[%c0, %c0_0] : memref<16x128xf32, #tpu.memory_space<vmem>>, vector<16x128xf32>
    %c0_i32 = arith.constant 0 : i32
    %1 = arith.cmpi eq, %arg2, %c0_i32 : i32
    %2 = arith.extui %1 : i1 to i32
    %c0_i32_1 = arith.constant 0 : i32
    %3 = arith.cmpi ne, %2, %c0_i32_1 : i32
    scf.if %3 {
      %cst_10 = arith.constant 0.000000e+00 : f32
      %13 = vector.broadcast %cst_10 : f32 to vector<16x128xf32>
      %c0_11 = arith.constant 0 : index
      %c0_12 = arith.constant 0 : index
      %14 = vector.load %arg7[%c0_11, %c0_12] : memref<16x128xf32, #tpu.memory_space<vmem>>, vector<16x128xf32>
      tpu.vector_store %arg7[%c0_11, %c0_12], %13 {strides = array<i32>} : memref<16x128xf32, #tpu.memory_space<vmem>>, vector<16x128xf32>,
    } else {
    }
    %c0_2 = arith.constant 0 : index
    %c0_3 = arith.constant 0 : index
    %4 = vector.load %arg7[%c0_2, %c0_3] : memref<16x128xf32, #tpu.memory_space<vmem>>, vector<16x128xf32>
    %5 = arith.truncf %0 : vector<16x128xf32> to vector<16x128xbf16>
    %c0_4 = arith.constant 0 : index
    %c0_5 = arith.constant 0 : index
    %6 = vector.load %arg4[%c0_4, %c0_5] : memref<128x128xbf16, #tpu.memory_space<vmem>>, vector<128x128xbf16>
    %cst = arith.constant dense<0.000000e+00> : vector<16x128xf32>
    %7 = tpu.matmul %5, %6, %cst {dimension_numbers = #tpu.dot_dimension_numbers<[1], [0], [0], [1], [0, 0, 1, 1], [], []>} : vector<16x128xbf16>, vector<128x128xbf16>, vector<16x128xf32> -> vector<16x128xf32>
    %8 = arith.addf %4, %7 : vector<16x128xf32>
    %c0_6 = arith.constant 0 : index
    %c0_7 = arith.constant 0 : index
    %9 = vector.load %arg7[%c0_6, %c0_7] : memref<16x128xf32, #tpu.memory_space<vmem>>, vector<16x128xf32>
    tpu.vector_store %arg7[%c0_6, %c0_7], %8 {strides = array<i32>} : memref<16x128xf32, #tpu.memory_space<vmem>>, vector<16x128xf32>,
    %c0_i32_8 = arith.constant 0 : i32
    %10 = arith.cmpi eq, %arg2, %c0_i32_8 : i32
    %11 = arith.extui %10 : i1 to i32
    %c0_i32_9 = arith.constant 0 : i32
    %12 = arith.cmpi ne, %11, %c0_i32_9 : i32
    scf.if %12 {
      %c0_10 = arith.constant 0 : index
      %c0_11 = arith.constant 0 : index
      %13 = vector.load %arg7[%c0_10, %c0_11] : memref<16x128xf32, #tpu.memory_space<vmem>>, vector<16x128xf32>
      %c0_12 = arith.constant 0 : index
      %c0_13 = arith.constant 0 : index
      %14 = vector.load %arg5[%c0_12, %c0_13] : memref<1x128xf32, #tpu.memory_space<vmem>>, vector<1x128xf32>
      %15 = vector.broadcast %14 : vector<1x128xf32> to vector<16x128xf32>
      %16 = arith.addf %13, %15 : vector<16x128xf32>
      %17 = arith.negf %16 : vector<16x128xf32>
      %18 = math.exp %17 : vector<16x128xf32>
      %cst_14 = arith.constant 1.000000e+00 : f32
      %19 = vector.broadcast %cst_14 : f32 to vector<16x128xf32>
      %20 = arith.addf %19, %18 : vector<16x128xf32>
      %21 = arith.divf %19, %20 : vector<16x128xf32>
      %c0_15 = arith.constant 0 : index
      %c0_16 = arith.constant 0 : index
      %22 = vector.load %arg6[%c0_15, %c0_16] : memref<16x128xf32, #tpu.memory_space<vmem>>, vector<16x128xf32>
      tpu.vector_store %arg6[%c0_15, %c0_16], %21 {strides = array<i32>} : memref<16x128xf32, #tpu.memory_space<vmem>>, vector<16x128xf32>,
    } else {
    }
    return
  }
  func.func @transform_0(%arg0: i32, %arg1: i32, %arg2: i32) -> (i32, i32) {
    %c0_i32 = arith.constant 0 : i32
    return %arg0, %arg2 : i32, i32
  }
  func.func @transform_1(%arg0: i32, %arg1: i32, %arg2: i32) -> (i32, i32) {
    %c0_i32 = arith.constant 0 : i32
    return %arg2, %arg1 : i32, i32
  }
  func.func @transform_2(%arg0: i32, %arg1: i32, %arg2: i32) -> (i32, i32) {
    %c0_i32 = arith.constant 0 : i32
    %c0_i32_0 = arith.constant 0 : i32
    return %c0_i32, %arg1 : i32, i32
  }
  func.func @transform_3(%arg0: i32, %arg1: i32, %arg2: i32) -> (i32, i32) {
    %c0_i32 = arith.constant 0 : i32
    return %arg0, %arg1 : i32, i32
  }
}

</mosaic_0001>

<bundles_post_ra>
// kernel: detr_forward.52
= control target key start
LH: loop header
LB: loop body
LE: loop exit
PB: predicated region body
PF: predicated region fallthrough
CT: control target
= control target key end

     0   :  { %s298_s1 = inlined_call_operand.vmem [shape: bf16[128,128], index: 1, kind: input, shape index: {}]   ;;  %s299_s0 = inlined_call_operand.vmem [shape: f32[32,128], index: 0, kind: input, shape index: {}]   ;;  %s300_s2 = inlined_call_operand.vmem [shape: f32[1,128], index: 2, kind: input, shape index: {}]   ;;  %s301_s3 = inlined_call_operand.vmem [shape: f32[32,128], index: 3, kind: output, shape index: {}]  }
   0x1   :  { %v219_v0 = vld [vmem:[%s298_s1] sm:$0xff]   ;;  %v220_v1 = vld [vmem:[%s298_s1 + $0x8] sm:$0xff]   ;;  %v221_v2 = vld [vmem:[%s298_s1 + $0x10] sm:$0xff]  }
   0x2   :  { %199 = vmatprep.subr.bf16.mxu0 %v219_v0  ;;  %v222_v3 = vld [vmem:[%s298_s1 + $0x18] sm:$0xff]   ;;  %v15_v4 = vld [vmem:[%s299_s0] sm:$0xff]  ;;  %v16_v5 = vld [vmem:[%s299_s0 + $0x8] sm:$0xff] }
   0x3   :  { %200 = vmatpush3.bf16.msra.mxu0 %v219_v0  ;;  %v31_v6 = vpack.c.bf16 %v16_v5, %v15_v4  ;;  %v223_v7 = vld [vmem:[%s298_s1 + $0x20] sm:$0xff]   ;;  %v224_v8 = vld [vmem:[%s298_s1 + $0x28] sm:$0xff]   ;;  %v225_v9 = vld [vmem:[%s298_s1 + $0x30] sm:$0xff]  }
   0x4   :  { %201 = vmatprep.subr.bf16.mxu0 %v220_v1  ;;  %v226_v10 = vld [vmem:[%s298_s1 + $0x38] sm:$0xff]   ;;  %v17_v11 = vld [vmem:[%s299_s0 + $0x10] sm:$0xff]  ;;  %v188_v14 = vld [vmem:[%s300_s2] ss:$0 sm:$0xff] }
   0x5   :  { %215 = vmatprep.mubr.bf16.mxu0 %v31_v6  ;;  %v18_v12 = vld [vmem:[%s299_s0 + $0x18] sm:$0xff] }
   0x6   :  { %v32_v13 = vpack.c.bf16 %v18_v12, %v17_v11 }
   0x7   :  { %202 = vmatpush3.bf16.msra.mxu0 %v220_v1 }
   0x8   :  { %203 = vmatprep.subr.bf16.mxu0 %v221_v2 }
   0xb   :  { %204 = vmatpush3.bf16.msra.mxu0 %v221_v2 }
   0xc   :  { %205 = vmatprep.subr.bf16.mxu0 %v222_v3 }
   0xf   :  { %206 = vmatpush3.bf16.msra.mxu0 %v222_v3 }
  0x10   :  { %207 = vmatprep.subr.bf16.mxu0 %v223_v7 }
  0x13   :  { %208 = vmatpush3.bf16.msra.mxu0 %v223_v7 }
  0x14   :  { %209 = vmatprep.subr.bf16.mxu0 %v224_v8 }
  0x17   :  { %210 = vmatpush3.bf16.msra.mxu0 %v224_v8 }
  0x18   :  { %211 = vmatprep.subr.bf16.mxu0 %v225_v9 }
  0x1b   :  { %212 = vmatpush3.bf16.msra.mxu0 %v225_v9 }
  0x1c   :  { %213 = vmatprep.subr.bf16.mxu0 %v226_v10 }
  0x1f   :  { %214 = vmatpush3.bf16.msra.mxu0 %v226_v10 }
  0x22   :  { %216 = vmatmul.mubr.bf16.vlgmr.msra.gmra.mrb[0].mxu0 %v32_v13 }
  0xf5   :  { %v217_v15 = vpop.f32.mrb[0].mxu0 }
  0xf6   :  { %v170_v16 = vadd.f32 %v217_v15, %v188_v14  ;;  %v131_v17 = vpop.f32.mrb[1].mxu0 }
  0xf7   :  { %v168_v18 = vadd.f32 %v188_v14, %v131_v17  ;;  %v218_v19 = vpop.f32.mrb[2].mxu0 }
  0xf8   :  { %174 = vst [vmem:[%s301_s3 + $0x10] sm:$0xff] %v170_v16  ;;  %v171_v20 = vadd.f32 %v218_v19, %v188_v14  ;;  %v134_v21 = vpop.f32.mrb[3].mxu0 }
  0xf9   :  { %172 = vst [vmem:[%s301_s3] sm:$0xff] %v168_v18  ;;  %v169_v22 = vadd.f32 %v188_v14, %v134_v21 }
  0xfa   :  { %175 = vst [vmem:[%s301_s3 + $0x18] sm:$0xff] %v171_v20 }
  0xfb   :  { %173 = vst [vmem:[%s301_s3 + $0x8] sm:$0xff] %v169_v22 }

// kernel: detr_forward.51
= control target key start
LH: loop header
LB: loop body
LE: loop exit
PB: predicated region body
PF: predicated region fallthrough
CT: control target
= control target key end

     0   :  { %s302_s1 = inlined_call_operand.vmem [shape: bf16[128,128], index: 1, kind: input, shape index: {}]   ;;  %s303_s0 = inlined_call_operand.vmem [shape: f32[32,128], index: 0, kind: input, shape index: {}]   ;;  %s304_s2 = inlined_call_operand.vmem [shape: f32[1,128], index: 2, kind: input, shape index: {}]   ;;  %s305_s3 = inlined_call_operand.vmem [shape: f32[32,128], index: 3, kind: output, shape index: {}]  }
   0x1   :  { %v223_v0 = vld [vmem:[%s302_s1] sm:$0xff]   ;;  %v224_v1 = vld [vmem:[%s302_s1 + $0x8] sm:$0xff]   ;;  %v225_v2 = vld [vmem:[%s302_s1 + $0x10] sm:$0xff]  }
   0x2   :  { %203 = vmatprep.subr.bf16.mxu0 %v223_v0  ;;  %v226_v3 = vld [vmem:[%s302_s1 + $0x18] sm:$0xff]   ;;  %v15_v4 = vld [vmem:[%s303_s0] sm:$0xff]  ;;  %v16_v5 = vld [vmem:[%s303_s0 + $0x8] sm:$0xff] }
   0x3   :  { %204 = vmatpush3.bf16.msra.mxu0 %v223_v0  ;;  %v31_v6 = vpack.c.bf16 %v16_v5, %v15_v4  ;;  %v227_v7 = vld [vmem:[%s302_s1 + $0x20] sm:$0xff]   ;;  %v228_v8 = vld [vmem:[%s302_s1 + $0x28] sm:$0xff]   ;;  %v229_v9 = vld [vmem:[%s302_s1 + $0x30] sm:$0xff]  }
   0x4   :  { %205 = vmatprep.subr.bf16.mxu0 %v224_v1  ;;  %v230_v10 = vld [vmem:[%s302_s1 + $0x38] sm:$0xff]   ;;  %v17_v11 = vld [vmem:[%s303_s0 + $0x10] sm:$0xff]  ;;  %v192_v14 = vld [vmem:[%s304_s2] ss:$0 sm:$0xff] }
   0x5   :  { %219 = vmatprep.mubr.bf16.mxu0 %v31_v6  ;;  %v18_v12 = vld [vmem:[%s303_s0 + $0x18] sm:$0xff] }
   0x6   :  { %v32_v13 = vpack.c.bf16 %v18_v12, %v17_v11 }
   0x7   :  { %206 = vmatpush3.bf16.msra.mxu0 %v224_v1 }
   0x8   :  { %207 = vmatprep.subr.bf16.mxu0 %v225_v2 }
   0xb   :  { %208 = vmatpush3.bf16.msra.mxu0 %v225_v2 }
   0xc   :  { %209 = vmatprep.subr.bf16.mxu0 %v226_v3 }
   0xf   :  { %210 = vmatpush3.bf16.msra.mxu0 %v226_v3 }
  0x10   :  { %211 = vmatprep.subr.bf16.mxu0 %v227_v7 }
  0x13   :  { %212 = vmatpush3.bf16.msra.mxu0 %v227_v7 }
  0x14   :  { %213 = vmatprep.subr.bf16.mxu0 %v228_v8 }
  0x17   :  { %214 = vmatpush3.bf16.msra.mxu0 %v228_v8 }
  0x18   :  { %215 = vmatprep.subr.bf16.mxu0 %v229_v9 }
  0x1b   :  { %216 = vmatpush3.bf16.msra.mxu0 %v229_v9 }
  0x1c   :  { %217 = vmatprep.subr.bf16.mxu0 %v230_v10 }
  0x1f   :  { %218 = vmatpush3.bf16.msra.mxu0 %v230_v10 }
  0x22   :  { %220 = vmatmul.mubr.bf16.vlgmr.msra.gmra.mrb[0].mxu0 %v32_v13 }
  0xf5   :  { %v221_v15 = vpop.f32.mrb[0].mxu0 }
  0xf6   :  { %v170_v16 = vadd.f32 %v221_v15, %v192_v14  ;;  %v131_v17 = vpop.f32.mrb[1].mxu0 }
  0xf7   :  { %v168_v18 = vadd.f32 %v192_v14, %v131_v17  ;;  %v222_v19 = vpop.f32.mrb[2].mxu0 }
  0xf8   :  { %v174_v20 = vmax.f32 %v170_v16, 0.0  ;;  %v171_v21 = vadd.f32 %v222_v19, %v192_v14  ;;  %v134_v22 = vpop.f32.mrb[3].mxu0 }
  0xf9   :  { %v172_v23 = vmax.f32 %v168_v18, 0.0  ;;  %v169_v24 = vadd.f32 %v192_v14, %v134_v22 }
  0xfa   :  { %178 = vst [vmem:[%s305_s3 + $0x10] sm:$0xff] %v174_v20  ;;  %v175_v25 = vmax.f32 %v171_v21, 0.0 }
  0xfb   :  { %176 = vst [vmem:[%s305_s3] sm:$0xff] %v172_v23  ;;  %v173_v26 = vmax.f32 %v169_v24, 0.0 }
  0xfc   :  { %179 = vst [vmem:[%s305_s3 + $0x18] sm:$0xff] %v175_v25 }
  0xfd   :  { %177 = vst [vmem:[%s305_s3 + $0x8] sm:$0xff] %v173_v26 }

// kernel: detr_forward.53
= control target key start
LH: loop header
LB: loop body
LE: loop exit
PB: predicated region body
PF: predicated region fallthrough
CT: control target
= control target key end

     0   :  { %s326_s2 = inlined_call_operand.vmem [shape: bf16[128,128], index: 2, kind: input, shape index: {}]   ;;  %s327_s0 = inlined_call_operand.vmem [shape: f32[32,128], index: 0, kind: input, shape index: {}]   ;;  %s328_s1 = inlined_call_operand.vmem [shape: f32[32,128], index: 1, kind: input, shape index: {}]   ;;  %s329_s3 = inlined_call_operand.vmem [shape: f32[1,128], index: 3, kind: input, shape index: {}]   ;;  %s330_s4 = inlined_call_operand.vmem [shape: f32[32,128], index: 4, kind: output, shape index: {}]  }
   0x1   :  { %v230_v0 = vld [vmem:[%s326_s2] sm:$0xff]   ;;  %v231_v1 = vld [vmem:[%s326_s2 + $0x8] sm:$0xff]   ;;  %v232_v2 = vld [vmem:[%s326_s2 + $0x10] sm:$0xff]  }
   0x2   :  { %210 = vmatprep.subr.bf16.mxu0 %v230_v0  ;;  %v233_v3 = vld [vmem:[%s326_s2 + $0x18] sm:$0xff]   ;;  %v18_v4 = vld [vmem:[%s327_s0] sm:$0xff]  ;;  %v19_v5 = vld [vmem:[%s327_s0 + $0x8] sm:$0xff] }
   0x3   :  { %211 = vmatpush3.bf16.msra.mxu0 %v230_v0  ;;  %v22_v6 = vld [vmem:[%s328_s1] sm:$0xff]  ;;  %v23_v7 = vld [vmem:[%s328_s1 + $0x8] sm:$0xff]  ;;  %v236_v13 = vld [vmem:[%s326_s2 + $0x30] sm:$0xff]  }
   0x4   :  { %212 = vmatprep.subr.bf16.mxu0 %v231_v1  ;;  %v26_v8 = vadd.f32 %v22_v6, %v18_v4  ;;  %v27_v9 = vadd.f32 %v23_v7, %v19_v5  ;;  %v234_v10 = vld [vmem:[%s326_s2 + $0x20] sm:$0xff]   ;;  %v235_v12 = vld [vmem:[%s326_s2 + $0x28] sm:$0xff]   ;;  %v20_v14 = vld [vmem:[%s327_s0 + $0x10] sm:$0xff] }
   0x5   :  { %v21_v15 = vld [vmem:[%s327_s0 + $0x18] sm:$0xff]  ;;  %v24_v16 = vld [vmem:[%s328_s1 + $0x10] sm:$0xff]  ;;  %v199_v22 = vld [vmem:[%s329_s3] ss:$0 sm:$0xff] }
   0x6   :  { %v42_v11 = vpack.c.bf16 %v27_v9, %v26_v8  ;;  %v25_v17 = vld [vmem:[%s328_s1 + $0x18] sm:$0xff]  ;;  %v28_v19 = vadd.f32 %v24_v16, %v20_v14 }
   0x7   :  { %213 = vmatpush3.bf16.msra.mxu0 %v231_v1  ;;  %v237_v18 = vld [vmem:[%s326_s2 + $0x38] sm:$0xff]   ;;  %v29_v20 = vadd.f32 %v25_v17, %v21_v15 }
   0x8   :  { %214 = vmatprep.subr.bf16.mxu0 %v232_v2  ;;  %226 = vmatprep.mubr.bf16.mxu0 %v42_v11 }
   0x9   :  { %v43_v21 = vpack.c.bf16 %v29_v20, %v28_v19 }
   0xb   :  { %215 = vmatpush3.bf16.msra.mxu0 %v232_v2 }
   0xc   :  { %216 = vmatprep.subr.bf16.mxu0 %v233_v3 }
   0xf   :  { %217 = vmatpush3.bf16.msra.mxu0 %v233_v3 }
  0x10   :  { %218 = vmatprep.subr.bf16.mxu0 %v234_v10 }
  0x13   :  { %219 = vmatpush3.bf16.msra.mxu0 %v234_v10 }
  0x14   :  { %220 = vmatprep.subr.bf16.mxu0 %v235_v12 }
  0x17   :  { %221 = vmatpush3.bf16.msra.mxu0 %v235_v12 }
  0x18   :  { %222 = vmatprep.subr.bf16.mxu0 %v236_v13 }
  0x1b   :  { %223 = vmatpush3.bf16.msra.mxu0 %v236_v13 }
  0x1c   :  { %224 = vmatprep.subr.bf16.mxu0 %v237_v18 }
  0x1f   :  { %225 = vmatpush3.bf16.msra.mxu0 %v237_v18 }
  0x22   :  { %227 = vmatmul.mubr.bf16.vlgmr.msra.gmra.mrb[0].mxu0 %v43_v21 }
  0xf5   :  { %v228_v23 = vpop.f32.mrb[0].mxu0 }
  0xf6   :  { %v181_v24 = vadd.f32 %v228_v23, %v199_v22  ;;  %v142_v25 = vpop.f32.mrb[1].mxu0 }
  0xf7   :  { %v179_v26 = vadd.f32 %v199_v22, %v142_v25  ;;  %v229_v27 = vpop.f32.mrb[2].mxu0 }
  0xf8   :  { %185 = vst [vmem:[%s330_s4 + $0x10] sm:$0xff] %v181_v24  ;;  %v182_v28 = vadd.f32 %v229_v27, %v199_v22  ;;  %v145_v29 = vpop.f32.mrb[3].mxu0 }
  0xf9   :  { %183 = vst [vmem:[%s330_s4] sm:$0xff] %v179_v26  ;;  %v180_v30 = vadd.f32 %v199_v22, %v145_v29 }
  0xfa   :  { %186 = vst [vmem:[%s330_s4 + $0x18] sm:$0xff] %v182_v28 }
  0xfb   :  { %184 = vst [vmem:[%s330_s4 + $0x8] sm:$0xff] %v180_v30 }

// kernel: detr_forward.57
= control target key start
LH: loop header
LB: loop body
LE: loop exit
PB: predicated region body
PF: predicated region fallthrough
CT: control target
= control target key end

     0   :  { %vm29_vm0 = vcmask 261120   ;;  %s202_s0 = inlined_call_operand.vmem [shape: f32[32,32], index: 0, kind: input, shape index: {}]   ;;  %s203_s1 = inlined_call_operand.vmem [shape: f32[32,32], index: 1, kind: input, shape index: {}]   ;;  %s204_s2 = inlined_call_operand.vmem [shape: f32[1,32], index: 2, kind: input, shape index: {}]   ;;  %s205_s3 = inlined_call_operand.vmem [shape: f32[1,32], index: 3, kind: input, shape index: {}]   ;;  %s206_s4 = inlined_call_operand.vmem [shape: f32[32,32], index: 4, kind: output, shape index: {}]  }
   0x1   :  { %v17_v0 = vld [vmem:[%s202_s0] sm:$0xff]  ;;  %v19_v2 = vld [vmem:[%s202_s0 + $0x10] sm:$0xff]  ;;  %v18_v5 = vld [vmem:[%s202_s0 + $0x8] sm:$0xff] }
   0x2   :  { %v21_v1 = vld [vmem:[%s203_s1] sm:$0xff]  ;;  %v23_v4 = vld [vmem:[%s203_s1 + $0x10] sm:$0xff]  ;;  %v22_v6 = vld [vmem:[%s203_s1 + $0x8] sm:$0xff] }
   0x3   :  { %v25_v3 = vadd.f32 %v21_v1, %v17_v0  ;;  %v27_v7 = vadd.f32 %v23_v4, %v19_v2  ;;  %v26_v8 = vadd.f32 %v22_v6, %v18_v5  ;;  %v20_v9 = vld [vmem:[%s202_s0 + $0x18] sm:$0xff]  ;;  %v113_v49 = vld [vmem:[%s204_s2] ss:$0 sm:$0xff] }
   0x4   :  { %v24_v10 = vld [vmem:[%s203_s1 + $0x18] sm:$0xff]  ;;  %v114_v51 = vld [vmem:[%s205_s3] ss:$0 sm:$0xff] }
   0x5   :  { %v30_v11 = vsel %vm29_vm0, %v25_v3, 0.0  ;;  %v28_v12 = vadd.f32 %v24_v10, %v20_v9  ;;  %v36_v13 = vsel %vm29_vm0, %v27_v7, 0.0  ;;  %v33_v14 = vsel %vm29_vm0, %v26_v8, 0.0 }
   0x6   :  { %31 = vadd.xlane.f32.xlu0 %v30_v11  ;;  %37 = vadd.xlane.f32.xlu1 %v36_v13 }
   0x7   :  { %v39_v15 = vsel %vm29_vm0, %v28_v12, 0.0 }
   0xa   :  { %34 = vadd.xlane.f32.xlu0 %v33_v14  ;;  %40 = vadd.xlane.f32.xlu1 %v39_v15 }
  0x93   :  { %v32_v16 = vpop.xlane.xlu0 %31  ;;  %v38_v18 = vpop.xlane.xlu1 %37 }
  0x94   :  { %v43_v17 = vmul.f32 0.03125, %v32_v16  ;;  %v45_v19 = vmul.f32 0.03125, %v38_v18 }
  0x96   :  { %v47_v20 = vsub.f32 %v25_v3, %v43_v17  ;;  %v49_v21 = vsub.f32 %v27_v7, %v45_v19 }
  0x97   :  { %v35_v22 = vpop.xlane.xlu0 %34  ;;  %v41_v24 = vpop.xlane.xlu1 %40 }
  0x98   :  { %v44_v23 = vmul.f32 0.03125, %v35_v22  ;;  %v51_v25 = vmul.f32 %v47_v20, %v47_v20  ;;  %v46_v26 = vmul.f32 0.03125, %v41_v24  ;;  %v53_v27 = vmul.f32 %v49_v21, %v49_v21 }
  0x9a   :  { %v48_v28 = vsub.f32 %v26_v8, %v44_v23  ;;  %v55_v29 = vsel %vm29_vm0, %v51_v25, 0.0  ;;  %v50_v30 = vsub.f32 %v28_v12, %v46_v26  ;;  %v61_v31 = vsel %vm29_vm0, %v53_v27, 0.0 }
  0x9b   :  { %56 = vadd.xlane.f32.xlu0 %v55_v29 }
  0x9c   :  { %v52_v32 = vmul.f32 %v48_v28, %v48_v28  ;;  %v54_v33 = vmul.f32 %v50_v30, %v50_v30 }
  0x9e   :  { %v58_v34 = vsel %vm29_vm0, %v52_v32, 0.0  ;;  %v64_v35 = vsel %vm29_vm0, %v54_v33, 0.0 }
  0x9f   :  { %62 = vadd.xlane.f32.xlu0 %v61_v31  ;;  %59 = vadd.xlane.f32.xlu1 %v58_v34 }
  0xa3   :  { %65 = vadd.xlane.f32.xlu1 %v64_v35 }
 0x128   :  { %v57_v36 = vpop.xlane.xlu0 %56 }
 0x129   :  { %v67_v37 = vmul.f32 0.03125, %v57_v36 }
 0x12b   :  { %v71_v38 = vadd.f32 1e-05, %v67_v37 }
 0x12c   :  { %v60_v39 = vpop.xlane.xlu1 %59  ;;  %v63_v40 = vpop.xlane.xlu0 %62 }
 0x12d   :  { %115 = vrsqrt.f32 %v71_v38  ;;  %v68_v41 = vmul.f32 0.03125, %v60_v39  ;;  %v69_v42 = vmul.f32 0.03125, %v63_v40 }
 0x12f   :  { %v72_v43 = vadd.f32 1e-05, %v68_v41  ;;  %v73_v44 = vadd.f32 1e-05, %v69_v42 }
 0x130   :  { %v66_v45 = vpop.xlane.xlu1 %65 }
 0x131   :  { %117 = vrsqrt.f32 %v72_v43  ;;  %v70_v46 = vmul.f32 0.03125, %v66_v45 }
 0x132   :  { %119 = vrsqrt.f32 %v73_v44 }
 0x133   :  { %v74_v47 = vadd.f32 1e-05, %v70_v46 }
 0x135   :  { %121 = vrsqrt.f32 %v74_v47 }
 0x137   :  { %v116_v48 = vpop.eup %115 }
 0x138   :  { %v79_v50 = vmul.f32 %v116_v48, %v47_v20 }
 0x13a   :  { %v90_v52 = vmul.f32 %v113_v49, %v79_v50 }
 0x13b   :  { %v118_v53 = vpop.eup %117 }
 0x13c   :  { %v120_v54 = vpop.eup %119  ;;  %v101_v55 = vadd.f32 %v114_v51, %v90_v52  ;;  %v80_v56 = vmul.f32 %v118_v53, %v48_v28 }
 0x13d   :  { %v81_v57 = vmul.f32 %v120_v54, %v49_v21 }
 0x13e   :  { %105 = vst.msk [vmem:[%s206_s4] sm:$0xff] %vm29_vm0, %v101_v55  ;;  %v91_v58 = vmul.f32 %v113_v49, %v80_v56 }
 0x13f   :  { %v122_v59 = vpop.eup %121  ;;  %v92_v60 = vmul.f32 %v113_v49, %v81_v57 }
 0x140   :  { %v102_v61 = vadd.f32 %v114_v51, %v91_v58  ;;  %v82_v62 = vmul.f32 %v122_v59, %v50_v30 }
 0x141   :  { %v103_v63 = vadd.f32 %v114_v51, %v92_v60 }
 0x142   :  { %106 = vst.msk [vmem:[%s206_s4 + $0x8] sm:$0xff] %vm29_vm0, %v102_v61  ;;  %v93_v0 = vmul.f32 %v113_v49, %v82_v62 }
 0x143   :  { %107 = vst.msk [vmem:[%s206_s4 + $0x10] sm:$0xff] %vm29_vm0, %v103_v63 }
 0x144   :  { %v104_v1 = vadd.f32 %v114_v51, %v93_v0 }
 0x146   :  { %108 = vst.msk [vmem:[%s206_s4 + $0x18] sm:$0xff] %vm29_vm0, %v104_v1 }

// kernel: detr_forward.55
= control target key start
LH: loop header
LB: loop body
LE: loop exit
PB: predicated region body
PF: predicated region fallthrough
CT: control target
= control target key end

     0   :  { %s999_s12 = smov 0   ;;  %s1105_s0 = inlined_call_operand.vmem [shape: f32[2,16,32], index: 0, kind: input, shape index: {}]   ;;  %s1106_s1 = inlined_call_operand.vmem [shape: f32[2,16,32], index: 1, kind: input, shape index: {}]   ;;  %s1107_s2 = inlined_call_operand.vmem [shape: f32[2,16,32], index: 2, kind: input, shape index: {}]   ;;  %s1108_s3 = inlined_call_operand.vmem [shape: f32[2,16,32], index: 3, kind: output, shape index: {}]  }
   0x1 LB: > { %s824_s13 = sadd.s32 4294967295, %s969_s12   ;;  %p828_p0 = scmp.ge.s32.totalorder %s969_s12, 1  ;;  %s969_s12 = sphi %s999_s12, %s13_s12  }
   0x2   : > { %p157_p1 = scmp.lt.s32.totalorder %s969_s12, 3 }
   0x4   : > { %p158_p2 = pnand %p828_p0, %p157_p1 }
   0x5   : > { %p191_p3 = scmp.lt.s32.totalorder (!%p158_p2), %s824_s13, 1  ;;  %v971_v0 = vmov (!%p158_p2), 0.0   ;;  %vm972_vm0 = vmmov (!%p158_p2), 0   ;;  %vm221_vm1 = vcmask (!%p158_p2), 64512   ;;  %vm271_vm2 = vcmask (!%p158_p2), 130048   ;;  %s973_s21 = smov (!%p158_p2), 120  }
   0x6   : > { %161 = sbr.rel (%p158_p2) target bundleno = 1495 (0x5d7), region = 32  ;;  %867 = vmatprep.subr.bf16.mxu0 (!%p158_p2), %v971_v0  ;;  %869 = vmatprep.mubr.msk.bf16.mxu0 (!%p158_p2), %vm972_vm0, %v971_v0  ;;  %s974_s22 = smov (!%p158_p2), 104   ;;  %vm739_vm3 = vcmask (!%p158_p2), 195584   ;;  %vm742_vm4 = vcmask (!%p158_p2), 261120  }
   0x7   : > { %873 = vmatprep.subr.bf16.mxu1 (!%p158_p2), %v971_v0  ;;  %875 = vmatprep.mubr.msk.bf16.mxu1 (!%p158_p2), %vm972_vm0, %v971_v0  ;;  %s975_s26 = smov (!%p158_p2), 112   ;;  %s976_s27 = smov (!%p158_p2), 8  }
   0x8   : > { %s977_s28 = smov (!%p158_p2), 16   ;;  %s978_s29 = smov (!%p158_p2), 24  }
   0xd   : > { %s1110_s13 = smov (!%p191_p3, %s824_s13), 1 }
   0xe   : > { %s1013_s14 = sshll.u32 %s1110_s13, 4 }
   0xf   : > { %s200_s17 = scalar_lea.vmem %s1106_s1, %s1013_s14  ;;  %s195_s20 = scalar_lea.vmem %s1105_s0, %s1013_s14 }
  0x10   : > { %v214_v1 = vld [vmem:[%s200_s17] sm:$0xff]  ;;  %v215_v2 = vld [vmem:[%s200_s17 + $0x8] sm:$0xff]  ;;  %s205_s25 = scalar_lea.vmem %s1107_s2, %s1013_s14  ;;  %s210_s5 = scalar_lea.vmem %s1108_s3, %s1013_s14 }
  0x11   : > { %v219_v3 = vpack.c.bf16 %v215_v2, %v214_v1  ;;  %v212_v5 = vld [vmem:[%s195_s20] sm:$0xff]  ;;  %v213_v6 = vld [vmem:[%s195_s20 + $0x8] sm:$0xff] }
  0x12   : > { %v218_v7 = vpack.c.bf16 %v213_v6, %v212_v5  ;;  %v216_v26 = vld [vmem:[%s205_s25] sm:$0xff]  ;;  %v217_v27 = vld [vmem:[%s205_s25 + $0x8] sm:$0xff] }
  0x13   : > { %v226_v4 = vsel %vm221_vm1, %v219_v3, 0  ;;  %v1038_v28 = vpack.c.bf16 %v217_v27, %v216_v26 }
  0x14   : > { %868 = vmatpush3.bf16.xpose.msra.mxu0 %v226_v4 }
  0x15   : > { %885 = vmatprep.subr.bf16.mxu0 %v971_v0  ;;  %874 = vmatpush3.bf16.msra.mxu1 %v1038_v28 }
  0x16   : > { %879 = vmatprep.subr.bf16.mxu1 %v971_v0 }
  0x1b   : > { %870 = vmatmul.mubr.msk.bf16.vlgmr.msra.gmra.mrb[0].mxu0 %vm221_vm1, %v218_v7 }
  0x1c   : > { %887 = vmatprep.mubr.msk.bf16.mxu0 %vm972_vm0, %v971_v0 }
  0xee   : > { %v262_v8 = vpop.f32.mrb[0].mxu0 }
  0xef   : > { %v269_v9 = vmul.f32 0.35355338, %v262_v8  ;;  %v871_v10 = vpop.f32.mrb[1].mxu0 }
  0xf0   : > { %v265_v11 = vpop.f32.mrb[2].mxu0 }
  0xf1   : > { %v270_v12 = vmul.f32 0.35355338, %v265_v11  ;;  %v872_v13 = vpop.f32.mrb[3].mxu0  ;;  %v272_v14 = vsel %vm271_vm2, %v269_v9, -inf }
  0xf2   : > { %273 = vmax.xlane.f32.xlu0 %v272_v14 }
  0xf3   : > { %v275_v15 = vsel %vm271_vm2, %v270_v12, -inf }
  0xf6   : > { %276 = vmax.xlane.f32.xlu0 %v275_v15 }
 0x10c   : > { %343 = vrot.lane.b32.xlu0 %v219_v3, %s973_s21 }
 0x110   : > { %590 = vrot.lane.b32.xlu0 %v219_v3, %s974_s22 }
 0x17f   : > { %v274_v16 = vpop.xlane.xlu0 %273 }
 0x180   : > { %v278_v17 = vsub.f32 %v269_v9, %v274_v16 }
 0x182   : > { %v280_v18 = vmul.f32 1.442695, %v278_v17 }
 0x183   : > { %v277_v19 = vpop.xlane.xlu0 %276 }
 0x184   : > { %931 = vpow2.f32 %v280_v18  ;;  %v279_v20 = vsub.f32 %v270_v12, %v277_v19 }
 0x186   : > { %v282_v21 = vmul.f32 1.442695, %v279_v20 }
 0x187   : > { %v344_v33 = vpop.permute.xlu0 %343 }
 0x188   : > { %933 = vpow2.f32 %v282_v21  ;;  %v349_v37 = vsel %vm221_vm1, %v344_v33, 0 }
 0x18b   : > { %v591_v41 = vpop.permute.xlu0 %590 }
 0x18c   : > { %v596_v43 = vsel %vm221_vm1, %v591_v41, 0 }
 0x18e   : > { %v932_v22 = vpop.eup %931 }
 0x18f   : > { %v284_v23 = vsel %vm271_vm2, %v932_v22, 0.0 }
 0x190   : > { %285 = vadd.xlane.f32.xlu1 %v284_v23 }
 0x192   : > { %v934_v24 = vpop.eup %933 }
 0x193   : > { %v287_v25 = vsel %vm271_vm2, %v934_v24, 0.0 }
 0x194   : > { %288 = vadd.xlane.f32.xlu1 %v287_v25 }
 0x1a5   : > { %340 = vrot.lane.b32.xlu1 %v218_v7, %s973_s21 }
 0x1a9   : > { %467 = vrot.lane.b32.xlu1 %v219_v3, %s975_s26 }
 0x1ad   : > { %465 = vrot.lane.b32.xlu1 %v218_v7, %s975_s26 }
 0x1b1   : > { %588 = vrot.lane.b32.xlu1 %v218_v7, %s974_s22 }
 0x21d   : > { %v286_v29 = vpop.xlane.xlu1 %285 }
 0x21e   : > { %935 = vrcp.f32 %v286_v29 }
 0x221   : > { %v289_v30 = vpop.xlane.xlu1 %288 }
 0x222   : > { %937 = vrcp.f32 %v289_v30 }
 0x225   : > { %v341_v36 = vpop.permute.xlu1 %340 }
 0x228   : > { %v936_v31 = vpop.eup %935 }
 0x229   : > { %v292_v34 = vmul.f32 %v936_v31, %v932_v22  ;;  %v468_v39 = vpop.permute.xlu1 %467 }
 0x22a   : > { %v473_v40 = vsel %vm221_vm1, %v468_v39, 0 }
 0x22c   : > { %v938_v32 = vpop.eup %937 }
 0x22d   : > { %v293_v35 = vmul.f32 %v938_v32, %v934_v24  ;;  %v466_v42 = vpop.permute.xlu1 %465 }
 0x22f   : > { %v294_v38 = vpack.c.bf16 %v293_v35, %v292_v34 }
 0x231   : > { %876 = vmatmul.mubr.msk.bf16.vlgmr.msra.gmra.mrb[0].mxu1 %vm271_vm2, %v294_v38  ;;  %v589_v44 = vpop.permute.xlu1 %588 }
 0x232   : > { %880 = vmatpush3.bf16.xpose.msra.mxu1 %v349_v37  ;;  %881 = vmatprep.mubr.msk.bf16.mxu1 %vm972_vm0, %v971_v0 }
 0x233   : > { %891 = vmatprep.subr.bf16.mxu1 %v971_v0 }
 0x239   : > { %882 = vmatmul.mubr.msk.bf16.vlgmr.msra.gmra.mrb[4].mxu1 %vm221_vm1, %v341_v36 }
 0x23a   : > { %892 = vmatpush3.bf16.xpose.msra.mxu1 %v473_v40  ;;  %893 = vmatprep.mubr.msk.bf16.mxu1 %vm972_vm0, %v971_v0 }
 0x23b   : > { %903 = vmatprep.subr.bf16.mxu1 %v971_v0 }
 0x241   : > { %894 = vmatmul.mubr.msk.bf16.vlgmr.msra.gmra.mrb[8].mxu1 %vm221_vm1, %v466_v42 }
 0x242   : > { %904 = vmatpush3.bf16.xpose.msra.mxu1 %v596_v43  ;;  %905 = vmatprep.mubr.msk.bf16.mxu1 %vm972_vm0, %v971_v0 }
 0x249   : > { %906 = vmatmul.mubr.msk.bf16.vlgmr.msra.gmra.mrb[12].mxu1 %vm221_vm1, %v589_v44 }
 0x304   : > { %v1061_v45 = vpop.f32.mrb[0].mxu1 }
 0x305   : > { %v877_v46 = vpop.f32.mrb[1].mxu1 }
 0x306   : > { %v1063_v47 = vpop.f32.mrb[2].mxu1 }
 0x307   : > { %v878_v48 = vpop.f32.mrb[3].mxu1 }
 0x30c   : > { %v385_v49 = vpop.f32.mrb[4].mxu1 }
 0x30d   : > { %v392_v50 = vmul.f32 0.35355338, %v385_v49  ;;  %v883_v51 = vpop.f32.mrb[5].mxu1 }
 0x30e   : > { %v388_v52 = vpop.f32.mrb[6].mxu1 }
 0x30f   : > { %v393_v53 = vmul.f32 0.35355338, %v388_v52  ;;  %v884_v54 = vpop.f32.mrb[7].mxu1  ;;  %v394_v55 = vsel %vm271_vm2, %v392_v50, -inf }
 0x310   : > { %395 = vmax.xlane.f32.xlu0 %v394_v55 }
 0x311   : > { %v397_v56 = vsel %vm271_vm2, %v393_v53, -inf }
 0x312   : > { %398 = vmax.xlane.f32.xlu1 %v397_v56 }
 0x314   : > { %v509_v57 = vpop.f32.mrb[8].mxu1 }
 0x315   : > { %v516_v58 = vmul.f32 0.35355338, %v509_v57  ;;  %v895_v59 = vpop.f32.mrb[9].mxu1 }
 0x316   : > { %v512_v60 = vpop.f32.mrb[10].mxu1 }
 0x317   : > { %v517_v61 = vmul.f32 0.35355338, %v512_v60  ;;  %v896_v62 = vpop.f32.mrb[11].mxu1  ;;  %v518_v63 = vsel %vm271_vm2, %v516_v58, -inf }
 0x318   : > { %519 = vmax.xlane.f32.xlu0 %v518_v63 }
 0x319   : > { %v521_v1 = vsel %vm271_vm2, %v517_v61, -inf }
 0x31c   : > { %522 = vmax.xlane.f32.xlu0 %v521_v1  ;;  %v632_v2 = vpop.f32.mrb[12].mxu1 }
 0x31d   : > { %v639_v3 = vmul.f32 0.35355338, %v632_v2  ;;  %v907_v4 = vpop.f32.mrb[13].mxu1 }
 0x31e   : > { %v635_v5 = vpop.f32.mrb[14].mxu1 }
 0x31f   : > { %v640_v6 = vmul.f32 0.35355338, %v635_v5  ;;  %v641_v7 = vsel %vm271_vm2, %v639_v3, -inf  ;;  %v908_v8 = vpop.f32.mrb[15].mxu1 }
 0x320   : > { %642 = vmax.xlane.f32.xlu0 %v641_v7 }
 0x321   : > { %v644_v9 = vsel %vm271_vm2, %v640_v6, -inf }
 0x322   : > { %645 = vmax.xlane.f32.xlu1 %v644_v9 }
 0x39d   : > { %v396_v10 = vpop.xlane.xlu0 %395 }
 0x39e   : > { %v400_v11 = vsub.f32 %v392_v50, %v396_v10 }
 0x39f   : > { %v399_v12 = vpop.xlane.xlu1 %398 }
 0x3a0   : > { %v402_v13 = vmul.f32 1.442695, %v400_v11  ;;  %v401_v14 = vsub.f32 %v393_v53, %v399_v12 }
 0x3a2   : > { %939 = vpow2.f32 %v402_v13  ;;  %v404_v15 = vmul.f32 1.442695, %v401_v14 }
 0x3a4   : > { %941 = vpow2.f32 %v404_v15 }
 0x3a5   : > { %v520_v16 = vpop.xlane.xlu0 %519 }
 0x3a6   : > { %v524_v17 = vsub.f32 %v516_v58, %v520_v16 }
 0x3a8   : > { %v526_v18 = vmul.f32 1.442695, %v524_v17 }
 0x3a9   : > { %v523_v19 = vpop.xlane.xlu0 %522 }
 0x3aa   : > { %943 = vpow2.f32 %v526_v18  ;;  %v525_v20 = vsub.f32 %v517_v61, %v523_v19 }
 0x3ac   : > { %v940_v21 = vpop.eup %939  ;;  %v528_v22 = vmul.f32 1.442695, %v525_v20 }
 0x3ad   : > { %v643_v23 = vpop.xlane.xlu0 %642  ;;  %v406_v24 = vsel %vm271_vm2, %v940_v21, 0.0 }
 0x3ae   : > { %v942_v25 = vpop.eup %941  ;;  %945 = vpow2.f32 %v528_v22  ;;  %v647_v26 = vsub.f32 %v639_v3, %v643_v23  ;;  %407 = vadd.xlane.f32.xlu0 %v406_v24 }
 0x3af   : > { %v409_v27 = vsel %vm271_vm2, %v942_v25, 0.0  ;;  %v646_v36 = vpop.xlane.xlu1 %645 }
 0x3b0   : > { %v649_v29 = vmul.f32 1.442695, %v647_v26  ;;  %410 = vadd.xlane.f32.xlu1 %v409_v27  ;;  %v648_v37 = vsub.f32 %v640_v6, %v646_v36 }
 0x3b2   : > { %947 = vpow2.f32 %v649_v29  ;;  %v651_v38 = vmul.f32 1.442695, %v648_v37 }
 0x3b4   : > { %v944_v30 = vpop.eup %943  ;;  %949 = vpow2.f32 %v651_v38 }
 0x3b5   : > { %v530_v31 = vsel %vm271_vm2, %v944_v30, 0.0 }
 0x3b6   : > { %531 = vadd.xlane.f32.xlu0 %v530_v31 }
 0x3b8   : > { %v946_v32 = vpop.eup %945 }
 0x3b9   : > { %v533_v33 = vsel %vm271_vm2, %v946_v32, 0.0 }
 0x3ba   : > { %534 = vadd.xlane.f32.xlu1 %v533_v33 }
 0x3bc   : > { %v948_v34 = vpop.eup %947 }
 0x3bd   : > { %v653_v35 = vsel %vm271_vm2, %v948_v34, 0.0 }
 0x3be   : > { %654 = vadd.xlane.f32.xlu0 %v653_v35  ;;  %v950_v39 = vpop.eup %949 }
 0x3bf   : > { %v656_v40 = vsel %vm271_vm2, %v950_v39, 0.0 }
 0x3cb   : > { %541 = vrot.lane.b32.xlu1 %v1038_v28, %s975_s26 }
 0x3d4   : > { %418 = vrot.lane.b32.xlu0 %v1038_v28, %s973_s21 }
 0x3ef   : > { %657 = vadd.xlane.f32.xlu1 %v656_v40 }
 0x400   : > { %664 = vrot.lane.b32.xlu1 %v1038_v28, %s974_s22 }
 0x43b   : > { %v408_v42 = vpop.xlane.xlu0 %407 }
 0x43d   : > { %v411_v41 = vpop.xlane.xlu1 %410 }
 0x43e   : > { %951 = vrcp.f32 %v411_v41 }
 0x43f   : > { %953 = vrcp.f32 %v408_v42 }
 0x443   : > { %v532_v43 = vpop.xlane.xlu0 %531 }
 0x447   : > { %v535_v44 = vpop.xlane.xlu1 %534 }
 0x448   : > { %955 = vrcp.f32 %v535_v44  ;;  %v952_v46 = vpop.eup %951 }
 0x449   : > { %957 = vrcp.f32 %v532_v43  ;;  %v954_v49 = vpop.eup %953  ;;  %v415_v50 = vmul.f32 %v952_v46, %v942_v25 }
 0x44a   : > { %v414_v51 = vmul.f32 %v954_v49, %v940_v21 }
 0x44b   : > { %v655_v48 = vpop.xlane.xlu0 %654  ;;  %v542_v28 = vpop.permute.xlu1 %541 }
 0x44c   : > { %v416_v53 = vpack.c.bf16 %v415_v50, %v414_v51  ;;  %959 = vrcp.f32 %v655_v48 }
 0x44f   : > { %v419_v52 = vpop.permute.xlu0 %418 }
 0x450   : > { %886 = vmatpush3.bf16.msra.mxu0 %v419_v52 }
 0x451   : > { %897 = vmatprep.subr.bf16.mxu0 %v971_v0 }
 0x452   : > { %v956_v54 = vpop.eup %955 }
 0x453   : > { %888 = vmatmul.mubr.msk.bf16.vlgmr.msra.gmra.mrb[4].mxu0 %vm271_vm2, %v416_v53  ;;  %v958_v55 = vpop.eup %957  ;;  %v539_v56 = vmul.f32 %v956_v54, %v946_v32 }
 0x454   : > { %898 = vmatpush3.bf16.msra.mxu0 %v542_v28  ;;  %899 = vmatprep.mubr.msk.bf16.mxu0 %vm972_vm0, %v971_v0  ;;  %v538_v57 = vmul.f32 %v958_v55, %v944_v30 }
 0x455   : > { %909 = vmatprep.subr.bf16.mxu0 %v971_v0 }
 0x456   : > { %v540_v58 = vpack.c.bf16 %v539_v56, %v538_v57  ;;  %v960_v61 = vpop.eup %959 }
 0x457   : > { %v661_v63 = vmul.f32 %v960_v61, %v948_v34 }
 0x45b   : > { %900 = vmatmul.mubr.msk.bf16.vlgmr.msra.gmra.mrb[8].mxu0 %vm271_vm2, %v540_v58 }
 0x45c   : > { %911 = vmatprep.mubr.msk.bf16.mxu0 %vm972_vm0, %v971_v0 }
 0x47c   : > { %v658_v59 = vpop.xlane.xlu1 %657 }
 0x47d   : > { %961 = vrcp.f32 %v658_v59 }
 0x480   : > { %v665_v60 = vpop.permute.xlu1 %664 }
 0x481   : > { %910 = vmatpush3.bf16.msra.mxu0 %v665_v60 }
 0x487   : > { %v962_v62 = vpop.eup %961 }
 0x488   : > { %v662_v1 = vmul.f32 %v962_v62, %v950_v39 }
 0x48a   : > { %v663_v2 = vpack.c.bf16 %v662_v1, %v661_v63 }
 0x48c   : > { %912 = vmatmul.mubr.msk.bf16.vlgmr.msra.gmra.mrb[12].mxu0 %vm271_vm2, %v663_v2 }
 0x526   : > { %v458_v3 = vpop.f32.mrb[4].mxu0 }
 0x527   : > { %713 = vrot.lane.b32.xlu1 %v458_v3, %s976_s27  ;;  %v889_v4 = vpop.f32.mrb[5].mxu0 }
 0x528   : > { %v461_v5 = vpop.f32.mrb[6].mxu0 }
 0x529   : > { %715 = vrot.lane.b32.xlu0 %v461_v5, %s976_s27  ;;  %v890_v6 = vpop.f32.mrb[7].mxu0 }
 0x52e   : > { %v581_v0 = vpop.f32.mrb[8].mxu0 }
 0x52f   : > { %721 = vrot.lane.b32.xlu1 %v581_v0, %s977_s28  ;;  %v901_v7 = vpop.f32.mrb[9].mxu0 }
 0x530   : > { %v584_v8 = vpop.f32.mrb[10].mxu0 }
 0x531   : > { %723 = vrot.lane.b32.xlu0 %v584_v8, %s977_s28  ;;  %v902_v9 = vpop.f32.mrb[11].mxu0 }
 0x55f   : > { %v704_v10 = vpop.f32.mrb[12].mxu0 }
 0x560   : > { %729 = vrot.lane.b32.xlu1 %v704_v10, %s978_s29  ;;  %v913_v11 = vpop.f32.mrb[13].mxu0 }
 0x561   : > { %v707_v12 = vpop.f32.mrb[14].mxu0 }
 0x562   : > { %731 = vrot.lane.b32.xlu0 %v707_v12, %s978_s29  ;;  %v914_v13 = vpop.f32.mrb[15].mxu0 }
 0x599   : > { %v714_v14 = vpop.permute.xlu1 %713 }
 0x59a   : > { %v735_v18 = vsel %vm221_vm1, %v1061_v45, %v714_v14 }
 0x59b   : > { %v716_v15 = vpop.permute.xlu0 %715 }
 0x59c   : > { %v736_v21 = vsel %vm221_vm1, %v1063_v47, %v716_v15 }
 0x5a1   : > { %v722_v16 = vpop.permute.xlu1 %721 }
 0x5a2   : > { %v737_v19 = vsel %vm271_vm2, %v735_v18, %v722_v16 }
 0x5a3   : > { %v724_v17 = vpop.permute.xlu0 %723 }
 0x5a4   : > { %v738_v23 = vsel %vm271_vm2, %v736_v21, %v724_v17 }
 0x5d2   : > { %v730_v20 = vpop.permute.xlu1 %729 }
 0x5d3   : > { %v740_v22 = vsel %vm739_vm3, %v737_v19, %v730_v20 }
 0x5d4   : > { %743 = vst.msk [vmem:[%s210_s5] sm:$0xff] %vm742_vm4, %v740_v22  ;;  %v732_v24 = vpop.permute.xlu0 %731 }
 0x5d5   : > { %v741_v25 = vsel %vm739_vm3, %v738_v23, %v732_v24 }
 0x5d6   : > { %744 = vst.msk [vmem:[%s210_s5 + $0x8] sm:$0xff] %vm742_vm4, %v741_v25 }
 0x5d7 PF: > { %s13_s12 = sadd.s32 1, %s969_s12  }
 0x5d8   : > { %p10_p4 = scmp.ge.s32.totalorder %s13_s12, 4  }
 0x5da   :  { %12 = sbr.rel (!%p10_p4) target bundleno = 1 (0x1), region = 68 }

// kernel: detr_forward.70
= control target key start
LH: loop header
LB: loop body
LE: loop exit
PB: predicated region body
PF: predicated region fallthrough
CT: control target
= control target key end

     0   :  { %v203_v0 = vmov 0.0   ;;  %vm204_vm0 = vmmov 0   ;;  %s264_s1 = inlined_call_operand.vmem [shape: bf16[128,128], index: 1, kind: input, shape index: {}]   ;;  %s265_s0 = inlined_call_operand.vmem [shape: f32[16,128], index: 0, kind: input, shape index: {}]   ;;  %s266_s2 = inlined_call_operand.vmem [shape: f32[1,128], index: 2, kind: input, shape index: {}]   ;;  %s267_s3 = inlined_call_operand.vmem [shape: f32[16,128], index: 3, kind: output, shape index: {}]  }
   0x1   :  { %173 = vmatprep.subr.bf16.mxu0 %v203_v0  ;;  %v195_v1 = vld [vmem:[%s264_s1] sm:$0xff]   ;;  %189 = vmatprep.mubr.msk.bf16.mxu0 %vm204_vm0, %v203_v0  ;;  %v196_v2 = vld [vmem:[%s264_s1 + $0x8] sm:$0xff]   ;;  %v197_v3 = vld [vmem:[%s264_s1 + $0x10] sm:$0xff]  }
   0x2   :  { %174 = vmatpush3.bf16.msra.mxu0 %v195_v1  ;;  %v198_v4 = vld [vmem:[%s264_s1 + $0x18] sm:$0xff]   ;;  %v199_v5 = vld [vmem:[%s264_s1 + $0x20] sm:$0xff]   ;;  %v200_v6 = vld [vmem:[%s264_s1 + $0x28] sm:$0xff]  }
   0x3   :  { %175 = vmatprep.subr.bf16.mxu0 %v203_v0  ;;  %v201_v7 = vld [vmem:[%s264_s1 + $0x30] sm:$0xff]   ;;  %v202_v8 = vld [vmem:[%s264_s1 + $0x38] sm:$0xff]   ;;  %v15_v9 = vld [vmem:[%s265_s0] sm:$0xff] }
   0x4   :  { %v16_v10 = vld [vmem:[%s265_s0 + $0x8] sm:$0xff]  ;;  %v163_v12 = vld [vmem:[%s266_s2] ss:$0 sm:$0xff] }
   0x5   :  { %v25_v11 = vpack.c.bf16 %v16_v10, %v15_v9 }
   0x6   :  { %176 = vmatpush3.bf16.msra.mxu0 %v196_v2 }
   0x7   :  { %177 = vmatprep.subr.bf16.mxu0 %v203_v0 }
   0xa   :  { %178 = vmatpush3.bf16.msra.mxu0 %v197_v3 }
   0xb   :  { %179 = vmatprep.subr.bf16.mxu0 %v203_v0 }
   0xe   :  { %180 = vmatpush3.bf16.msra.mxu0 %v198_v4 }
   0xf   :  { %181 = vmatprep.subr.bf16.mxu0 %v203_v0 }
  0x12   :  { %182 = vmatpush3.bf16.msra.mxu0 %v199_v5 }
  0x13   :  { %183 = vmatprep.subr.bf16.mxu0 %v203_v0 }
  0x16   :  { %184 = vmatpush3.bf16.msra.mxu0 %v200_v6 }
  0x17   :  { %185 = vmatprep.subr.bf16.mxu0 %v203_v0 }
  0x1a   :  { %186 = vmatpush3.bf16.msra.mxu0 %v201_v7 }
  0x1b   :  { %187 = vmatprep.subr.bf16.mxu0 %v203_v0 }
  0x1e   :  { %188 = vmatpush3.bf16.msra.mxu0 %v202_v8 }
  0x21   :  { %190 = vmatmul.mubr.bf16.vlgmr.msra.gmra.mrb[0].mxu0 %v25_v11 }
  0xf4   :  { %v124_v13 = vpop.f32.mrb[0].mxu0 }
  0xf5   :  { %v147_v14 = vadd.f32 %v163_v12, %v124_v13  ;;  %v191_v15 = vpop.f32.mrb[1].mxu0 }
  0xf6   :  { %v127_v16 = vpop.f32.mrb[2].mxu0 }
  0xf7   :  { %149 = vst [vmem:[%s267_s3] sm:$0xff] %v147_v14  ;;  %v148_v17 = vadd.f32 %v163_v12, %v127_v16  ;;  %v192_v18 = vpop.f32.mrb[3].mxu0 }
  0xf9   :  { %150 = vst [vmem:[%s267_s3 + $0x8] sm:$0xff] %v148_v17 }

// kernel: detr_forward.69
= control target key start
LH: loop header
LB: loop body
LE: loop exit
PB: predicated region body
PF: predicated region fallthrough
CT: control target
= control target key end

     0   :  { %v210_v0 = vmov 0.0   ;;  %vm211_vm0 = vmmov 0   ;;  %s282_s2 = inlined_call_operand.vmem [shape: bf16[128,128], index: 2, kind: input, shape index: {}]   ;;  %s283_s0 = inlined_call_operand.vmem [shape: f32[16,128], index: 0, kind: input, shape index: {}]   ;;  %s284_s1 = inlined_call_operand.vmem [shape: f32[16,128], index: 1, kind: input, shape index: {}]   ;;  %s285_s3 = inlined_call_operand.vmem [shape: f32[1,128], index: 3, kind: input, shape index: {}]   ;;  %s286_s4 = inlined_call_operand.vmem [shape: f32[16,128], index: 4, kind: output, shape index: {}]  }
   0x1   :  { %180 = vmatprep.subr.bf16.mxu0 %v210_v0  ;;  %v202_v1 = vld [vmem:[%s282_s2] sm:$0xff]   ;;  %196 = vmatprep.mubr.msk.bf16.mxu0 %vm211_vm0, %v210_v0  ;;  %v203_v2 = vld [vmem:[%s282_s2 + $0x8] sm:$0xff]   ;;  %v204_v3 = vld [vmem:[%s282_s2 + $0x10] sm:$0xff]  }
   0x2   :  { %181 = vmatpush3.bf16.msra.mxu0 %v202_v1  ;;  %v205_v4 = vld [vmem:[%s282_s2 + $0x18] sm:$0xff]   ;;  %v206_v5 = vld [vmem:[%s282_s2 + $0x20] sm:$0xff]   ;;  %v207_v6 = vld [vmem:[%s282_s2 + $0x28] sm:$0xff]  }
   0x3   :  { %182 = vmatprep.subr.bf16.mxu0 %v210_v0  ;;  %v208_v7 = vld [vmem:[%s282_s2 + $0x30] sm:$0xff]   ;;  %v18_v8 = vld [vmem:[%s283_s0] sm:$0xff]  ;;  %v19_v9 = vld [vmem:[%s283_s0 + $0x8] sm:$0xff] }
   0x4   :  { %v20_v10 = vld [vmem:[%s284_s1] sm:$0xff]  ;;  %v21_v11 = vld [vmem:[%s284_s1 + $0x8] sm:$0xff]  ;;  %v209_v14 = vld [vmem:[%s282_s2 + $0x38] sm:$0xff]  }
   0x5   :  { %v22_v12 = vadd.f32 %v20_v10, %v18_v8  ;;  %v23_v13 = vadd.f32 %v21_v11, %v19_v9  ;;  %v170_v16 = vld [vmem:[%s285_s3] ss:$0 sm:$0xff] }
   0x6   :  { %183 = vmatpush3.bf16.msra.mxu0 %v203_v2 }
   0x7   :  { %184 = vmatprep.subr.bf16.mxu0 %v210_v0  ;;  %v32_v15 = vpack.c.bf16 %v23_v13, %v22_v12 }
   0xa   :  { %185 = vmatpush3.bf16.msra.mxu0 %v204_v3 }
   0xb   :  { %186 = vmatprep.subr.bf16.mxu0 %v210_v0 }
   0xe   :  { %187 = vmatpush3.bf16.msra.mxu0 %v205_v4 }
   0xf   :  { %188 = vmatprep.subr.bf16.mxu0 %v210_v0 }
  0x12   :  { %189 = vmatpush3.bf16.msra.mxu0 %v206_v5 }
  0x13   :  { %190 = vmatprep.subr.bf16.mxu0 %v210_v0 }
  0x16   :  { %191 = vmatpush3.bf16.msra.mxu0 %v207_v6 }
  0x17   :  { %192 = vmatprep.subr.bf16.mxu0 %v210_v0 }
  0x1a   :  { %193 = vmatpush3.bf16.msra.mxu0 %v208_v7 }
  0x1b   :  { %194 = vmatprep.subr.bf16.mxu0 %v210_v0 }
  0x1e   :  { %195 = vmatpush3.bf16.msra.mxu0 %v209_v14 }
  0x21   :  { %197 = vmatmul.mubr.bf16.vlgmr.msra.gmra.mrb[0].mxu0 %v32_v15 }
  0xf4   :  { %v131_v17 = vpop.f32.mrb[0].mxu0 }
  0xf5   :  { %v154_v18 = vadd.f32 %v170_v16, %v131_v17  ;;  %v198_v19 = vpop.f32.mrb[1].mxu0 }
  0xf6   :  { %v134_v20 = vpop.f32.mrb[2].mxu0 }
  0xf7   :  { %156 = vst [vmem:[%s286_s4] sm:$0xff] %v154_v18  ;;  %v155_v21 = vadd.f32 %v170_v16, %v134_v20  ;;  %v199_v22 = vpop.f32.mrb[3].mxu0 }
  0xf9   :  { %157 = vst [vmem:[%s286_s4 + $0x8] sm:$0xff] %v155_v21 }

// kernel: detr_forward.73
= control target key start
LH: loop header
LB: loop body
LE: loop exit
PB: predicated region body
PF: predicated region fallthrough
CT: control target
= control target key end

     0   :  { %vm23_vm0 = vcmask 261120   ;;  %s136_s0 = inlined_call_operand.vmem [shape: f32[16,32], index: 0, kind: input, shape index: {}]   ;;  %s137_s1 = inlined_call_operand.vmem [shape: f32[16,32], index: 1, kind: input, shape index: {}]   ;;  %s138_s2 = inlined_call_operand.vmem [shape: f32[1,32], index: 2, kind: input, shape index: {}]   ;;  %s139_s3 = inlined_call_operand.vmem [shape: f32[1,32], index: 3, kind: input, shape index: {}]   ;;  %s140_s4 = inlined_call_operand.vmem [shape: f32[16,32], index: 4, kind: output, shape index: {}]  }
   0x1   :  { %v17_v0 = vld [vmem:[%s136_s0] sm:$0xff]  ;;  %v18_v2 = vld [vmem:[%s136_s0 + $0x8] sm:$0xff] }
   0x2   :  { %v19_v1 = vld [vmem:[%s137_s1] sm:$0xff]  ;;  %v20_v4 = vld [vmem:[%s137_s1 + $0x8] sm:$0xff] }
   0x3   :  { %v21_v3 = vadd.f32 %v19_v1, %v17_v0  ;;  %v22_v5 = vadd.f32 %v20_v4, %v18_v2  ;;  %v75_v25 = vld [vmem:[%s138_s2] ss:$0 sm:$0xff] }
   0x4   :  { %v76_v27 = vld [vmem:[%s139_s3] ss:$0 sm:$0xff] }
   0x5   :  { %v24_v6 = vsel %vm23_vm0, %v21_v3, 0.0  ;;  %v27_v7 = vsel %vm23_vm0, %v22_v5, 0.0 }
   0x6   :  { %25 = vadd.xlane.f32.xlu0 %v24_v6 }
   0xa   :  { %28 = vadd.xlane.f32.xlu0 %v27_v7 }
  0x93   :  { %v26_v8 = vpop.xlane.xlu0 %25 }
  0x94   :  { %v31_v9 = vmul.f32 0.03125, %v26_v8 }
  0x96   :  { %v33_v10 = vsub.f32 %v21_v3, %v31_v9 }
  0x97   :  { %v29_v11 = vpop.xlane.xlu0 %28 }
  0x98   :  { %v32_v12 = vmul.f32 0.03125, %v29_v11  ;;  %v35_v13 = vmul.f32 %v33_v10, %v33_v10 }
  0x9a   :  { %v34_v14 = vsub.f32 %v22_v5, %v32_v12  ;;  %v37_v15 = vsel %vm23_vm0, %v35_v13, 0.0 }
  0x9b   :  { %38 = vadd.xlane.f32.xlu1 %v37_v15 }
  0x9c   :  { %v36_v16 = vmul.f32 %v34_v14, %v34_v14 }
  0x9e   :  { %v40_v17 = vsel %vm23_vm0, %v36_v16, 0.0 }
  0x9f   :  { %41 = vadd.xlane.f32.xlu1 %v40_v17 }
 0x128   :  { %v39_v18 = vpop.xlane.xlu1 %38 }
 0x129   :  { %v43_v19 = vmul.f32 0.03125, %v39_v18 }
 0x12b   :  { %v45_v20 = vadd.f32 1e-05, %v43_v19 }
 0x12c   :  { %v42_v21 = vpop.xlane.xlu1 %41 }
 0x12d   :  { %77 = vrsqrt.f32 %v45_v20  ;;  %v44_v22 = vmul.f32 0.03125, %v42_v21 }
 0x12f   :  { %v46_v23 = vadd.f32 1e-05, %v44_v22 }
 0x131   :  { %79 = vrsqrt.f32 %v46_v23 }
 0x137   :  { %v78_v24 = vpop.eup %77 }
 0x138   :  { %v49_v26 = vmul.f32 %v78_v24, %v33_v10 }
 0x13a   :  { %v58_v28 = vmul.f32 %v75_v25, %v49_v26 }
 0x13b   :  { %v80_v29 = vpop.eup %79 }
 0x13c   :  { %v67_v30 = vadd.f32 %v76_v27, %v58_v28  ;;  %v50_v31 = vmul.f32 %v80_v29, %v34_v14 }
 0x13e   :  { %69 = vst.msk [vmem:[%s140_s4] sm:$0xff] %vm23_vm0, %v67_v30  ;;  %v59_v32 = vmul.f32 %v75_v25, %v50_v31 }
 0x140   :  { %v68_v33 = vadd.f32 %v76_v27, %v59_v32 }
 0x142   :  { %70 = vst.msk [vmem:[%s140_s4 + $0x8] sm:$0xff] %vm23_vm0, %v68_v33 }

// kernel: detr_forward.71
= control target key start
LH: loop header
LB: loop body
LE: loop exit
PB: predicated region body
PF: predicated region fallthrough
CT: control target
= control target key end

     0   :  { %s897_s12 = smov 0   ;;  %s993_s0 = inlined_call_operand.vmem [shape: f32[2,8,32], index: 0, kind: input, shape index: {}]   ;;  %s994_s1 = inlined_call_operand.vmem [shape: f32[2,8,32], index: 1, kind: input, shape index: {}]   ;;  %s995_s2 = inlined_call_operand.vmem [shape: f32[2,8,32], index: 2, kind: input, shape index: {}]   ;;  %s996_s3 = inlined_call_operand.vmem [shape: f32[2,8,32], index: 3, kind: output, shape index: {}]  }
   0x1 LB: > { %s746_s13 = sadd.s32 4294967295, %s867_s12   ;;  %p750_p0 = scmp.ge.s32.totalorder %s867_s12, 1  ;;  %s867_s12 = sphi %s897_s12, %s13_s12  }
   0x2   : > { %p154_p1 = scmp.lt.s32.totalorder %s867_s12, 3 }
   0x4   : > { %p155_p2 = pnand %p750_p0, %p154_p1 }
   0x5   : > { %p184_p3 = scmp.lt.s32.totalorder (!%p155_p2), %s746_s13, 1  ;;  %v869_v0 = vmov (!%p155_p2), 0.0   ;;  %vm870_vm0 = vmmov (!%p155_p2), 0   ;;  %vm207_vm1 = vcmask (!%p155_p2), 64512   ;;  %s871_s21 = smov (!%p155_p2), 120   ;;  %vm270_vm2 = vcmask (!%p155_p2), 1043456  }
   0x6   : > { %158 = sbr.rel (%p155_p2) target bundleno = 1477 (0x5c5), region = 32  ;;  %781 = vmatprep.subr.bf16.mxu0 (!%p155_p2), %v869_v0  ;;  %783 = vmatprep.mubr.msk.bf16.mxu0 (!%p155_p2), %vm870_vm0, %v869_v0  ;;  %s872_s22 = smov (!%p155_p2), 112   ;;  %vm663_vm3 = vcmask (!%p155_p2), 130048   ;;  %vm665_vm4 = vcmask (!%p155_p2), 195584   ;;  %vm667_vm5 = vcmask (!%p155_p2), 261120  }
   0x7   : > { %787 = vmatprep.subr.bf16.mxu1 (!%p155_p2), %v869_v0  ;;  %789 = vmatprep.mubr.msk.bf16.mxu1 (!%p155_p2), %vm870_vm0, %v869_v0  ;;  %s873_s23 = smov (!%p155_p2), 104   ;;  %s874_s27 = smov (!%p155_p2), 8  }
   0x8   : > { %s875_s28 = smov (!%p155_p2), 16   ;;  %s876_s29 = smov (!%p155_p2), 24  }
   0xd   : > { %s998_s13 = smov (!%p184_p3, %s746_s13), 1 }
   0xe   : > { %s911_s14 = sshll.u32 %s998_s13, 3 }
   0xf   : > { %s191_s17 = scalar_lea.vmem %s994_s1, %s911_s14  ;;  %s187_s20 = scalar_lea.vmem %s993_s0, %s911_s14 }
  0x10   : > { %v202_v1 = vld [vmem:[%s191_s17] sm:$0xff]  ;;  %s195_s26 = scalar_lea.vmem %s995_s2, %s911_s14  ;;  %s199_s5 = scalar_lea.vmem %s996_s3, %s911_s14 }
  0x11   : > { %v205_v2 = vpack.c.bf16 %v202_v1, %v202_v1  ;;  %v201_v4 = vld [vmem:[%s187_s20] sm:$0xff] }
  0x12   : > { %v204_v5 = vpack.c.bf16 %v201_v4, %v201_v4  ;;  %v203_v17 = vld [vmem:[%s195_s26] sm:$0xff] }
  0x13   : > { %v212_v3 = vsel %vm207_vm1, %v205_v2, 0  ;;  %318 = vrot.lane.b32.xlu1 %v205_v2, %s871_s21  ;;  %v937_v18 = vpack.c.bf16 %v203_v17, %v203_v17 }
  0x14   : > { %782 = vmatpush3.bf16.xpose.msra.mxu0 %v212_v3 }
  0x15   : > { %799 = vmatprep.subr.bf16.mxu0 %v869_v0  ;;  %v272_v19 = vsel %vm270_vm2, %v937_v18, 0 }
  0x16   : > { %788 = vmatpush3.bf16.msra.mxu1 %v272_v19 }
  0x17   : > { %315 = vrot.lane.b32.xlu1 %v204_v5, %s871_s21  ;;  %793 = vmatprep.subr.bf16.mxu1 %v869_v0 }
  0x1b   : > { %784 = vmatmul.mubr.msk.bf16.vlgmr.msra.gmra.mrb[0].mxu0 %vm207_vm1, %v204_v5  ;;  %428 = vrot.lane.b32.xlu1 %v204_v5, %s872_s22 }
  0x1c   : > { %801 = vmatprep.mubr.msk.bf16.mxu0 %vm870_vm0, %v869_v0 }
  0x1f   : > { %541 = vrot.lane.b32.xlu1 %v205_v2, %s873_s23 }
  0x23   : > { %539 = vrot.lane.b32.xlu1 %v204_v5, %s873_s23 }
  0x85   : > { %v319_v22 = vpop.permute.xlu1 %318 }
  0x86   : > { %v324_v24 = vsel %vm207_vm1, %v319_v22, 0 }
  0x89   : > { %v316_v26 = vpop.permute.xlu1 %315 }
  0x8d   : > { %v429_v28 = vpop.permute.xlu1 %428 }
  0x91   : > { %v542_v30 = vpop.permute.xlu1 %541 }
  0x92   : > { %v547_v31 = vsel %vm207_vm1, %v542_v30, 0 }
  0x95   : > { %v540_v32 = vpop.permute.xlu1 %539 }
  0xee   : > { %v248_v6 = vpop.f32.mrb[0].mxu0 }
  0xef   : > { %v254_v7 = vmul.f32 0.35355338, %v248_v6  ;;  %v785_v8 = vpop.f32.mrb[1].mxu0 }
  0xf0   : > { %v251_v9 = vpop.f32.mrb[2].mxu0 }
  0xf1   : > { %v786_v10 = vpop.f32.mrb[3].mxu0  ;;  %v255_v11 = vsel %vm207_vm1, %v254_v7, -inf }
  0xf2   : > { %256 = vmax.xlane.f32.xlu0 %v255_v11 }
 0x17f   : > { %v257_v12 = vpop.xlane.xlu0 %256 }
 0x180   : > { %v258_v13 = vsub.f32 %v254_v7, %v257_v12 }
 0x182   : > { %v259_v14 = vmul.f32 1.442695, %v258_v13 }
 0x184   : > { %845 = vpow2.f32 %v259_v14 }
 0x18e   : > { %v846_v15 = vpop.eup %845 }
 0x18f   : > { %v261_v16 = vsel %vm207_vm1, %v846_v15, 0.0 }
 0x190   : > { %262 = vadd.xlane.f32.xlu0 %v261_v16 }
 0x1a6   : > { %430 = vrot.lane.b32.xlu0 %v205_v2, %s872_s22 }
 0x21d   : > { %v263_v20 = vpop.xlane.xlu0 %262 }
 0x21e   : > { %847 = vrcp.f32 %v263_v20 }
 0x221   : > { %v431_v27 = vpop.permute.xlu0 %430 }
 0x222   : > { %v436_v29 = vsel %vm207_vm1, %v431_v27, 0 }
 0x228   : > { %v848_v21 = vpop.eup %847 }
 0x229   : > { %v265_v23 = vmul.f32 %v848_v21, %v846_v15 }
 0x22b   : > { %v266_v25 = vpack.c.bf16 %v265_v23, %v265_v23 }
 0x22d   : > { %790 = vmatmul.mubr.msk.bf16.vlgmr.msra.gmra.mrb[0].mxu1 %vm207_vm1, %v266_v25 }
 0x22e   : > { %794 = vmatpush3.bf16.xpose.msra.mxu1 %v324_v24  ;;  %795 = vmatprep.mubr.msk.bf16.mxu1 %vm870_vm0, %v869_v0 }
 0x22f   : > { %805 = vmatprep.subr.bf16.mxu1 %v869_v0 }
 0x235   : > { %796 = vmatmul.mubr.msk.bf16.vlgmr.msra.gmra.mrb[4].mxu1 %vm207_vm1, %v316_v26 }
 0x236   : > { %806 = vmatpush3.bf16.xpose.msra.mxu1 %v436_v29  ;;  %807 = vmatprep.mubr.msk.bf16.mxu1 %vm870_vm0, %v869_v0 }
 0x237   : > { %817 = vmatprep.subr.bf16.mxu1 %v869_v0 }
 0x23d   : > { %808 = vmatmul.mubr.msk.bf16.vlgmr.msra.gmra.mrb[8].mxu1 %vm207_vm1, %v429_v28 }
 0x23e   : > { %818 = vmatpush3.bf16.xpose.msra.mxu1 %v547_v31  ;;  %819 = vmatprep.mubr.msk.bf16.mxu1 %vm870_vm0, %v869_v0 }
 0x245   : > { %820 = vmatmul.mubr.msk.bf16.vlgmr.msra.gmra.mrb[12].mxu1 %vm207_vm1, %v540_v32 }
 0x300   : > { %v958_v33 = vpop.f32.mrb[0].mxu1 }
 0x301   : > { %v791_v34 = vpop.f32.mrb[1].mxu1 }
 0x302   : > { %v311_v35 = vpop.f32.mrb[2].mxu1 }
 0x303   : > { %v792_v36 = vpop.f32.mrb[3].mxu1 }
 0x308   : > { %v360_v37 = vpop.f32.mrb[4].mxu1 }
 0x309   : > { %v366_v38 = vmul.f32 0.35355338, %v360_v37  ;;  %v797_v39 = vpop.f32.mrb[5].mxu1 }
 0x30a   : > { %v363_v40 = vpop.f32.mrb[6].mxu1 }
 0x30b   : > { %v798_v41 = vpop.f32.mrb[7].mxu1  ;;  %v367_v42 = vsel %vm207_vm1, %v366_v38, -inf }
 0x30c   : > { %368 = vmax.xlane.f32.xlu1 %v367_v42 }
 0x310   : > { %v472_v43 = vpop.f32.mrb[8].mxu1 }
 0x311   : > { %v478_v44 = vmul.f32 0.35355338, %v472_v43  ;;  %v809_v45 = vpop.f32.mrb[9].mxu1 }
 0x312   : > { %v475_v46 = vpop.f32.mrb[10].mxu1 }
 0x313   : > { %v479_v47 = vsel %vm207_vm1, %v478_v44, -inf  ;;  %v810_v48 = vpop.f32.mrb[11].mxu1 }
 0x314   : > { %480 = vmax.xlane.f32.xlu0 %v479_v47 }
 0x318   : > { %v583_v49 = vpop.f32.mrb[12].mxu1 }
 0x319   : > { %v589_v50 = vmul.f32 0.35355338, %v583_v49  ;;  %v821_v51 = vpop.f32.mrb[13].mxu1 }
 0x31a   : > { %v586_v52 = vpop.f32.mrb[14].mxu1 }
 0x31b   : > { %v590_v53 = vsel %vm207_vm1, %v589_v50, -inf  ;;  %v822_v54 = vpop.f32.mrb[15].mxu1 }
 0x31c   : > { %591 = vmax.xlane.f32.xlu1 %v590_v53 }
 0x399   : > { %v369_v55 = vpop.xlane.xlu1 %368 }
 0x39a   : > { %v370_v56 = vsub.f32 %v366_v38, %v369_v55 }
 0x39c   : > { %v371_v57 = vmul.f32 1.442695, %v370_v56 }
 0x39e   : > { %849 = vpow2.f32 %v371_v57 }
 0x3a1   : > { %v481_v58 = vpop.xlane.xlu0 %480 }
 0x3a2   : > { %v482_v59 = vsub.f32 %v478_v44, %v481_v58 }
 0x3a4   : > { %v483_v60 = vmul.f32 1.442695, %v482_v59 }
 0x3a6   : > { %851 = vpow2.f32 %v483_v60 }
 0x3a8   : > { %v850_v61 = vpop.eup %849 }
 0x3a9   : > { %v373_v62 = vsel %vm207_vm1, %v850_v61, 0.0  ;;  %v592_v2 = vpop.xlane.xlu1 %591 }
 0x3aa   : > { %374 = vadd.xlane.f32.xlu1 %v373_v62  ;;  %v593_v3 = vsub.f32 %v589_v50, %v592_v2 }
 0x3ac   : > { %v594_v4 = vmul.f32 1.442695, %v593_v3 }
 0x3ae   : > { %853 = vpow2.f32 %v594_v4 }
 0x3b0   : > { %v852_v63 = vpop.eup %851 }
 0x3b1   : > { %v485_v1 = vsel %vm207_vm1, %v852_v63, 0.0 }
 0x3b2   : > { %486 = vadd.xlane.f32.xlu0 %v485_v1 }
 0x3b8   : > { %v854_v5 = vpop.eup %853 }
 0x3b9   : > { %v596_v6 = vsel %vm207_vm1, %v854_v5, 0.0 }
 0x3bb   : > { %491 = vrot.lane.b32.xlu1 %v937_v18, %s872_s22 }
 0x3c8   : > { %380 = vrot.lane.b32.xlu0 %v937_v18, %s871_s21 }
 0x3df   : > { %597 = vadd.xlane.f32.xlu1 %v596_v6 }
 0x3f0   : > { %602 = vrot.lane.b32.xlu1 %v937_v18, %s873_s23 }
 0x437   : > { %v375_v7 = vpop.xlane.xlu1 %374 }
 0x438   : > { %855 = vrcp.f32 %v375_v7 }
 0x43b   : > { %v492_v13 = vpop.permute.xlu1 %491 }
 0x43c   : > { %v497_v15 = vsel %vm270_vm2, %v492_v13, 0 }
 0x43f   : > { %v487_v8 = vpop.xlane.xlu0 %486 }
 0x440   : > { %857 = vrcp.f32 %v487_v8 }
 0x442   : > { %v856_v9 = vpop.eup %855 }
 0x443   : > { %v377_v10 = vmul.f32 %v856_v9, %v850_v61  ;;  %v381_v11 = vpop.permute.xlu0 %380 }
 0x444   : > { %v386_v12 = vsel %vm270_vm2, %v381_v11, 0 }
 0x445   : > { %800 = vmatpush3.bf16.msra.mxu0 %v386_v12  ;;  %v378_v14 = vpack.c.bf16 %v377_v10, %v377_v10 }
 0x446   : > { %811 = vmatprep.subr.bf16.mxu0 %v869_v0 }
 0x448   : > { %802 = vmatmul.mubr.msk.bf16.vlgmr.msra.gmra.mrb[4].mxu0 %vm207_vm1, %v378_v14 }
 0x449   : > { %812 = vmatpush3.bf16.msra.mxu0 %v497_v15  ;;  %813 = vmatprep.mubr.msk.bf16.mxu0 %vm870_vm0, %v869_v0 }
 0x44a   : > { %v858_v16 = vpop.eup %857  ;;  %823 = vmatprep.subr.bf16.mxu0 %v869_v0 }
 0x44b   : > { %v489_v17 = vmul.f32 %v858_v16, %v852_v63 }
 0x44d   : > { %v490_v18 = vpack.c.bf16 %v489_v17, %v489_v17 }
 0x450   : > { %814 = vmatmul.mubr.msk.bf16.vlgmr.msra.gmra.mrb[8].mxu0 %vm207_vm1, %v490_v18 }
 0x451   : > { %825 = vmatprep.mubr.msk.bf16.mxu0 %vm870_vm0, %v869_v0 }
 0x46c   : > { %v598_v19 = vpop.xlane.xlu1 %597 }
 0x46d   : > { %859 = vrcp.f32 %v598_v19 }
 0x470   : > { %v603_v20 = vpop.permute.xlu1 %602 }
 0x471   : > { %v608_v21 = vsel %vm270_vm2, %v603_v20, 0 }
 0x472   : > { %824 = vmatpush3.bf16.msra.mxu0 %v608_v21 }
 0x477   : > { %v860_v22 = vpop.eup %859 }
 0x478   : > { %v600_v23 = vmul.f32 %v860_v22, %v854_v5 }
 0x47a   : > { %v601_v24 = vpack.c.bf16 %v600_v23, %v600_v23 }
 0x47c   : > { %826 = vmatmul.mubr.msk.bf16.vlgmr.msra.gmra.mrb[12].mxu0 %vm207_vm1, %v601_v24 }
 0x51b   : > { %v422_v25 = vpop.f32.mrb[4].mxu0 }
 0x51c   : > { %651 = vrot.lane.b32.xlu0 %v422_v25, %s874_s27  ;;  %v803_v26 = vpop.f32.mrb[5].mxu0 }
 0x51d   : > { %v425_v27 = vpop.f32.mrb[6].mxu0 }
 0x51e   : > { %v804_v28 = vpop.f32.mrb[7].mxu0 }
 0x523   : > { %v533_v29 = vpop.f32.mrb[8].mxu0 }
 0x524   : > { %655 = vrot.lane.b32.xlu1 %v533_v29, %s875_s28  ;;  %v815_v0 = vpop.f32.mrb[9].mxu0 }
 0x525   : > { %v536_v30 = vpop.f32.mrb[10].mxu0 }
 0x526   : > { %v816_v31 = vpop.f32.mrb[11].mxu0 }
 0x54f   : > { %v644_v32 = vpop.f32.mrb[12].mxu0 }
 0x550   : > { %659 = vrot.lane.b32.xlu0 %v644_v32, %s876_s29  ;;  %v827_v34 = vpop.f32.mrb[13].mxu0 }
 0x551   : > { %v647_v35 = vpop.f32.mrb[14].mxu0 }
 0x552   : > { %v828_v36 = vpop.f32.mrb[15].mxu0 }
 0x58e   : > { %v652_v37 = vpop.permute.xlu0 %651 }
 0x58f   : > { %v662_v39 = vsel %vm207_vm1, %v958_v33, %v652_v37 }
 0x596   : > { %v656_v38 = vpop.permute.xlu1 %655 }
 0x597   : > { %v664_v40 = vsel %vm663_vm3, %v662_v39, %v656_v38 }
 0x5c2   : > { %v660_v41 = vpop.permute.xlu0 %659 }
 0x5c3   : > { %v666_v42 = vsel %vm665_vm4, %v664_v40, %v660_v41 }
 0x5c4   : > { %668 = vst.msk [vmem:[%s199_s5] sm:$0xff] %vm667_vm5, %v666_v42 }
 0x5c5 PF: > { %s13_s12 = sadd.s32 1, %s867_s12  }
 0x5c6   : > { %p10_p4 = scmp.ge.s32.totalorder %s13_s12, 4  }
 0x5c8   :  { %12 = sbr.rel (!%p10_p4) target bundleno = 1 (0x1), region = 68 }

// kernel: detr_forward.80
= control target key start
LH: loop header
LB: loop body
LE: loop exit
PB: predicated region body
PF: predicated region fallthrough
CT: control target
= control target key end

     0   :  { %v205_v0 = vmov 0.0   ;;  %vm206_vm0 = vmmov 0   ;;  %s266_s1 = inlined_call_operand.vmem [shape: bf16[128,128], index: 1, kind: input, shape index: {}]   ;;  %s267_s0 = inlined_call_operand.vmem [shape: f32[16,128], index: 0, kind: input, shape index: {}]   ;;  %s268_s2 = inlined_call_operand.vmem [shape: f32[1,128], index: 2, kind: input, shape index: {}]   ;;  %s269_s3 = inlined_call_operand.vmem [shape: f32[16,128], index: 3, kind: output, shape index: {}]  }
   0x1   :  { %175 = vmatprep.subr.bf16.mxu0 %v205_v0  ;;  %v197_v1 = vld [vmem:[%s266_s1] sm:$0xff]   ;;  %191 = vmatprep.mubr.msk.bf16.mxu0 %vm206_vm0, %v205_v0  ;;  %v198_v2 = vld [vmem:[%s266_s1 + $0x8] sm:$0xff]   ;;  %v199_v3 = vld [vmem:[%s266_s1 + $0x10] sm:$0xff]  }
   0x2   :  { %176 = vmatpush3.bf16.msra.mxu0 %v197_v1  ;;  %v200_v4 = vld [vmem:[%s266_s1 + $0x18] sm:$0xff]   ;;  %v201_v5 = vld [vmem:[%s266_s1 + $0x20] sm:$0xff]   ;;  %v202_v6 = vld [vmem:[%s266_s1 + $0x28] sm:$0xff]  }
   0x3   :  { %177 = vmatprep.subr.bf16.mxu0 %v205_v0  ;;  %v203_v7 = vld [vmem:[%s266_s1 + $0x30] sm:$0xff]   ;;  %v204_v8 = vld [vmem:[%s266_s1 + $0x38] sm:$0xff]   ;;  %v15_v9 = vld [vmem:[%s267_s0] sm:$0xff] }
   0x4   :  { %v16_v10 = vld [vmem:[%s267_s0 + $0x8] sm:$0xff]  ;;  %v165_v12 = vld [vmem:[%s268_s2] ss:$0 sm:$0xff] }
   0x5   :  { %v25_v11 = vpack.c.bf16 %v16_v10, %v15_v9 }
   0x6   :  { %178 = vmatpush3.bf16.msra.mxu0 %v198_v2 }
   0x7   :  { %179 = vmatprep.subr.bf16.mxu0 %v205_v0 }
   0xa   :  { %180 = vmatpush3.bf16.msra.mxu0 %v199_v3 }
   0xb   :  { %181 = vmatprep.subr.bf16.mxu0 %v205_v0 }
   0xe   :  { %182 = vmatpush3.bf16.msra.mxu0 %v200_v4 }
   0xf   :  { %183 = vmatprep.subr.bf16.mxu0 %v205_v0 }
  0x12   :  { %184 = vmatpush3.bf16.msra.mxu0 %v201_v5 }
  0x13   :  { %185 = vmatprep.subr.bf16.mxu0 %v205_v0 }
  0x16   :  { %186 = vmatpush3.bf16.msra.mxu0 %v202_v6 }
  0x17   :  { %187 = vmatprep.subr.bf16.mxu0 %v205_v0 }
  0x1a   :  { %188 = vmatpush3.bf16.msra.mxu0 %v203_v7 }
  0x1b   :  { %189 = vmatprep.subr.bf16.mxu0 %v205_v0 }
  0x1e   :  { %190 = vmatpush3.bf16.msra.mxu0 %v204_v8 }
  0x21   :  { %192 = vmatmul.mubr.bf16.vlgmr.msra.gmra.mrb[0].mxu0 %v25_v11 }
  0xf4   :  { %v124_v13 = vpop.f32.mrb[0].mxu0 }
  0xf5   :  { %v147_v14 = vadd.f32 %v165_v12, %v124_v13  ;;  %v193_v15 = vpop.f32.mrb[1].mxu0 }
  0xf6   :  { %v127_v16 = vpop.f32.mrb[2].mxu0 }
  0xf7   :  { %v149_v17 = vmax.f32 %v147_v14, 0.0  ;;  %v148_v18 = vadd.f32 %v165_v12, %v127_v16  ;;  %v194_v19 = vpop.f32.mrb[3].mxu0 }
  0xf9   :  { %151 = vst [vmem:[%s269_s3] sm:$0xff] %v149_v17  ;;  %v150_v20 = vmax.f32 %v148_v18, 0.0 }
  0xfb   :  { %152 = vst [vmem:[%s269_s3 + $0x8] sm:$0xff] %v150_v20 }

// kernel: detr_forward.77
= control target key start
LH: loop header
LB: loop body
LE: loop exit
PB: predicated region body
PF: predicated region fallthrough
CT: control target
= control target key end

     0   :  { %s899_s12 = smov 0   ;;  %s998_s0 = inlined_call_operand.vmem [shape: f32[2,8,32], index: 0, kind: input, shape index: {}]   ;;  %s999_s1 = inlined_call_operand.vmem [shape: f32[2,16,32], index: 1, kind: input, shape index: {}]   ;;  %s1000_s2 = inlined_call_operand.vmem [shape: f32[2,16,32], index: 2, kind: input, shape index: {}]   ;;  %s1001_s3 = inlined_call_operand.vmem [shape: f32[2,8,32], index: 3, kind: output, shape index: {}]  }
   0x1 LB: > { %s744_s13 = sadd.s32 4294967295, %s869_s12   ;;  %p748_p0 = scmp.ge.s32.totalorder %s869_s12, 1  ;;  %s869_s12 = sphi %s899_s12, %s13_s12  }
   0x2   : > { %p156_p1 = scmp.lt.s32.totalorder %s869_s12, 3 }
   0x4   : > { %p157_p2 = pnand %p748_p0, %p156_p1 }
   0x5   : > { %p188_p3 = scmp.lt.s32.totalorder (!%p157_p2), %s744_s13, 1  ;;  %v871_v0 = vmov (!%p157_p2), 0.0   ;;  %vm872_vm0 = vmmov (!%p157_p2), 0   ;;  %vm215_vm1 = vcmask (!%p157_p2), 64512   ;;  %vm263_vm2 = vcmask (!%p157_p2), 130048   ;;  %s873_s22 = smov (!%p157_p2), 120  }
   0x6   : > { %160 = sbr.rel (%p157_p2) target bundleno = 1477 (0x5c5), region = 32  ;;  %783 = vmatprep.subr.bf16.mxu0 (!%p157_p2), %v871_v0  ;;  %785 = vmatprep.mubr.msk.bf16.mxu0 (!%p157_p2), %vm872_vm0, %v871_v0  ;;  %s874_s23 = smov (!%p157_p2), 112   ;;  %vm663_vm3 = vcmask (!%p157_p2), 195584   ;;  %vm665_vm4 = vcmask (!%p157_p2), 261120  }
   0x7   : > { %789 = vmatprep.subr.bf16.mxu1 (!%p157_p2), %v871_v0  ;;  %791 = vmatprep.mubr.msk.bf16.mxu1 (!%p157_p2), %vm872_vm0, %v871_v0  ;;  %s875_s24 = smov (!%p157_p2), 104   ;;  %s876_s28 = smov (!%p157_p2), 8  }
   0x8   : > { %s877_s29 = smov (!%p157_p2), 16   ;;  %s878_s30 = smov (!%p157_p2), 24  }
   0xd   : > { %s1003_s13 = smov (!%p188_p3, %s744_s13), 1 }
   0xe   : > { %s765_s14 = sshll.u32 %s1003_s13, 4  ;;  %s749_s15 = sshll.u32 %s1003_s13, 3 }
   0xf   : > { %s196_s18 = scalar_lea.vmem %s999_s1, %s765_s14  ;;  %s191_s21 = scalar_lea.vmem %s998_s0, %s749_s15 }
  0x10   : > { %v208_v1 = vld [vmem:[%s196_s18] sm:$0xff]  ;;  %v209_v2 = vld [vmem:[%s196_s18 + $0x8] sm:$0xff]  ;;  %s201_s27 = scalar_lea.vmem %s1000_s2, %s765_s14  ;;  %s205_s6 = scalar_lea.vmem %s1001_s3, %s749_s15 }
  0x11   : > { %v213_v3 = vpack.c.bf16 %v209_v2, %v208_v1  ;;  %v207_v5 = vld [vmem:[%s191_s21] sm:$0xff]  ;;  %v211_v19 = vld [vmem:[%s201_s27 + $0x8] sm:$0xff] }
  0x12   : > { %v212_v6 = vpack.c.bf16 %v207_v5, %v207_v5  ;;  %v210_v18 = vld [vmem:[%s201_s27] sm:$0xff] }
  0x13   : > { %v220_v4 = vsel %vm215_vm1, %v213_v3, 0  ;;  %323 = vrot.lane.b32.xlu1 %v213_v3, %s873_s22  ;;  %v944_v20 = vpack.c.bf16 %v211_v19, %v210_v18 }
  0x14   : > { %784 = vmatpush3.bf16.xpose.msra.mxu0 %v220_v4 }
  0x15   : > { %801 = vmatprep.subr.bf16.mxu0 %v871_v0  ;;  %790 = vmatpush3.bf16.msra.mxu1 %v944_v20 }
  0x16   : > { %795 = vmatprep.subr.bf16.mxu1 %v871_v0 }
  0x17   : > { %320 = vrot.lane.b32.xlu1 %v212_v6, %s873_s22 }
  0x1b   : > { %786 = vmatmul.mubr.msk.bf16.vlgmr.msra.gmra.mrb[0].mxu0 %vm215_vm1, %v212_v6  ;;  %431 = vrot.lane.b32.xlu1 %v212_v6, %s874_s23 }
  0x1c   : > { %803 = vmatprep.mubr.msk.bf16.mxu0 %vm872_vm0, %v871_v0 }
  0x1f   : > { %542 = vrot.lane.b32.xlu1 %v213_v3, %s875_s24 }
  0x23   : > { %540 = vrot.lane.b32.xlu1 %v212_v6, %s875_s24 }
  0x85   : > { %v324_v23 = vpop.permute.xlu1 %323 }
  0x86   : > { %v329_v25 = vsel %vm215_vm1, %v324_v23, 0 }
  0x89   : > { %v321_v27 = vpop.permute.xlu1 %320 }
  0x8d   : > { %v432_v29 = vpop.permute.xlu1 %431 }
  0x91   : > { %v543_v31 = vpop.permute.xlu1 %542 }
  0x92   : > { %v548_v32 = vsel %vm215_vm1, %v543_v31, 0 }
  0x95   : > { %v541_v33 = vpop.permute.xlu1 %540 }
  0xee   : > { %v256_v7 = vpop.f32.mrb[0].mxu0 }
  0xef   : > { %v262_v8 = vmul.f32 0.35355338, %v256_v7  ;;  %v787_v9 = vpop.f32.mrb[1].mxu0 }
  0xf0   : > { %v259_v10 = vpop.f32.mrb[2].mxu0 }
  0xf1   : > { %v788_v11 = vpop.f32.mrb[3].mxu0  ;;  %v264_v12 = vsel %vm263_vm2, %v262_v8, -inf }
  0xf2   : > { %265 = vmax.xlane.f32.xlu0 %v264_v12 }
 0x17f   : > { %v266_v13 = vpop.xlane.xlu0 %265 }
 0x180   : > { %v267_v14 = vsub.f32 %v262_v8, %v266_v13 }
 0x182   : > { %v268_v15 = vmul.f32 1.442695, %v267_v14 }
 0x184   : > { %847 = vpow2.f32 %v268_v15 }
 0x18e   : > { %v848_v16 = vpop.eup %847 }
 0x18f   : > { %v270_v17 = vsel %vm263_vm2, %v848_v16, 0.0 }
 0x190   : > { %271 = vadd.xlane.f32.xlu0 %v270_v17 }
 0x1a6   : > { %433 = vrot.lane.b32.xlu0 %v213_v3, %s874_s23 }
 0x21d   : > { %v272_v21 = vpop.xlane.xlu0 %271 }
 0x21e   : > { %849 = vrcp.f32 %v272_v21 }
 0x221   : > { %v434_v28 = vpop.permute.xlu0 %433 }
 0x222   : > { %v439_v30 = vsel %vm215_vm1, %v434_v28, 0 }
 0x228   : > { %v850_v22 = vpop.eup %849 }
 0x229   : > { %v274_v24 = vmul.f32 %v850_v22, %v848_v16 }
 0x22b   : > { %v275_v26 = vpack.c.bf16 %v274_v24, %v274_v24 }
 0x22d   : > { %792 = vmatmul.mubr.msk.bf16.vlgmr.msra.gmra.mrb[0].mxu1 %vm263_vm2, %v275_v26 }
 0x22e   : > { %796 = vmatpush3.bf16.xpose.msra.mxu1 %v329_v25  ;;  %797 = vmatprep.mubr.msk.bf16.mxu1 %vm872_vm0, %v871_v0 }
 0x22f   : > { %807 = vmatprep.subr.bf16.mxu1 %v871_v0 }
 0x235   : > { %798 = vmatmul.mubr.msk.bf16.vlgmr.msra.gmra.mrb[4].mxu1 %vm215_vm1, %v321_v27 }
 0x236   : > { %808 = vmatpush3.bf16.xpose.msra.mxu1 %v439_v30  ;;  %809 = vmatprep.mubr.msk.bf16.mxu1 %vm872_vm0, %v871_v0 }
 0x237   : > { %819 = vmatprep.subr.bf16.mxu1 %v871_v0 }
 0x23d   : > { %810 = vmatmul.mubr.msk.bf16.vlgmr.msra.gmra.mrb[8].mxu1 %vm215_vm1, %v432_v29 }
 0x23e   : > { %820 = vmatpush3.bf16.xpose.msra.mxu1 %v548_v32  ;;  %821 = vmatprep.mubr.msk.bf16.mxu1 %vm872_vm0, %v871_v0 }
 0x245   : > { %822 = vmatmul.mubr.msk.bf16.vlgmr.msra.gmra.mrb[12].mxu1 %vm215_vm1, %v541_v33 }
 0x300   : > { %v964_v34 = vpop.f32.mrb[0].mxu1 }
 0x301   : > { %v793_v35 = vpop.f32.mrb[1].mxu1 }
 0x302   : > { %v316_v36 = vpop.f32.mrb[2].mxu1 }
 0x303   : > { %v794_v37 = vpop.f32.mrb[3].mxu1 }
 0x308   : > { %v365_v38 = vpop.f32.mrb[4].mxu1 }
 0x309   : > { %v371_v39 = vmul.f32 0.35355338, %v365_v38  ;;  %v799_v40 = vpop.f32.mrb[5].mxu1 }
 0x30a   : > { %v368_v41 = vpop.f32.mrb[6].mxu1 }
 0x30b   : > { %v800_v42 = vpop.f32.mrb[7].mxu1  ;;  %v372_v43 = vsel %vm263_vm2, %v371_v39, -inf }
 0x30c   : > { %373 = vmax.xlane.f32.xlu1 %v372_v43 }
 0x310   : > { %v475_v44 = vpop.f32.mrb[8].mxu1 }
 0x311   : > { %v481_v45 = vmul.f32 0.35355338, %v475_v44  ;;  %v811_v46 = vpop.f32.mrb[9].mxu1 }
 0x312   : > { %v478_v47 = vpop.f32.mrb[10].mxu1 }
 0x313   : > { %v482_v48 = vsel %vm263_vm2, %v481_v45, -inf  ;;  %v812_v49 = vpop.f32.mrb[11].mxu1 }
 0x314   : > { %483 = vmax.xlane.f32.xlu0 %v482_v48 }
 0x318   : > { %v584_v50 = vpop.f32.mrb[12].mxu1 }
 0x319   : > { %v590_v51 = vmul.f32 0.35355338, %v584_v50  ;;  %v823_v52 = vpop.f32.mrb[13].mxu1 }
 0x31a   : > { %v587_v53 = vpop.f32.mrb[14].mxu1 }
 0x31b   : > { %v591_v54 = vsel %vm263_vm2, %v590_v51, -inf  ;;  %v824_v55 = vpop.f32.mrb[15].mxu1 }
 0x31c   : > { %592 = vmax.xlane.f32.xlu1 %v591_v54 }
 0x399   : > { %v374_v56 = vpop.xlane.xlu1 %373 }
 0x39a   : > { %v375_v57 = vsub.f32 %v371_v39, %v374_v56 }
 0x39c   : > { %v376_v58 = vmul.f32 1.442695, %v375_v57 }
 0x39e   : > { %851 = vpow2.f32 %v376_v58 }
 0x3a1   : > { %v484_v59 = vpop.xlane.xlu0 %483 }
 0x3a2   : > { %v485_v60 = vsub.f32 %v481_v45, %v484_v59 }
 0x3a4   : > { %v486_v61 = vmul.f32 1.442695, %v485_v60 }
 0x3a6   : > { %853 = vpow2.f32 %v486_v61 }
 0x3a8   : > { %v852_v62 = vpop.eup %851 }
 0x3a9   : > { %v378_v63 = vsel %vm263_vm2, %v852_v62, 0.0  ;;  %v593_v3 = vpop.xlane.xlu1 %592 }
 0x3aa   : > { %379 = vadd.xlane.f32.xlu1 %v378_v63  ;;  %v594_v4 = vsub.f32 %v590_v51, %v593_v3 }
 0x3ac   : > { %v595_v5 = vmul.f32 1.442695, %v594_v4 }
 0x3ae   : > { %855 = vpow2.f32 %v595_v5 }
 0x3b0   : > { %v854_v1 = vpop.eup %853 }
 0x3b1   : > { %v488_v2 = vsel %vm263_vm2, %v854_v1, 0.0 }
 0x3b2   : > { %489 = vadd.xlane.f32.xlu0 %v488_v2 }
 0x3b8   : > { %v856_v6 = vpop.eup %855 }
 0x3b9   : > { %v597_v7 = vsel %vm263_vm2, %v856_v6, 0.0 }
 0x3bb   : > { %494 = vrot.lane.b32.xlu1 %v944_v20, %s874_s23 }
 0x3c8   : > { %385 = vrot.lane.b32.xlu0 %v944_v20, %s873_s22 }
 0x3df   : > { %598 = vadd.xlane.f32.xlu1 %v597_v7 }
 0x3f0   : > { %603 = vrot.lane.b32.xlu1 %v944_v20, %s875_s24 }
 0x437   : > { %v380_v8 = vpop.xlane.xlu1 %379 }
 0x438   : > { %857 = vrcp.f32 %v380_v8 }
 0x43b   : > { %v495_v14 = vpop.permute.xlu1 %494 }
 0x43f   : > { %v490_v9 = vpop.xlane.xlu0 %489 }
 0x440   : > { %859 = vrcp.f32 %v490_v9 }
 0x442   : > { %v858_v10 = vpop.eup %857 }
 0x443   : > { %v382_v11 = vmul.f32 %v858_v10, %v852_v62  ;;  %v386_v12 = vpop.permute.xlu0 %385 }
 0x444   : > { %802 = vmatpush3.bf16.msra.mxu0 %v386_v12 }
 0x445   : > { %v383_v13 = vpack.c.bf16 %v382_v11, %v382_v11  ;;  %813 = vmatprep.subr.bf16.mxu0 %v871_v0 }
 0x447   : > { %804 = vmatmul.mubr.msk.bf16.vlgmr.msra.gmra.mrb[4].mxu0 %vm263_vm2, %v383_v13 }
 0x448   : > { %814 = vmatpush3.bf16.msra.mxu0 %v495_v14  ;;  %815 = vmatprep.mubr.msk.bf16.mxu0 %vm872_vm0, %v871_v0 }
 0x449   : > { %825 = vmatprep.subr.bf16.mxu0 %v871_v0 }
 0x44a   : > { %v860_v15 = vpop.eup %859 }
 0x44b   : > { %v492_v16 = vmul.f32 %v860_v15, %v854_v1 }
 0x44d   : > { %v493_v17 = vpack.c.bf16 %v492_v16, %v492_v16 }
 0x44f   : > { %816 = vmatmul.mubr.msk.bf16.vlgmr.msra.gmra.mrb[8].mxu0 %vm263_vm2, %v493_v17 }
 0x450   : > { %827 = vmatprep.mubr.msk.bf16.mxu0 %vm872_vm0, %v871_v0 }
 0x46c   : > { %v599_v18 = vpop.xlane.xlu1 %598 }
 0x46d   : > { %861 = vrcp.f32 %v599_v18 }
 0x470   : > { %v604_v19 = vpop.permute.xlu1 %603 }
 0x471   : > { %826 = vmatpush3.bf16.msra.mxu0 %v604_v19 }
 0x477   : > { %v862_v20 = vpop.eup %861 }
 0x478   : > { %v601_v21 = vmul.f32 %v862_v20, %v856_v6 }
 0x47a   : > { %v602_v22 = vpack.c.bf16 %v601_v21, %v601_v21 }
 0x47c   : > { %828 = vmatmul.mubr.msk.bf16.vlgmr.msra.gmra.mrb[12].mxu0 %vm263_vm2, %v602_v22 }
 0x51a   : > { %v425_v23 = vpop.f32.mrb[4].mxu0 }
 0x51b   : > { %650 = vrot.lane.b32.xlu0 %v425_v23, %s876_s28  ;;  %v805_v24 = vpop.f32.mrb[5].mxu0 }
 0x51c   : > { %v428_v25 = vpop.f32.mrb[6].mxu0 }
 0x51d   : > { %v806_v26 = vpop.f32.mrb[7].mxu0 }
 0x522   : > { %v534_v27 = vpop.f32.mrb[8].mxu0 }
 0x523   : > { %654 = vrot.lane.b32.xlu1 %v534_v27, %s877_s29  ;;  %v817_v0 = vpop.f32.mrb[9].mxu0 }
 0x524   : > { %v537_v28 = vpop.f32.mrb[10].mxu0 }
 0x525   : > { %v818_v29 = vpop.f32.mrb[11].mxu0 }
 0x54f   : > { %v643_v30 = vpop.f32.mrb[12].mxu0 }
 0x550   : > { %658 = vrot.lane.b32.xlu0 %v643_v30, %s878_s30  ;;  %v829_v31 = vpop.f32.mrb[13].mxu0 }
 0x551   : > { %v646_v32 = vpop.f32.mrb[14].mxu0 }
 0x552   : > { %v830_v33 = vpop.f32.mrb[15].mxu0 }
 0x58d   : > { %v651_v35 = vpop.permute.xlu0 %650 }
 0x58e   : > { %v661_v37 = vsel %vm215_vm1, %v964_v34, %v651_v35 }
 0x595   : > { %v655_v36 = vpop.permute.xlu1 %654 }
 0x596   : > { %v662_v38 = vsel %vm263_vm2, %v661_v37, %v655_v36 }
 0x5c2   : > { %v659_v39 = vpop.permute.xlu0 %658 }
 0x5c3   : > { %v664_v40 = vsel %vm663_vm3, %v662_v38, %v659_v39 }
 0x5c4   : > { %666 = vst.msk [vmem:[%s205_s6] sm:$0xff] %vm665_vm4, %v664_v40 }
 0x5c5 PF: > { %s13_s12 = sadd.s32 1, %s869_s12  }
 0x5c6   : > { %p10_p4 = scmp.ge.s32.totalorder %s13_s12, 4  }
 0x5c8   :  { %12 = sbr.rel (!%p10_p4) target bundleno = 1 (0x1), region = 68 }

// kernel: detr_forward.97
= control target key start
LH: loop header
LB: loop body
LE: loop exit
PB: predicated region body
PF: predicated region fallthrough
CT: control target
= control target key end

     0   :  { %vm16_vm0 = vcmask 261120   ;;  %s118_s0 = inlined_call_operand.vmem [shape: f32[16,32], index: 0, kind: input, shape index: {}]   ;;  %s119_s1 = inlined_call_operand.vmem [shape: f32[1,32], index: 1, kind: input, shape index: {}]   ;;  %s120_s2 = inlined_call_operand.vmem [shape: f32[1,32], index: 2, kind: input, shape index: {}]   ;;  %s121_s3 = inlined_call_operand.vmem [shape: f32[16,32], index: 3, kind: output, shape index: {}]  }
   0x1   :  { %v14_v0 = vld [vmem:[%s118_s0] sm:$0xff]  ;;  %v15_v1 = vld [vmem:[%s118_s0 + $0x8] sm:$0xff] }
   0x2   :  { %v17_v2 = vsel %vm16_vm0, %v14_v0, 0.0  ;;  %v20_v3 = vsel %vm16_vm0, %v15_v1, 0.0  ;;  %v68_v21 = vld [vmem:[%s119_s1] ss:$0 sm:$0xff] }
   0x3   :  { %18 = vadd.xlane.f32.xlu0 %v17_v2  ;;  %v69_v23 = vld [vmem:[%s120_s2] ss:$0 sm:$0xff] }
   0x7   :  { %21 = vadd.xlane.f32.xlu0 %v20_v3 }
  0x90   :  { %v19_v4 = vpop.xlane.xlu0 %18 }
  0x91   :  { %v24_v5 = vmul.f32 0.03125, %v19_v4 }
  0x93   :  { %v26_v6 = vsub.f32 %v14_v0, %v24_v5 }
  0x94   :  { %v22_v7 = vpop.xlane.xlu0 %21 }
  0x95   :  { %v25_v8 = vmul.f32 0.03125, %v22_v7  ;;  %v28_v9 = vmul.f32 %v26_v6, %v26_v6 }
  0x97   :  { %v27_v10 = vsub.f32 %v15_v1, %v25_v8  ;;  %v30_v11 = vsel %vm16_vm0, %v28_v9, 0.0 }
  0x98   :  { %31 = vadd.xlane.f32.xlu1 %v30_v11 }
  0x99   :  { %v29_v12 = vmul.f32 %v27_v10, %v27_v10 }
  0x9b   :  { %v33_v13 = vsel %vm16_vm0, %v29_v12, 0.0 }
  0x9c   :  { %34 = vadd.xlane.f32.xlu1 %v33_v13 }
 0x125   :  { %v32_v14 = vpop.xlane.xlu1 %31 }
 0x126   :  { %v36_v15 = vmul.f32 0.03125, %v32_v14 }
 0x128   :  { %v38_v16 = vadd.f32 1e-05, %v36_v15 }
 0x129   :  { %v35_v17 = vpop.xlane.xlu1 %34 }
 0x12a   :  { %70 = vrsqrt.f32 %v38_v16  ;;  %v37_v18 = vmul.f32 0.03125, %v35_v17 }
 0x12c   :  { %v39_v19 = vadd.f32 1e-05, %v37_v18 }
 0x12e   :  { %72 = vrsqrt.f32 %v39_v19 }
 0x134   :  { %v71_v20 = vpop.eup %70 }
 0x135   :  { %v42_v22 = vmul.f32 %v71_v20, %v26_v6 }
 0x137   :  { %v51_v24 = vmul.f32 %v68_v21, %v42_v22 }
 0x138   :  { %v73_v25 = vpop.eup %72 }
 0x139   :  { %v60_v26 = vadd.f32 %v69_v23, %v51_v24  ;;  %v43_v27 = vmul.f32 %v73_v25, %v27_v10 }
 0x13b   :  { %62 = vst.msk [vmem:[%s121_s3] sm:$0xff] %vm16_vm0, %v60_v26  ;;  %v52_v28 = vmul.f32 %v68_v21, %v43_v27 }
 0x13d   :  { %v61_v29 = vadd.f32 %v69_v23, %v52_v28 }
 0x13f   :  { %63 = vst.msk [vmem:[%s121_s3 + $0x8] sm:$0xff] %vm16_vm0, %v61_v29 }

// kernel: detr_forward.101
= control target key start
LH: loop header
LB: loop body
LE: loop exit
PB: predicated region body
PF: predicated region fallthrough
CT: control target
= control target key end

     0   :  { %v225_v0 = vmov 0.0   ;;  %vm226_vm0 = vmmov 0   ;;  %s286_s1 = inlined_call_operand.vmem [shape: bf16[128,128], index: 1, kind: input, shape index: {}]   ;;  %s287_s0 = inlined_call_operand.vmem [shape: f32[16,128], index: 0, kind: input, shape index: {}]   ;;  %s288_s2 = inlined_call_operand.vmem [shape: f32[1,128], index: 2, kind: input, shape index: {}]   ;;  %s289_s3 = inlined_call_operand.vmem [shape: f32[16,128], index: 3, kind: output, shape index: {}]  }
   0x1   :  { %187 = vmatprep.subr.bf16.mxu0 %v225_v0  ;;  %v209_v1 = vld [vmem:[%s286_s1] sm:$0xff]   ;;  %203 = vmatprep.mubr.msk.bf16.mxu0 %vm226_vm0, %v225_v0  ;;  %v210_v2 = vld [vmem:[%s286_s1 + $0x8] sm:$0xff]   ;;  %v211_v3 = vld [vmem:[%s286_s1 + $0x10] sm:$0xff]  }
   0x2   :  { %188 = vmatpush3.bf16.msra.mxu0 %v209_v1  ;;  %v212_v4 = vld [vmem:[%s286_s1 + $0x18] sm:$0xff]   ;;  %v213_v5 = vld [vmem:[%s286_s1 + $0x20] sm:$0xff]   ;;  %v214_v6 = vld [vmem:[%s286_s1 + $0x28] sm:$0xff]  }
   0x3   :  { %189 = vmatprep.subr.bf16.mxu0 %v225_v0  ;;  %v215_v7 = vld [vmem:[%s286_s1 + $0x30] sm:$0xff]   ;;  %v216_v8 = vld [vmem:[%s286_s1 + $0x38] sm:$0xff]   ;;  %v15_v9 = vld [vmem:[%s287_s0] sm:$0xff] }
   0x4   :  { %v16_v10 = vld [vmem:[%s287_s0 + $0x8] sm:$0xff]  ;;  %v175_v12 = vld [vmem:[%s288_s2] ss:$0 sm:$0xff] }
   0x5   :  { %v25_v11 = vpack.c.bf16 %v16_v10, %v15_v9 }
   0x6   :  { %190 = vmatpush3.bf16.msra.mxu0 %v210_v2 }
   0x7   :  { %191 = vmatprep.subr.bf16.mxu0 %v225_v0 }
   0xa   :  { %192 = vmatpush3.bf16.msra.mxu0 %v211_v3 }
   0xb   :  { %193 = vmatprep.subr.bf16.mxu0 %v225_v0 }
   0xe   :  { %194 = vmatpush3.bf16.msra.mxu0 %v212_v4 }
   0xf   :  { %195 = vmatprep.subr.bf16.mxu0 %v225_v0 }
  0x12   :  { %196 = vmatpush3.bf16.msra.mxu0 %v213_v5 }
  0x13   :  { %197 = vmatprep.subr.bf16.mxu0 %v225_v0 }
  0x16   :  { %198 = vmatpush3.bf16.msra.mxu0 %v214_v6 }
  0x17   :  { %199 = vmatprep.subr.bf16.mxu0 %v225_v0 }
  0x1a   :  { %200 = vmatpush3.bf16.msra.mxu0 %v215_v7 }
  0x1b   :  { %201 = vmatprep.subr.bf16.mxu0 %v225_v0 }
  0x1e   :  { %202 = vmatpush3.bf16.msra.mxu0 %v216_v8 }
  0x21   :  { %204 = vmatmul.mubr.bf16.vlgmr.msra.gmra.mrb[0].mxu0 %v25_v11 }
  0xf4   :  { %v124_v13 = vpop.f32.mrb[0].mxu0 }
  0xf5   :  { %v147_v14 = vadd.f32 %v175_v12, %v124_v13  ;;  %v205_v15 = vpop.f32.mrb[1].mxu0 }
  0xf6   :  { %v127_v16 = vpop.f32.mrb[2].mxu0 }
  0xf7   :  { %v176_v17 = vmul.f32 -1.442695, %v147_v14  ;;  %v148_v18 = vadd.f32 %v175_v12, %v127_v16  ;;  %v206_v19 = vpop.f32.mrb[3].mxu0 }
  0xf9   :  { %217 = vpow2.f32 %v176_v17  ;;  %v177_v20 = vmul.f32 -1.442695, %v148_v18 }
  0xfb   :  { %219 = vpow2.f32 %v177_v20 }
 0x103   :  { %v218_v21 = vpop.eup %217 }
 0x104   :  { %v155_v22 = vadd.f32 1.0, %v218_v21 }
 0x105   :  { %v220_v23 = vpop.eup %219 }
 0x106   :  { %221 = vrcp.f32 %v155_v22  ;;  %v156_v24 = vadd.f32 1.0, %v220_v23 }
 0x108   :  { %223 = vrcp.f32 %v156_v24 }
 0x110   :  { %v222_v25 = vpop.eup %221 }
 0x111   :  { %161 = vst [vmem:[%s289_s3] sm:$0xff] %v222_v25 }
 0x112   :  { %v224_v26 = vpop.eup %223 }
 0x113   :  { %162 = vst [vmem:[%s289_s3 + $0x8] sm:$0xff] %v224_v26 }

</bundles_post_ra>
